<compile_context>
chip_gen: v7x
topology: tpu7x:2x2x1
jax: 0.10.0
libtpu: 0.0.40
codegen_flags: <defaults>
</compile_context>

<pallas_src>
import numpy as np
import jax
import jax.numpy as jnp
from jax import lax
from jax.experimental import pallas as pl
from jax.experimental.pallas import tpu as pltpu


def binary_kernel(x1_ref, x2_ref, w1a_ref, w1b_ref, b1_ref,
                  w2_ref, b2_ref, w3_ref, b3_ref, o_ref, pad_ref):
    # x1_ref / x2_ref blocks: (nb, H, W, h);  pad_ref scratch: (nb, H+2, W+2, h) f32
    nb, H, W, h = x1_ref.shape
    M = nb * H * W
    cdt = w1a_ref.dtype          # MXU input dtype (f32 or bf16); accumulate in f32

    # ---- conv1 (1x1): channel concat eliminated -> x1@w1a + x2@w1b + b1 -----
    x1 = x1_ref[...].reshape(M, h).astype(cdt)
    x2 = x2_ref[...].reshape(M, h).astype(cdt)
    y1 = (jnp.dot(x1, w1a_ref[...], preferred_element_type=jnp.float32)
          + jnp.dot(x2, w1b_ref[...], preferred_element_type=jnp.float32)
          + b1_ref[...])
    res = jnp.maximum(y1, 0.0)                                   # (M, h) f32

    # ---- zero the padded scratch once; only the interior is rewritten ------
    pad_ref[...] = jnp.zeros_like(pad_ref)

    def conv3x3(act_f32, w_ref, b_ref):
        # Write activation into the interior of the zero-padded scratch.
        pad_ref[:, 1:H + 1, 1:W + 1, :] = act_f32.reshape(nb, H, W, h)
        # Hoist the 3 W-axis (dj) shifts; reuse each for all 3 di taps
        # (the di slices below are cheap major-axis offsets).
        cols = jnp.concatenate(
            [pad_ref[:, :, dj:dj + W, :] for dj in range(3)],
            axis=-1)                                             # (nb, H+2, W, 3h)
        patches = jnp.concatenate(
            [cols[:, di:di + H] for di in range(3)],
            axis=-1)                                             # (nb, H, W, 9h)
        # Single im2col matmul, K = 9h; weight was flattened host-side to (9h, h)
        # with matching (di, dj, c_in) ordering.
        return (jnp.dot(patches.reshape(M, 9 * h).astype(cdt), w_ref[...],
                        preferred_element_type=jnp.float32)
                + b_ref[...])                                    # (M, h) f32

    y2 = jnp.maximum(conv3x3(res, w2_ref, b2_ref), 0.0)          # conv2 + ReLU
    y3 = conv3x3(y2, w3_ref, b3_ref)                             # conv3
    out = jnp.maximum(y3 + res, 0.0)                             # residual + ReLU
    o_ref[...] = out.reshape(nb, H, W, h).astype(o_ref.dtype)


def binary_module_forward(x1, x2, params, *, block_n=1,
                          compute_dtype=jnp.float32):
    """x1, x2: (N, H, W, h) float32 NHWC.  Returns (N, H, W, h) float32.

    block_n:       images per grid step.  block_n=1 keeps an N-way "parallel"
                   grid (uses both TensorCores on v7x); block_n=N collapses
                   the grid to one fat step (amortises per-step overhead and
                   raises MXU M-occupancy on single-TC v5e/v6e).
    compute_dtype: MXU input dtype (jnp.float32 or jnp.bfloat16).  Accumulation
                   and all element-wise work (bias/ReLU/residual) stay in f32.
    """
    N, H, W, h = x1.shape
    assert N % block_n == 0, "block_n must divide the batch"
    w1, b1, w2, b2, w3, b3 = params

    # Host-side weight prep:
    #  * split the 1x1 weight so the in-kernel channel concat disappears,
    #  * flatten the 3x3 HWIO weights to (9h, h) for the im2col matmul.
    w1a = w1[:h].astype(compute_dtype)
    w1b = w1[h:].astype(compute_dtype)
    w2f = w2.reshape(9 * h, h).astype(compute_dtype)
    w3f = w3.reshape(9 * h, h).astype(compute_dtype)
    b1f = b1.astype(jnp.float32)
    b2f = b2.astype(jnp.float32)
    b3f = b3.astype(jnp.float32)

    x_spec = pl.BlockSpec((block_n, H, W, h), lambda n: (n, 0, 0, 0))
    full = lambda a: pl.BlockSpec(a.shape, lambda n: (0,) * a.ndim)

    return pl.pallas_call(
        binary_kernel,
        out_shape=jax.ShapeDtypeStruct((N, H, W, h), jnp.float32),
        grid=(N // block_n,),
        in_specs=[x_spec, x_spec,
                  full(w1a), full(w1b), full(b1f),
                  full(w2f), full(b2f),
                  full(w3f), full(b3f)],
        out_specs=x_spec,
        scratch_shapes=[pltpu.VMEM((block_n, H + 2, W + 2, h), jnp.float32)],
        compiler_params=pltpu.CompilerParams(
            dimension_semantics=("parallel",)),
    )(x1, x2, w1a, w1b, b1f, w2f, b2f, w3f, b3f)


def reference_forward(x1, x2, params):
    """Pure-JAX reference (NHWC / HWIO) for validation."""
    w1, b1, w2, b2, w3, b3 = params
    dn = ('NHWC', 'HWIO', 'NHWC')
    prec = lax.Precision.HIGHEST
    x = jnp.concatenate([x1, x2], axis=-1)
    x = lax.conv_general_dilated(x, w1.reshape(1, 1, *w1.shape), (1, 1), 'SAME',
                                 dimension_numbers=dn, precision=prec) + b1
    x = jnp.maximum(x, 0.0)
    res = x
    x = lax.conv_general_dilated(x, w2, (1, 1), 'SAME',
                                 dimension_numbers=dn, precision=prec) + b2
    x = jnp.maximum(x, 0.0)
    x = lax.conv_general_dilated(x, w3, (1, 1), 'SAME',
                                 dimension_numbers=dn, precision=prec) + b3
    return jnp.maximum(x + res, 0.0)


if __name__ == "__main__":
    # Small shapes consistent with the module: batch=2, h=32, spatial=16.
    N, H, W, h = 2, 16, 16, 32

    key = jax.random.PRNGKey(0)
    k = jax.random.split(key, 8)

    x1 = jax.random.normal(k[0], (N, H, W, h), jnp.float32)
    x2 = jax.random.normal(k[1], (N, H, W, h), jnp.float32)

    # Deterministic parameter init (Conv2d(2h,h,1), Conv2d(h,h,3), Conv2d(h,h,3)).
    scale1 = 1.0 / np.sqrt(2 * h * 1 * 1)
    scale3 = 1.0 / np.sqrt(h * 3 * 3)
    w1 = jax.random.normal(k[2], (2 * h, h), jnp.float32) * scale1       # 1x1 conv as matmul
    b1 = jax.random.normal(k[3], (1, h), jnp.float32) * scale1
    w2 = jax.random.normal(k[4], (3, 3, h, h), jnp.float32) * scale3     # HWIO
    b2 = jax.random.normal(k[5], (1, h), jnp.float32) * scale3
    w3 = jax.random.normal(k[6], (3, 3, h, h), jnp.float32) * scale3     # HWIO
    b3 = jax.random.normal(k[7], (1, h), jnp.float32) * scale3
    params = (w1, b1, w2, b2, w3, b3)

    ref = jax.block_until_ready(reference_forward(x1, x2, params))

    # 1) f32 MXU path, one image per grid step ("parallel" -> 2 TCs on v7x).
    out = jax.block_until_ready(
        binary_module_forward(x1, x2, params, block_n=1))
    np.testing.assert_allclose(np.asarray(out), np.asarray(ref),
                               rtol=1e-4, atol=1e-4)

    # 2) Full-batch block (single fat grid step, M = N*H*W) for single-TC chips.
    out_fat = jax.block_until_ready(
        binary_module_forward(x1, x2, params, block_n=N))
    np.testing.assert_allclose(np.asarray(out_fat), np.asarray(ref),
                               rtol=1e-4, atol=1e-4)

    # 3) bf16 MXU inputs with f32 accumulation (intentional precision trade,
    #    hence the looser tolerance).
    out_bf16 = jax.block_until_ready(
        binary_module_forward(x1, x2, params, block_n=1,
                              compute_dtype=jnp.bfloat16))
    np.testing.assert_allclose(np.asarray(out_bf16), np.asarray(ref),
                               rtol=5e-2, atol=5e-2)

    print("KERNEL_OK")
</pallas_src>

<mosaic_0001>
module attributes {stable_mosaic.version = 11 : i64} {
  func.func @binary_kernel(%arg0: i32, %arg1: memref<1x16x16x32xf32, #tpu.memory_space<vmem>>, %arg2: memref<1x16x16x32xf32, #tpu.memory_space<vmem>>, %arg3: memref<32x32xf32, #tpu.memory_space<vmem>>, %arg4: memref<32x32xf32, #tpu.memory_space<vmem>>, %arg5: memref<1x32xf32, #tpu.memory_space<vmem>>, %arg6: memref<288x32xf32, #tpu.memory_space<vmem>>, %arg7: memref<1x32xf32, #tpu.memory_space<vmem>>, %arg8: memref<288x32xf32, #tpu.memory_space<vmem>>, %arg9: memref<1x32xf32, #tpu.memory_space<vmem>>, %arg10: memref<1x16x16x32xf32, #tpu.memory_space<vmem>>, %arg11: memref<1x18x18x32xf32, #tpu.memory_space<vmem>>) attributes {dimension_semantics = [#tpu.dimension_semantics<parallel>], iteration_bounds = array<i64: 2>, scalar_prefetch = 0 : i64, scratch_operands = 1 : i64, tpu.core_type = #tpu.core_type<tc>, window_params = [{transform_indices = @transform_0, window_bounds = array<i64: 1, 16, 16, 32>}, {transform_indices = @transform_1, window_bounds = array<i64: 1, 16, 16, 32>}, {pipeline_mode = #tpu.pipeline_mode<synchronous>, transform_indices = @transform_2, window_bounds = array<i64: 32, 32>}, {pipeline_mode = #tpu.pipeline_mode<synchronous>, transform_indices = @transform_3, window_bounds = array<i64: 32, 32>}, {pipeline_mode = #tpu.pipeline_mode<synchronous>, transform_indices = @transform_4, window_bounds = array<i64: 1, 32>}, {pipeline_mode = #tpu.pipeline_mode<synchronous>, transform_indices = @transform_5, window_bounds = array<i64: 288, 32>}, {pipeline_mode = #tpu.pipeline_mode<synchronous>, transform_indices = @transform_6, window_bounds = array<i64: 1, 32>}, {pipeline_mode = #tpu.pipeline_mode<synchronous>, transform_indices = @transform_7, window_bounds = array<i64: 288, 32>}, {pipeline_mode = #tpu.pipeline_mode<synchronous>, transform_indices = @transform_8, window_bounds = array<i64: 1, 32>}, {transform_indices = @transform_9, window_bounds = array<i64: 1, 16, 16, 32>}]} {
    %c0 = arith.constant 0 : index
    %c0_0 = arith.constant 0 : index
    %c0_1 = arith.constant 0 : index
    %c0_2 = arith.constant 0 : index
    %0 = vector.load %arg1[%c0, %c0_0, %c0_1, %c0_2] : memref<1x16x16x32xf32, #tpu.memory_space<vmem>>, vector<1x16x16x32xf32>
    %1 = vector.shape_cast %0 : vector<1x16x16x32xf32> to vector<256x32xf32>
    %c0_3 = arith.constant 0 : index
    %c0_4 = arith.constant 0 : index
    %c0_5 = arith.constant 0 : index
    %c0_6 = arith.constant 0 : index
    %2 = vector.load %arg2[%c0_3, %c0_4, %c0_5, %c0_6] : memref<1x16x16x32xf32, #tpu.memory_space<vmem>>, vector<1x16x16x32xf32>
    %3 = vector.shape_cast %2 : vector<1x16x16x32xf32> to vector<256x32xf32>
    %c0_7 = arith.constant 0 : index
    %c0_8 = arith.constant 0 : index
    %4 = vector.load %arg3[%c0_7, %c0_8] : memref<32x32xf32, #tpu.memory_space<vmem>>, vector<32x32xf32>
    %cst = arith.constant dense<0.000000e+00> : vector<256x32xf32>
    %5 = tpu.matmul %1, %4, %cst {dimension_numbers = #tpu.dot_dimension_numbers<[1], [0], [0], [1], [0, 0, 1, 1], [], []>} : vector<256x32xf32>, vector<32x32xf32>, vector<256x32xf32> -> vector<256x32xf32>
    %c0_9 = arith.constant 0 : index
    %c0_10 = arith.constant 0 : index
    %6 = vector.load %arg4[%c0_9, %c0_10] : memref<32x32xf32, #tpu.memory_space<vmem>>, vector<32x32xf32>
    %cst_11 = arith.constant dense<0.000000e+00> : vector<256x32xf32>
    %7 = tpu.matmul %3, %6, %cst_11 {dimension_numbers = #tpu.dot_dimension_numbers<[1], [0], [0], [1], [0, 0, 1, 1], [], []>} : vector<256x32xf32>, vector<32x32xf32>, vector<256x32xf32> -> vector<256x32xf32>
    %8 = arith.addf %5, %7 : vector<256x32xf32>
    %c0_12 = arith.constant 0 : index
    %c0_13 = arith.constant 0 : index
    %9 = vector.load %arg5[%c0_12, %c0_13] : memref<1x32xf32, #tpu.memory_space<vmem>>, vector<1x32xf32>
    %10 = vector.broadcast %9 : vector<1x32xf32> to vector<256x32xf32>
    %11 = arith.addf %8, %10 : vector<256x32xf32>
    %cst_14 = arith.constant 0.000000e+00 : f32
    %12 = vector.broadcast %cst_14 : f32 to vector<256x32xf32>
    %13 = arith.maximumf %11, %12 : vector<256x32xf32>
    %cst_15 = arith.constant 0.000000e+00 : f32
    %14 = vector.broadcast %cst_15 : f32 to vector<1x18x18x32xf32>
    %c0_16 = arith.constant 0 : index
    %c0_17 = arith.constant 0 : index
    %c0_18 = arith.constant 0 : index
    %c0_19 = arith.constant 0 : index
    %15 = vector.load %arg11[%c0_16, %c0_17, %c0_18, %c0_19] : memref<1x18x18x32xf32, #tpu.memory_space<vmem>>, vector<1x18x18x32xf32>
    tpu.vector_store %arg11[%c0_16, %c0_17, %c0_18, %c0_19], %14 {strides = array<i32>} : memref<1x18x18x32xf32, #tpu.memory_space<vmem>>, vector<1x18x18x32xf32>,
    %16 = vector.shape_cast %13 : vector<256x32xf32> to vector<1x16x16x32xf32>
    %c0_20 = arith.constant 0 : index
    %c1 = arith.constant 1 : index
    %c1_21 = arith.constant 1 : index
    %c0_22 = arith.constant 0 : index
    %17 = vector.load %arg11[%c0_20, %c1, %c1_21, %c0_22] : memref<1x18x18x32xf32, #tpu.memory_space<vmem>>, vector<1x16x16x32xf32>
    tpu.vector_store %arg11[%c0_20, %c1, %c1_21, %c0_22], %16 {strides = array<i32>} : memref<1x18x18x32xf32, #tpu.memory_space<vmem>>, vector<1x16x16x32xf32>,
    %c0_23 = arith.constant 0 : index
    %c0_24 = arith.constant 0 : index
    %c0_25 = arith.constant 0 : index
    %c0_26 = arith.constant 0 : index
    %18 = vector.load %arg11[%c0_23, %c0_24, %c0_25, %c0_26] : memref<1x18x18x32xf32, #tpu.memory_space<vmem>>, vector<1x18x16x32xf32>
    %c0_27 = arith.constant 0 : index
    %c0_28 = arith.constant 0 : index
    %c1_29 = arith.constant 1 : index
    %c0_30 = arith.constant 0 : index
    %19 = vector.load %arg11[%c0_27, %c0_28, %c1_29, %c0_30] : memref<1x18x18x32xf32, #tpu.memory_space<vmem>>, vector<1x18x16x32xf32>
    %c0_31 = arith.constant 0 : index
    %c0_32 = arith.constant 0 : index
    %c2 = arith.constant 2 : index
    %c0_33 = arith.constant 0 : index
    %20 = vector.load %arg11[%c0_31, %c0_32, %c2, %c0_33] : memref<1x18x18x32xf32, #tpu.memory_space<vmem>>, vector<1x18x16x32xf32>
    %21 = tpu.concatenate %18, %19, %20 in 3 : vector<1x18x16x32xf32>, vector<1x18x16x32xf32>, vector<1x18x16x32xf32> -> vector<1x18x16x96xf32>
    %22 = vector.extract_strided_slice %21 {offsets = [0, 0, 0, 0], sizes = [1, 16, 16, 96], strides = [1, 1, 1, 1]} : vector<1x18x16x96xf32> to vector<1x16x16x96xf32>
    %23 = vector.extract_strided_slice %21 {offsets = [0, 1, 0, 0], sizes = [1, 16, 16, 96], strides = [1, 1, 1, 1]} : vector<1x18x16x96xf32> to vector<1x16x16x96xf32>
    %24 = vector.extract_strided_slice %21 {offsets = [0, 2, 0, 0], sizes = [1, 16, 16, 96], strides = [1, 1, 1, 1]} : vector<1x18x16x96xf32> to vector<1x16x16x96xf32>
    %25 = tpu.concatenate %22, %23, %24 in 3 : vector<1x16x16x96xf32>, vector<1x16x16x96xf32>, vector<1x16x16x96xf32> -> vector<1x16x16x288xf32>
    %26 = vector.shape_cast %25 : vector<1x16x16x288xf32> to vector<256x288xf32>
    %c0_34 = arith.constant 0 : index
    %c0_35 = arith.constant 0 : index
    %27 = vector.load %arg6[%c0_34, %c0_35] : memref<288x32xf32, #tpu.memory_space<vmem>>, vector<288x32xf32>
    %cst_36 = arith.constant dense<0.000000e+00> : vector<256x32xf32>
    %28 = tpu.matmul %26, %27, %cst_36 {dimension_numbers = #tpu.dot_dimension_numbers<[1], [0], [0], [1], [0, 0, 1, 1], [], []>} : vector<256x288xf32>, vector<288x32xf32>, vector<256x32xf32> -> vector<256x32xf32>
    %c0_37 = arith.constant 0 : index
    %c0_38 = arith.constant 0 : index
    %29 = vector.load %arg7[%c0_37, %c0_38] : memref<1x32xf32, #tpu.memory_space<vmem>>, vector<1x32xf32>
    %30 = vector.broadcast %29 : vector<1x32xf32> to vector<256x32xf32>
    %31 = arith.addf %28, %30 : vector<256x32xf32>
    %cst_39 = arith.constant 0.000000e+00 : f32
    %32 = vector.broadcast %cst_39 : f32 to vector<256x32xf32>
    %33 = arith.maximumf %31, %32 : vector<256x32xf32>
    %34 = vector.shape_cast %33 : vector<256x32xf32> to vector<1x16x16x32xf32>
    %c0_40 = arith.constant 0 : index
    %c1_41 = arith.constant 1 : index
    %c1_42 = arith.constant 1 : index
    %c0_43 = arith.constant 0 : index
    %35 = vector.load %arg11[%c0_40, %c1_41, %c1_42, %c0_43] : memref<1x18x18x32xf32, #tpu.memory_space<vmem>>, vector<1x16x16x32xf32>
    tpu.vector_store %arg11[%c0_40, %c1_41, %c1_42, %c0_43], %34 {strides = array<i32>} : memref<1x18x18x32xf32, #tpu.memory_space<vmem>>, vector<1x16x16x32xf32>,
    %c0_44 = arith.constant 0 : index
    %c0_45 = arith.constant 0 : index
    %c0_46 = arith.constant 0 : index
    %c0_47 = arith.constant 0 : index
    %36 = vector.load %arg11[%c0_44, %c0_45, %c0_46, %c0_47] : memref<1x18x18x32xf32, #tpu.memory_space<vmem>>, vector<1x18x16x32xf32>
    %c0_48 = arith.constant 0 : index
    %c0_49 = arith.constant 0 : index
    %c1_50 = arith.constant 1 : index
    %c0_51 = arith.constant 0 : index
    %37 = vector.load %arg11[%c0_48, %c0_49, %c1_50, %c0_51] : memref<1x18x18x32xf32, #tpu.memory_space<vmem>>, vector<1x18x16x32xf32>
    %c0_52 = arith.constant 0 : index
    %c0_53 = arith.constant 0 : index
    %c2_54 = arith.constant 2 : index
    %c0_55 = arith.constant 0 : index
    %38 = vector.load %arg11[%c0_52, %c0_53, %c2_54, %c0_55] : memref<1x18x18x32xf32, #tpu.memory_space<vmem>>, vector<1x18x16x32xf32>
    %39 = tpu.concatenate %36, %37, %38 in 3 : vector<1x18x16x32xf32>, vector<1x18x16x32xf32>, vector<1x18x16x32xf32> -> vector<1x18x16x96xf32>
    %40 = vector.extract_strided_slice %39 {offsets = [0, 0, 0, 0], sizes = [1, 16, 16, 96], strides = [1, 1, 1, 1]} : vector<1x18x16x96xf32> to vector<1x16x16x96xf32>
    %41 = vector.extract_strided_slice %39 {offsets = [0, 1, 0, 0], sizes = [1, 16, 16, 96], strides = [1, 1, 1, 1]} : vector<1x18x16x96xf32> to vector<1x16x16x96xf32>
    %42 = vector.extract_strided_slice %39 {offsets = [0, 2, 0, 0], sizes = [1, 16, 16, 96], strides = [1, 1, 1, 1]} : vector<1x18x16x96xf32> to vector<1x16x16x96xf32>
    %43 = tpu.concatenate %40, %41, %42 in 3 : vector<1x16x16x96xf32>, vector<1x16x16x96xf32>, vector<1x16x16x96xf32> -> vector<1x16x16x288xf32>
    %44 = vector.shape_cast %43 : vector<1x16x16x288xf32> to vector<256x288xf32>
    %c0_56 = arith.constant 0 : index
    %c0_57 = arith.constant 0 : index
    %45 = vector.load %arg8[%c0_56, %c0_57] : memref<288x32xf32, #tpu.memory_space<vmem>>, vector<288x32xf32>
    %cst_58 = arith.constant dense<0.000000e+00> : vector<256x32xf32>
    %46 = tpu.matmul %44, %45, %cst_58 {dimension_numbers = #tpu.dot_dimension_numbers<[1], [0], [0], [1], [0, 0, 1, 1], [], []>} : vector<256x288xf32>, vector<288x32xf32>, vector<256x32xf32> -> vector<256x32xf32>
    %c0_59 = arith.constant 0 : index
    %c0_60 = arith.constant 0 : index
    %47 = vector.load %arg9[%c0_59, %c0_60] : memref<1x32xf32, #tpu.memory_space<vmem>>, vector<1x32xf32>
    %48 = vector.broadcast %47 : vector<1x32xf32> to vector<256x32xf32>
    %49 = arith.addf %46, %48 : vector<256x32xf32>
    %50 = arith.addf %49, %13 : vector<256x32xf32>
    %cst_61 = arith.constant 0.000000e+00 : f32
    %51 = vector.broadcast %cst_61 : f32 to vector<256x32xf32>
    %52 = arith.maximumf %50, %51 : vector<256x32xf32>
    %53 = vector.shape_cast %52 : vector<256x32xf32> to vector<1x16x16x32xf32>
    %c0_62 = arith.constant 0 : index
    %c0_63 = arith.constant 0 : index
    %c0_64 = arith.constant 0 : index
    %c0_65 = arith.constant 0 : index
    %54 = vector.load %arg10[%c0_62, %c0_63, %c0_64, %c0_65] : memref<1x16x16x32xf32, #tpu.memory_space<vmem>>, vector<1x16x16x32xf32>
    tpu.vector_store %arg10[%c0_62, %c0_63, %c0_64, %c0_65], %53 {strides = array<i32>} : memref<1x16x16x32xf32, #tpu.memory_space<vmem>>, vector<1x16x16x32xf32>,
    return
  }
  func.func @transform_0(%arg0: i32) -> (i32, i32, i32, i32) {
    %c0_i32 = arith.constant 0 : i32
    %c0_i32_0 = arith.constant 0 : i32
    %c0_i32_1 = arith.constant 0 : i32
    %c0_i32_2 = arith.constant 0 : i32
    return %arg0, %c0_i32, %c0_i32_0, %c0_i32_1 : i32, i32, i32, i32
  }
  func.func @transform_1(%arg0: i32) -> (i32, i32, i32, i32) {
    %c0_i32 = arith.constant 0 : i32
    %c0_i32_0 = arith.constant 0 : i32
    %c0_i32_1 = arith.constant 0 : i32
    %c0_i32_2 = arith.constant 0 : i32
    return %arg0, %c0_i32, %c0_i32_0, %c0_i32_1 : i32, i32, i32, i32
  }
  func.func @transform_2(%arg0: i32) -> (i32, i32) {
    %c0_i32 = arith.constant 0 : i32
    %c0_i32_0 = arith.constant 0 : i32
    %c0_i32_1 = arith.constant 0 : i32
    return %c0_i32, %c0_i32_0 : i32, i32
  }
  func.func @transform_3(%arg0: i32) -> (i32, i32) {
    %c0_i32 = arith.constant 0 : i32
    %c0_i32_0 = arith.constant 0 : i32
    %c0_i32_1 = arith.constant 0 : i32
    return %c0_i32, %c0_i32_0 : i32, i32
  }
  func.func @transform_4(%arg0: i32) -> (i32, i32) {
    %c0_i32 = arith.constant 0 : i32
    %c0_i32_0 = arith.constant 0 : i32
    %c0_i32_1 = arith.constant 0 : i32
    return %c0_i32, %c0_i32_0 : i32, i32
  }
  func.func @transform_5(%arg0: i32) -> (i32, i32) {
    %c0_i32 = arith.constant 0 : i32
    %c0_i32_0 = arith.constant 0 : i32
    %c0_i32_1 = arith.constant 0 : i32
    return %c0_i32, %c0_i32_0 : i32, i32
  }
  func.func @transform_6(%arg0: i32) -> (i32, i32) {
    %c0_i32 = arith.constant 0 : i32
    %c0_i32_0 = arith.constant 0 : i32
    %c0_i32_1 = arith.constant 0 : i32
    return %c0_i32, %c0_i32_0 : i32, i32
  }
  func.func @transform_7(%arg0: i32) -> (i32, i32) {
    %c0_i32 = arith.constant 0 : i32
    %c0_i32_0 = arith.constant 0 : i32
    %c0_i32_1 = arith.constant 0 : i32
    return %c0_i32, %c0_i32_0 : i32, i32
  }
  func.func @transform_8(%arg0: i32) -> (i32, i32) {
    %c0_i32 = arith.constant 0 : i32
    %c0_i32_0 = arith.constant 0 : i32
    %c0_i32_1 = arith.constant 0 : i32
    return %c0_i32, %c0_i32_0 : i32, i32
  }
  func.func @transform_9(%arg0: i32) -> (i32, i32, i32, i32) {
    %c0_i32 = arith.constant 0 : i32
    %c0_i32_0 = arith.constant 0 : i32
    %c0_i32_1 = arith.constant 0 : i32
    %c0_i32_2 = arith.constant 0 : i32
    return %arg0, %c0_i32, %c0_i32_0, %c0_i32_1 : i32, i32, i32, i32
  }
}

</mosaic_0001>

<bundles_post_ra>
// kernel: tpu_custom_call.1
= control target key start
LH: loop header
LB: loop body
LE: loop exit
PB: predicated region body
PF: predicated region fallthrough
CT: control target
= control target key end

     0   :  { %14 = vsyncpa [#allocation4], 0  ;;  %s7246_s0 = inlined_call_operand.vmem [shape: f32[2,16,16,32], index: 0, kind: input, shape index: {}]   ;;  %s7247_s1 = inlined_call_operand.hbm [shape: f32[2,16,16,32], index: 1, kind: input, shape index: {}]   ;;  %s7248_s2 = inlined_call_operand.vmem [shape: f32[32,32], index: 2, kind: input, shape index: {}]   ;;  %s7249_s3 = inlined_call_operand.vmem [shape: f32[32,32], index: 3, kind: input, shape index: {}]   ;;  %s7250_s4 = inlined_call_operand.vmem [shape: f32[1,32], index: 4, kind: input, shape index: {}]   ;;  %s7251_s5 = inlined_call_operand.vmem [shape: f32[288,32], index: 5, kind: input, shape index: {}]   ;;  %s7252_s6 = inlined_call_operand.vmem [shape: f32[1,32], index: 6, kind: input, shape index: {}]   ;;  %s7253_s7 = inlined_call_operand.vmem [shape: f32[288,32], index: 7, kind: input, shape index: {}]   ;;  %s7254_s8 = inlined_call_operand.vmem [shape: f32[1,32], index: 8, kind: input, shape index: {}]   ;;  %s7255_s9 = inlined_call_operand.hbm [shape: f32[2,16,16,32], index: 9, kind: output, shape index: {}]  }
   0x1   :  { %16 = vsyncpa [#allocation4 + $0x1], 0 }
   0x2   :  { %17 = vsyncpa [#allocation5], 0 }
   0x3   :  { %19 = vsyncpa [#allocation5 + $0x1], 0  ;;  %s5180_s30 = smov 0   ;;  %s5182_s10 = smov 0  }
   0x4   :  { %s5184_s11 = smov 0   ;;  %s5186_s12 = smov 0  }
   0x5 LB: > { %s5201_s13 = sadd.s32 4294967295, %s5117_s12   ;;  %s4136_s14 = sadd.s32 4294967294, %s5117_s12   ;;  %s5117_s12 = sphi %s5186_s12, %s7382_s12   ;;  %s5113_s11 = sphi %s5184_s11, %s7381_s11   ;;  %s5109_s10 = sphi %s5182_s10, %s7380_s10   ;;  %s5105_s30 = sphi %s5180_s30, %s7379_s30  }
   0x6   : > { %s5205_s15 = sadd.s32 1, %s5117_s12   ;;  %s58_s16 = sadd.s32 1, %s5113_s11 }
   0x7   : > { %s55_s17 = ssub.s32 %s5117_s12, %s5205_s15  ;;  %p65_p0 = scmp.ne.s32.totalorder %s5113_s11, %s5109_s10 }
   0x8   : > { %p56_p1 = scmp.eq.s32.totalorder %s55_s17, 0  ;;  %p66_p2 = scmp.eq.s32.totalorder %s5117_s12, 0 }
   0x9   : > { %p71_p3 = scmp.ne.s32.totalorder %s5109_s10, %s5105_s30  ;;  %p72_p4 = scmp.eq.s32.totalorder %s5201_s13, 0 }
   0xa   : > { %s5217_s18 = scalar_select %p56_p1, %s5113_s11, %s58_s16  }
   0xb   : > { %p5219_p5 = por %p66_p2, %p65_p0  ;;  %p5223_p6 = por %p72_p4, %p71_p3 }
   0xc   : > { %p242_p7 = scmp.eq.s32.totalorder %s5201_s13, 1  ;;  %p248_p8 = scmp.eq.s32.totalorder %s4136_s14, 1 }
   0xd   : > { %p4858_p10 = scmp.lt.s32.totalorder %s5117_s12, 2  ;;  %s297_s23 = sand.u32 1, %s5113_s11  }
   0xe   : > { %p5230_p11 = por %p242_p7, %p65_p0  ;;  %p5234_p12 = por %p248_p8, %p71_p3 }
   0xf   : > { %s4283_s24 = sshll.u32 %s5117_s12, 12  ;;  %s4139_s25 = sshll.u32 %s297_s23, 8 }
  0x10   : > { %s7309_s21 = scalar_select %p5230_p11, 1, 0 }
  0x11   : > { %s7310_s22 = scalar_select %p5234_p12, 1, 0 }
  0x12   : > { %s5243_s28 = scalar_lea.hbm %s7247_s1, %s4283_s24  ;;  %s301_s29 = scalar_lea.vmem [#allocation3], %s4139_s25 }
  0x13   : > { %s308_s14 = sshll.u32 %s301_s29, 4  ;;  %p5247_p13 = pnand %p4858_p10, %p5219_p5  ;;  %s5251_s14 = int_to_ptr.vmem [resolvable:$true] %s308_s14 }
  0x14   : > { %s5253_s17 = scalar_lea.sflag [#allocation4], %s297_s23  ;;  %s5021_s26 = scalar_lea.hbm %s5243_s28, 4096 }
  0x15   : > { %p5022_p0 = scmp.ne.s32.totalorder %s5243_s28, %s5021_s26  ;;  %p5023_p1 = pneg %p5247_p13 }
  0x16   : > { %s5026_s25 = scalar_lea.hbm %s7247_s1, 8192  ;;  %p5027_p4 = scmp.lt.u32.totalorder %s5243_s28, %s7247_s1 }
  0x17   : > { %p5024_p2 = pnand %p5023_p1, %p5022_p0  ;;  %p5028_p5 = scmp.lt.u32.totalorder %s5026_s25, %s5021_s26 }
  0x18   : > { %p5030_p8 = scmp.lt.u32.totalorder %s5021_s26, %s5243_s28 }
  0x19   : > { %p5025_p3 = pneg %p5024_p2  ;;  %p5029_p7 = por %p5028_p5, %p5027_p4 }
  0x1b   : > { %p5031_p10 = por %p5030_p8, %p5029_p7 }
  0x1d   : > { %p5032_p9 = pnand %p5031_p10, %p5025_p3 }
  0x1f   : > { %5035 = shalt.err (!%p5032_p9)
}
  0x20   : > { %s5036_s23 = scalar_lea.vmem %s5251_s14, 4096  ;;  %s5119_s24 = smov [#allocation3]  }
  0x21   : > { %p5037_p0 = scmp.ne.s32.totalorder %s5251_s14, %s5036_s23  ;;  %s5041_s19 = sshll.u32 %s5119_s24, 4  ;;  %s5042_s19 = int_to_ptr.vmem [resolvable:$false] %s5041_s19 }
  0x22   : > { %s5043_s27 = scalar_lea.vmem %s5042_s19, 8192  ;;  %p5044_p11 = scmp.lt.s32.totalorder %s5251_s14, %s5042_s19 }
  0x23   : > { %p5039_p2 = pnand %p5037_p0, %p5023_p1  ;;  %p5045_p4 = scmp.lt.s32.totalorder %s5043_s27, %s5036_s23 }
  0x25   : > { %p5040_p12 = pneg %p5039_p2  ;;  %p5046_p5 = por %p5045_p4, %p5044_p11 }
  0x27   : > { %p5047_p7 = pnand %p5046_p5, %p5040_p12 }
  0x29   : > { %5050 = shalt.err (!%p5047_p7)
}
  0x2a   : > { %s5120_s26 = smov 128   ;;  %s5121_s25 = smov 8  }
  0x2b   : > { %4853 = dma.hbm_to_vmem [thread:$0]  (!%p5247_p13), %s5243_s28, 4096, %s5251_s14, %s5253_s17, %s5120_s26, %s5120_s26, %s5121_s25  }
  0x2c   : > { %p4142_p9 = scmp.ge.s32.totalorder %s5117_s12, 1  ;;  %p316_p1 = scmp.lt.s32.totalorder %s5117_s12, 3 }
  0x2e   : > { %p317_p3 = pnand %p4142_p9, %p316_p1 }
  0x30   : > { %320 = sbr.rel (%p317_p3) target bundleno = 1539 (0x603), region = 56 }
  0x37   : > { %s5284_s29 = sand.u32 1, %s5109_s10  }
  0x38   : > { %s7257_s23 = sshll.u32 %s5284_s29, 8  ;;  %s323_s24 = scalar_lea.sflag [#allocation4], %s5284_s29 }
  0x39   : > { %s5290_s19 = scalar_lea.vmem [#allocation3], %s7257_s23 }
  0x3a   : > { %5096 = dma.done.wait (%p5223_p6), %s323_s24, 4096  }
  0x3b   : > { %5098 = vsyncadd (%p5223_p6), %s323_s24, 4294963200  ;;  %vm443_vm0 = vcmask 261120   ;;  %v439_v0 = vld [vmem:[%s7249_s3] sm:$0xff]  ;;  %v440_v1 = vld [vmem:[%s7249_s3 + $0x8] sm:$0xff]  ;;  %p366_p6 = scmp.lt.s32.totalorder %s5201_s13, 1  ;;  %vm1159_vm1 = vcmask 254976  }
  0x3c   : > { %v441_v2 = vld [vmem:[%s7249_s3 + $0x10] sm:$0xff]  ;;  %v4654_v3 = vpack.c.bf16 %v440_v1, %v439_v0  ;;  %v442_v4 = vld [vmem:[%s7249_s3 + $0x18] sm:$0xff]  ;;  %v435_v7 = vld [vmem:[%s7248_s2] sm:$0xff]  ;;  %s5124_s14 = smov 64   ;;  %vm1677_vm2 = vcmask 523264   ;;  %s5126_s27 = smov 96  }
  0x3d   : > { %v403_v5 = vld [vmem:[%s5290_s19] sm:$0xff]  ;;  %v4658_v6 = vpack.c.bf16 %v442_v4, %v441_v2  ;;  %v436_v8 = vld [vmem:[%s7248_s2 + $0x8] sm:$0xff]  ;;  %v404_v10 = vld [vmem:[%s5290_s19 + $0x8] sm:$0xff]  ;;  %s367_s26 = scalar_select %p366_p6, %s5201_s13, 1  ;;  %vm1940_vm3 = vcmask 785408  }
  0x3e   : > { %4438 = vmatprep.mubr.msk.f32.mxu0 %vm443_vm0, %v403_v5  ;;  %4655 = vmatprep.subr.bf16.mxu0 %v4654_v3  ;;  %v4662_v9 = vpack.c.bf16 %v436_v8, %v435_v7  ;;  %v437_v11 = vld [vmem:[%s7248_s2 + $0x10] sm:$0xff]  ;;  %v438_v12 = vld [vmem:[%s7248_s2 + $0x18] sm:$0xff]  ;;  %v405_v13 = vld [vmem:[%s5290_s19 + $0x10] sm:$0xff]  ;;  %s4285_s24 = sshll.u32 %s5201_s13, 12  ;;  %s4038_s13 = scalar_lea.sflag [#allocation5], %s5284_s29 }
  0x3f   : > { %4657 = vmatpush3.bf16.msra.mxu0 %v4654_v3  ;;  %v4666_v14 = vpack.c.bf16 %v438_v12, %v437_v11  ;;  %v406_v15 = vld [vmem:[%s5290_s19 + $0x18] sm:$0xff]  ;;  %v407_v16 = vld [vmem:[%s5290_s19 + $0x20] sm:$0xff]  ;;  %v408_v17 = vld [vmem:[%s5290_s19 + $0x28] sm:$0xff]  ;;  %s4284_s25 = sshll.u32 %s367_s26, 8  ;;  %v5122_v12 = vmov 0.0   ;;  %s7198_s17 = scalar_lea.hbm %s7255_s9, %s4285_s24 }
  0x40   : > { %4659 = vmatprep.subr.bf16.mxu0 %v4658_v6  ;;  %v409_v18 = vld [vmem:[%s5290_s19 + $0x30] sm:$0xff]  ;;  %v410_v19 = vld [vmem:[%s5290_s19 + $0x38] sm:$0xff]  ;;  %v411_v20 = vld [vmem:[%s5290_s19 + $0x40] sm:$0xff]  ;;  %s5385_s28 = scalar_lea.vmem %s7246_s0, %s4284_s25  ;;  %1162 = vst.msk [vmem:[#allocation2 + $0x20] sm:$0xff] %vm443_vm0, %v5122_v12  ;;  %p7376_p12 = scmp.ne.s32.totalorder %s7309_s21, 0 }
  0x41   : > { %v412_v21 = vld [vmem:[%s5290_s19 + $0x48] sm:$0xff]  ;;  %v413_v22 = vld [vmem:[%s5290_s19 + $0x50] sm:$0xff]  ;;  %v414_v23 = vld [vmem:[%s5290_s19 + $0x58] sm:$0xff]  ;;  %1163 = vst.msk [vmem:[#allocation2 + $0x28] sm:$0x3] %vm1159_vm1, %v5122_v12  ;;  %s5127_s25 = smov [#allocation6]  }
  0x42   : > { %v415_v24 = vld [vmem:[%s5290_s19 + $0x60] sm:$0xff]  ;;  %v416_v25 = vld [vmem:[%s5290_s19 + $0x68] sm:$0xff]  ;;  %v417_v26 = vld [vmem:[%s5290_s19 + $0x70] sm:$0xff]  ;;  %1157 = vst.msk [vmem:[#allocation2] sm:$0xff] %vm443_vm0, %v5122_v12 }
  0x43   : > { %4661 = vmatpush3.bf16.msra.mxu0 %v4658_v6  ;;  %v418_v27 = vld [vmem:[%s5290_s19 + $0x78] sm:$0xff]  ;;  %v419_v28 = vld [vmem:[%s5290_s19 + $0x80] sm:$0xff]  ;;  %v420_v29 = vld [vmem:[%s5290_s19 + $0x88] sm:$0xff]  ;;  %1158 = vst.msk [vmem:[#allocation2 + $0x8] sm:$0xff] %vm443_vm0, %v5122_v12 }
  0x44   : > { %4663 = vmatprep.subr.bf16.mxu0 %v4662_v9  ;;  %v421_v30 = vld [vmem:[%s5290_s19 + $0x90] sm:$0xff]  ;;  %v422_v31 = vld [vmem:[%s5290_s19 + $0x98] sm:$0xff]  ;;  %v423_v32 = vld [vmem:[%s5290_s19 + $0xa0] sm:$0xff]  ;;  %1160 = vst.msk [vmem:[#allocation2 + $0x10] sm:$0x3] %vm1159_vm1, %v5122_v12 }
  0x45   : > { %v424_v33 = vld [vmem:[%s5290_s19 + $0xa8] sm:$0xff]  ;;  %v425_v34 = vld [vmem:[%s5290_s19 + $0xb0] sm:$0xff]  ;;  %v426_v35 = vld [vmem:[%s5290_s19 + $0xb8] sm:$0xff]  ;;  %1161 = vst.msk [vmem:[#allocation2 + $0x18] sm:$0xff] %vm443_vm0, %v5122_v12 }
  0x46   : > { %4439 = vmatmul.mubr.msk.f32.vlgmr.msra.gmra.mrb[0].mxu0 %vm443_vm0, %v404_v10  ;;  %v427_v36 = vld [vmem:[%s5290_s19 + $0xc0] sm:$0xff]  ;;  %v428_v37 = vld [vmem:[%s5290_s19 + $0xc8] sm:$0xff]  ;;  %v429_v38 = vld [vmem:[%s5290_s19 + $0xd0] sm:$0xff]  ;;  %1164 = vst.msk [vmem:[#allocation2 + $0x30] sm:$0xff] %vm443_vm0, %v5122_v12 }
  0x47   : > { %4665 = vmatpush3.bf16.msra.mxu0 %v4662_v9  ;;  %4441 = vmatprep.mubr.msk.f32.mxu0 %vm443_vm0, %v405_v13  ;;  %v430_v39 = vld [vmem:[%s5290_s19 + $0xd8] sm:$0xff]  ;;  %v431_v40 = vld [vmem:[%s5290_s19 + $0xe0] sm:$0xff]  ;;  %v432_v41 = vld [vmem:[%s5290_s19 + $0xe8] sm:$0xff]  ;;  %1165 = vst.msk [vmem:[#allocation2 + $0x38] sm:$0xff] %vm443_vm0, %v5122_v12 }
  0x48   : > { %4667 = vmatprep.subr.bf16.mxu0 %v4666_v14  ;;  %v433_v42 = vld [vmem:[%s5290_s19 + $0xf0] sm:$0xff]  ;;  %v434_v43 = vld [vmem:[%s5290_s19 + $0xf8] sm:$0xff]  ;;  %v373_v46 = vld [vmem:[%s5385_s28 + $0x10] sm:$0xff]  ;;  %1166 = vst.msk [vmem:[#allocation2 + $0x40] sm:$0x3] %vm1159_vm1, %v5122_v12  ;;  %s5123_s19 = smov 32  }
  0x49   : > { %v371_v44 = vld [vmem:[%s5385_s28] sm:$0xff]  ;;  %v372_v45 = vld [vmem:[%s5385_s28 + $0x8] sm:$0xff]  ;;  %v374_v47 = vld [vmem:[%s5385_s28 + $0x18] sm:$0xff]  ;;  %1167 = vst.msk [vmem:[#allocation2 + $0x48] sm:$0xff] %vm443_vm0, %v5122_v12 }
  0x4a   : > { %4442 = vmatmul.mubr.msk.f32.gmra.mrb[2].mxu0 %vm443_vm0, %v406_v15  ;;  %v375_v48 = vld [vmem:[%s5385_s28 + $0x20] sm:$0xff]  ;;  %v376_v49 = vld [vmem:[%s5385_s28 + $0x28] sm:$0xff]  ;;  %v377_v50 = vld [vmem:[%s5385_s28 + $0x30] sm:$0xff]  ;;  %1168 = vst.msk [vmem:[#allocation2 + $0x50] sm:$0xff] %vm443_vm0, %v5122_v12 }
  0x4b   : > { %4444 = vmatprep.mubr.msk.f32.mxu0 %vm443_vm0, %v407_v16  ;;  %4669 = vmatpush3.bf16.msra.mxu0 %v4666_v14  ;;  %v378_v51 = vld [vmem:[%s5385_s28 + $0x38] sm:$0xff]  ;;  %v379_v52 = vld [vmem:[%s5385_s28 + $0x40] sm:$0xff]  ;;  %v380_v53 = vld [vmem:[%s5385_s28 + $0x48] sm:$0xff]  ;;  %1169 = vst.msk [vmem:[#allocation2 + $0x58] sm:$0x3] %vm1159_vm1, %v5122_v12 }
  0x4c   : > { %v381_v54 = vld [vmem:[%s5385_s28 + $0x50] sm:$0xff]  ;;  %v382_v55 = vld [vmem:[%s5385_s28 + $0x58] sm:$0xff]  ;;  %v383_v56 = vld [vmem:[%s5385_s28 + $0x60] sm:$0xff]  ;;  %1170 = vst.msk [vmem:[#allocation2 + $0x60] sm:$0xff] %vm443_vm0, %v5122_v12 }
  0x4d   : > { %v384_v57 = vld [vmem:[%s5385_s28 + $0x68] sm:$0xff]  ;;  %v385_v58 = vld [vmem:[%s5385_s28 + $0x70] sm:$0xff]  ;;  %v386_v59 = vld [vmem:[%s5385_s28 + $0x78] sm:$0xff]  ;;  %1171 = vst.msk [vmem:[#allocation2 + $0x68] sm:$0xff] %vm443_vm0, %v5122_v12 }
  0x4e   : > { %4445 = vmatmul.mubr.msk.f32.gmra.mrb[4].mxu0 %vm443_vm0, %v408_v17  ;;  %v387_v60 = vld [vmem:[%s5385_s28 + $0x80] sm:$0xff]  ;;  %v388_v61 = vld [vmem:[%s5385_s28 + $0x88] sm:$0xff]  ;;  %v389_v62 = vld [vmem:[%s5385_s28 + $0x90] sm:$0xff]  ;;  %1172 = vst.msk [vmem:[#allocation2 + $0x70] sm:$0x3] %vm1159_vm1, %v5122_v12 }
  0x4f   : > { %4447 = vmatprep.mubr.msk.f32.mxu0 %vm443_vm0, %v409_v18  ;;  %v390_v63 = vld [vmem:[%s5385_s28 + $0x98] sm:$0xff]  ;;  %v391_v0 = vld [vmem:[%s5385_s28 + $0xa0] sm:$0xff]  ;;  %v392_v1 = vld [vmem:[%s5385_s28 + $0xa8] sm:$0xff]  ;;  %1173 = vst.msk [vmem:[#allocation2 + $0x78] sm:$0xff] %vm443_vm0, %v5122_v12 }
  0x50   : > { %v393_v2 = vld [vmem:[%s5385_s28 + $0xb0] sm:$0xff]  ;;  %v394_v3 = vld [vmem:[%s5385_s28 + $0xb8] sm:$0xff]  ;;  %v395_v4 = vld [vmem:[%s5385_s28 + $0xc0] sm:$0xff]  ;;  %1174 = vst.msk [vmem:[#allocation2 + $0x80] sm:$0xff] %vm443_vm0, %v5122_v12 }
  0x51   : > { %v396_v5 = vld [vmem:[%s5385_s28 + $0xc8] sm:$0xff]  ;;  %v397_v6 = vld [vmem:[%s5385_s28 + $0xd0] sm:$0xff]  ;;  %v398_v7 = vld [vmem:[%s5385_s28 + $0xd8] sm:$0xff]  ;;  %1175 = vst.msk [vmem:[#allocation2 + $0x88] sm:$0x3] %vm1159_vm1, %v5122_v12 }
  0x52   : > { %4448 = vmatmul.mubr.msk.f32.gmra.mrb[6].mxu0 %vm443_vm0, %v410_v19  ;;  %v399_v8 = vld [vmem:[%s5385_s28 + $0xe0] sm:$0xff]  ;;  %v400_v9 = vld [vmem:[%s5385_s28 + $0xe8] sm:$0xff]  ;;  %v401_v10 = vld [vmem:[%s5385_s28 + $0xf0] sm:$0xff]  ;;  %1176 = vst.msk [vmem:[#allocation2 + $0x90] sm:$0xff] %vm443_vm0, %v5122_v12 }
  0x53   : > { %4450 = vmatprep.mubr.msk.f32.mxu0 %vm443_vm0, %v411_v20  ;;  %v402_v11 = vld [vmem:[%s5385_s28 + $0xf8] sm:$0xff]  ;;  %1177 = vst.msk [vmem:[#allocation2 + $0x98] sm:$0xff] %vm443_vm0, %v5122_v12  ;;  %1179 = vst.msk [vmem:[#allocation2 + $0xa8] sm:$0xff] %vm443_vm0, %v5122_v12  ;;  %v1281_v13 = vld [vmem:[#allocation2 + $0x1] sm:$0xff] }
  0x54   : > { %1178 = vst.msk [vmem:[#allocation2 + $0xa0] sm:$0x3] %vm1159_vm1, %v5122_v12  ;;  %1181 = vst.msk [vmem:[#allocation2 + $0xb8] sm:$0x3] %vm1159_vm1, %v5122_v12  ;;  %v1282_v14 = vld [vmem:[#allocation2 + $0x9] sm:$0xff] }
  0x55   : > { %1180 = vst.msk [vmem:[#allocation2 + $0xb0] sm:$0xff] %vm443_vm0, %v5122_v12  ;;  %1182 = vst.msk [vmem:[#allocation2 + $0xc0] sm:$0xff] %vm443_vm0, %v5122_v12  ;;  %v4901_v15 = vpack.i.bf16 %v1282_v14, %v1281_v13  ;;  %v1317_v16 = vld [vmem:[#allocation2 + $0x2] sm:$0xff]  ;;  %v1318_v17 = vld [vmem:[#allocation2 + $0xa] sm:$0xff] }
  0x56   : > { %4451 = vmatmul.mubr.msk.f32.gmra.mrb[8].mxu0 %vm443_vm0, %v412_v21  ;;  %1183 = vst.msk [vmem:[#allocation2 + $0xc8] sm:$0xff] %vm443_vm0, %v5122_v12  ;;  %1185 = vst.msk [vmem:[#allocation2 + $0xd8] sm:$0xff] %vm443_vm0, %v5122_v12  ;;  %v4906_v18 = vpack.i.bf16 %v1318_v17, %v1317_v16  ;;  %v5514_v19 = vld [vmem:[%s7250_s4] ss:$0 sm:$0xff] }
  0x57   : > { %4453 = vmatprep.mubr.msk.f32.mxu0 %vm443_vm0, %v413_v22  ;;  %1184 = vst.msk [vmem:[#allocation2 + $0xd0] sm:$0x3] %vm1159_vm1, %v5122_v12  ;;  %1187 = vst.msk [vmem:[#allocation2 + $0xe8] sm:$0x3] %vm1159_vm1, %v5122_v12  ;;  %4902 = vrot.lane.b32.xlu0 %v4901_v15, %s5123_s19 }
  0x58   : > { %1186 = vst.msk [vmem:[#allocation2 + $0xe0] sm:$0xff] %vm443_vm0, %v5122_v12  ;;  %1188 = vst.msk [vmem:[#allocation2 + $0xf0] sm:$0xff] %vm443_vm0, %v5122_v12 }
  0x59   : > { %1189 = vst.msk [vmem:[#allocation2 + $0xf8] sm:$0xff] %vm443_vm0, %v5122_v12  ;;  %1191 = vst.msk [vmem:[#allocation2 + $0x108] sm:$0xff] %vm443_vm0, %v5122_v12 }
  0x5a   : > { %4454 = vmatmul.mubr.msk.f32.gmra.mrb[10].mxu0 %vm443_vm0, %v414_v23  ;;  %1190 = vst.msk [vmem:[#allocation2 + $0x100] sm:$0x3] %vm1159_vm1, %v5122_v12  ;;  %1193 = vst.msk [vmem:[#allocation2 + $0x118] sm:$0x3] %vm1159_vm1, %v5122_v12 }
  0x5b   : > { %4456 = vmatprep.mubr.msk.f32.mxu0 %vm443_vm0, %v415_v24  ;;  %1192 = vst.msk [vmem:[#allocation2 + $0x110] sm:$0xff] %vm443_vm0, %v5122_v12  ;;  %1194 = vst.msk [vmem:[#allocation2 + $0x120] sm:$0xff] %vm443_vm0, %v5122_v12  ;;  %4907 = vrot.lane.b32.xlu0 %v4906_v18, %s5124_s14 }
  0x5c   : > { %1195 = vst.msk [vmem:[#allocation2 + $0x128] sm:$0xff] %vm443_vm0, %v5122_v12  ;;  %1197 = vst.msk [vmem:[#allocation2 + $0x138] sm:$0xff] %vm443_vm0, %v5122_v12 }
  0x5d   : > { %1196 = vst.msk [vmem:[#allocation2 + $0x130] sm:$0x3] %vm1159_vm1, %v5122_v12  ;;  %1199 = vst.msk [vmem:[#allocation2 + $0x148] sm:$0x3] %vm1159_vm1, %v5122_v12 }
  0x5e   : > { %4457 = vmatmul.mubr.msk.f32.gmra.mrb[12].mxu0 %vm443_vm0, %v416_v25  ;;  %1198 = vst.msk [vmem:[#allocation2 + $0x140] sm:$0xff] %vm443_vm0, %v5122_v12  ;;  %1200 = vst.msk [vmem:[#allocation2 + $0x150] sm:$0xff] %vm443_vm0, %v5122_v12 }
  0x5f   : > { %4459 = vmatprep.mubr.msk.f32.mxu0 %vm443_vm0, %v417_v26  ;;  %1201 = vst.msk [vmem:[#allocation2 + $0x158] sm:$0xff] %vm443_vm0, %v5122_v12  ;;  %1203 = vst.msk [vmem:[#allocation2 + $0x168] sm:$0xff] %vm443_vm0, %v5122_v12 }
  0x60   : > { %1202 = vst.msk [vmem:[#allocation2 + $0x160] sm:$0x3] %vm1159_vm1, %v5122_v12  ;;  %1205 = vst.msk [vmem:[#allocation2 + $0x178] sm:$0x3] %vm1159_vm1, %v5122_v12 }
  0x61   : > { %1204 = vst.msk [vmem:[#allocation2 + $0x170] sm:$0xff] %vm443_vm0, %v5122_v12  ;;  %1206 = vst.msk [vmem:[#allocation2 + $0x180] sm:$0xff] %vm443_vm0, %v5122_v12 }
  0x62   : > { %4460 = vmatmul.mubr.msk.f32.gmra.mrb[14].mxu0 %vm443_vm0, %v418_v27  ;;  %1207 = vst.msk [vmem:[#allocation2 + $0x188] sm:$0xff] %vm443_vm0, %v5122_v12  ;;  %1209 = vst.msk [vmem:[#allocation2 + $0x198] sm:$0xff] %vm443_vm0, %v5122_v12 }
  0x63   : > { %4462 = vmatprep.mubr.msk.f32.mxu0 %vm443_vm0, %v419_v28  ;;  %1208 = vst.msk [vmem:[#allocation2 + $0x190] sm:$0x3] %vm1159_vm1, %v5122_v12  ;;  %1211 = vst.msk [vmem:[#allocation2 + $0x1a8] sm:$0x3] %vm1159_vm1, %v5122_v12 }
  0x64   : > { %1210 = vst.msk [vmem:[#allocation2 + $0x1a0] sm:$0xff] %vm443_vm0, %v5122_v12 }
  0x66   : > { %4463 = vmatmul.mubr.msk.f32.gmra.mrb[16].mxu0 %vm443_vm0, %v420_v29 }
  0x67   : > { %4465 = vmatprep.mubr.msk.f32.mxu0 %vm443_vm0, %v421_v30 }
  0x6a   : > { %4466 = vmatmul.mubr.msk.f32.gmra.mrb[18].mxu0 %vm443_vm0, %v422_v31 }
  0x6b   : > { %4468 = vmatprep.mubr.msk.f32.mxu0 %vm443_vm0, %v423_v32 }
  0x6e   : > { %4469 = vmatmul.mubr.msk.f32.gmra.mrb[20].mxu0 %vm443_vm0, %v424_v33 }
  0x6f   : > { %4471 = vmatprep.mubr.msk.f32.mxu0 %vm443_vm0, %v425_v34 }
  0x72   : > { %4472 = vmatmul.mubr.msk.f32.gmra.mrb[22].mxu0 %vm443_vm0, %v426_v35 }
  0x73   : > { %4474 = vmatprep.mubr.msk.f32.mxu0 %vm443_vm0, %v427_v36 }
  0x76   : > { %4475 = vmatmul.mubr.msk.f32.gmra.mrb[24].mxu0 %vm443_vm0, %v428_v37 }
  0x77   : > { %4477 = vmatprep.mubr.msk.f32.mxu0 %vm443_vm0, %v429_v38 }
  0x7a   : > { %4478 = vmatmul.mubr.msk.f32.gmra.mrb[26].mxu0 %vm443_vm0, %v430_v39 }
  0x7b   : > { %4480 = vmatprep.mubr.msk.f32.mxu0 %vm443_vm0, %v431_v40 }
  0x7e   : > { %4481 = vmatmul.mubr.msk.f32.gmra.mrb[28].mxu0 %vm443_vm0, %v432_v41 }
  0x7f   : > { %4483 = vmatprep.mubr.msk.f32.mxu0 %vm443_vm0, %v433_v42 }
  0x82   : > { %4484 = vmatmul.mubr.msk.f32.gmra.mrb[30].mxu0 %vm443_vm0, %v434_v43 }
  0x83   : > { %4494 = vmatprep.mubr.msk.f32.mxu0 %vm443_vm0, %v371_v44 }
  0x86   : > { %4495 = vmatmul.mubr.msk.f32.vlgmr.msra.gmra.mrb[0].mxu0 %vm443_vm0, %v372_v45 }
  0x87   : > { %4497 = vmatprep.mubr.msk.f32.mxu0 %vm443_vm0, %v373_v46 }
  0x8a   : > { %4498 = vmatmul.mubr.msk.f32.gmra.mrb[2].mxu0 %vm443_vm0, %v374_v47 }
  0x8b   : > { %4500 = vmatprep.mubr.msk.f32.mxu0 %vm443_vm0, %v375_v48 }
  0x8e   : > { %4501 = vmatmul.mubr.msk.f32.gmra.mrb[4].mxu0 %vm443_vm0, %v376_v49 }
  0x8f   : > { %4503 = vmatprep.mubr.msk.f32.mxu0 %vm443_vm0, %v377_v50 }
  0x92   : > { %4504 = vmatmul.mubr.msk.f32.gmra.mrb[6].mxu0 %vm443_vm0, %v378_v51 }
  0x93   : > { %4506 = vmatprep.mubr.msk.f32.mxu0 %vm443_vm0, %v379_v52 }
  0x96   : > { %4507 = vmatmul.mubr.msk.f32.gmra.mrb[8].mxu0 %vm443_vm0, %v380_v53 }
  0x97   : > { %4509 = vmatprep.mubr.msk.f32.mxu0 %vm443_vm0, %v381_v54 }
  0x9a   : > { %4510 = vmatmul.mubr.msk.f32.gmra.mrb[10].mxu0 %vm443_vm0, %v382_v55 }
  0x9b   : > { %4512 = vmatprep.mubr.msk.f32.mxu0 %vm443_vm0, %v383_v56 }
  0x9e   : > { %4513 = vmatmul.mubr.msk.f32.gmra.mrb[12].mxu0 %vm443_vm0, %v384_v57 }
  0x9f   : > { %4515 = vmatprep.mubr.msk.f32.mxu0 %vm443_vm0, %v385_v58 }
  0xa2   : > { %4516 = vmatmul.mubr.msk.f32.gmra.mrb[14].mxu0 %vm443_vm0, %v386_v59 }
  0xa3   : > { %4518 = vmatprep.mubr.msk.f32.mxu0 %vm443_vm0, %v387_v60 }
  0xa6   : > { %4519 = vmatmul.mubr.msk.f32.gmra.mrb[16].mxu0 %vm443_vm0, %v388_v61 }
  0xa7   : > { %4521 = vmatprep.mubr.msk.f32.mxu0 %vm443_vm0, %v389_v62 }
  0xaa   : > { %4522 = vmatmul.mubr.msk.f32.gmra.mrb[18].mxu0 %vm443_vm0, %v390_v63 }
  0xab   : > { %4524 = vmatprep.mubr.msk.f32.mxu0 %vm443_vm0, %v391_v0 }
  0xae   : > { %4525 = vmatmul.mubr.msk.f32.gmra.mrb[20].mxu0 %vm443_vm0, %v392_v1 }
  0xaf   : > { %4527 = vmatprep.mubr.msk.f32.mxu0 %vm443_vm0, %v393_v2 }
  0xb2   : > { %4528 = vmatmul.mubr.msk.f32.gmra.mrb[22].mxu0 %vm443_vm0, %v394_v3 }
  0xb3   : > { %4530 = vmatprep.mubr.msk.f32.mxu0 %vm443_vm0, %v395_v4 }
  0xb6   : > { %4531 = vmatmul.mubr.msk.f32.gmra.mrb[24].mxu0 %vm443_vm0, %v396_v5 }
  0xb7   : > { %4533 = vmatprep.mubr.msk.f32.mxu0 %vm443_vm0, %v397_v6 }
  0xba   : > { %4534 = vmatmul.mubr.msk.f32.gmra.mrb[26].mxu0 %vm443_vm0, %v398_v7 }
  0xbb   : > { %4536 = vmatprep.mubr.msk.f32.mxu0 %vm443_vm0, %v399_v8 }
  0xbe   : > { %4537 = vmatmul.mubr.msk.f32.gmra.mrb[28].mxu0 %vm443_vm0, %v400_v9 }
  0xbf   : > { %4539 = vmatprep.mubr.msk.f32.mxu0 %vm443_vm0, %v401_v10 }
  0xc2   : > { %4540 = vmatmul.mubr.msk.f32.gmra.mrb[30].mxu0 %vm443_vm0, %v402_v11 }
 0x159   : > { %v4496_v20 = vpop.f32.mrb[0].mxu0 }
 0x15a   : > { %v5517_v21 = vadd.f32 %v4496_v20, %v5514_v19  ;;  %v927_v22 = vpop.f32.mrb[1].mxu0 }
 0x15b   : > { %v5520_v23 = vadd.f32 %v5514_v19, %v927_v22 }
 0x15c   : > { %v7288_v24 = vmax.f32 %v5517_v21, 0.0 }
 0x15d   : > { %v7289_v25 = vmax.f32 %v5520_v23, 0.0  ;;  %v4499_v26 = vpop.f32.mrb[2].mxu0 }
 0x15e   : > { %1214 = vst.msk [vmem:[#allocation2 + $0x21] sm:$0xff] %vm443_vm0, %v7288_v24  ;;  %v5528_v27 = vadd.f32 %v4499_v26, %v5514_v19  ;;  %v937_v28 = vpop.f32.mrb[3].mxu0 }
 0x15f   : > { %1213 = vst.msk [vmem:[#allocation2 + $0x19] sm:$0xff] %vm443_vm0, %v7289_v25  ;;  %v5534_v29 = vadd.f32 %v5514_v19, %v937_v28 }
 0x160   : > { %v7286_v30 = vmax.f32 %v5528_v27, 0.0 }
 0x161   : > { %v7287_v31 = vmax.f32 %v5534_v29, 0.0  ;;  %v4502_v32 = vpop.f32.mrb[4].mxu0 }
 0x162   : > { %1216 = vst.msk [vmem:[#allocation2 + $0x39] sm:$0xff] %vm443_vm0, %v7286_v30  ;;  %v5542_v33 = vadd.f32 %v4502_v32, %v5514_v19  ;;  %v947_v34 = vpop.f32.mrb[5].mxu0 }
 0x163   : > { %1215 = vst.msk [vmem:[#allocation2 + $0x31] sm:$0xff] %vm443_vm0, %v7287_v31  ;;  %v5548_v35 = vadd.f32 %v5514_v19, %v947_v34 }
 0x164   : > { %v7284_v36 = vmax.f32 %v5542_v33, 0.0 }
 0x165   : > { %v7285_v37 = vmax.f32 %v5548_v35, 0.0  ;;  %v4505_v38 = vpop.f32.mrb[6].mxu0  ;;  %v1320_v39 = vld [vmem:[#allocation2 + $0x22] sm:$0xff] }
 0x166   : > { %v1284_v40 = vld [vmem:[#allocation2 + $0x21] sm:$0xff]  ;;  %1218 = vst.msk [vmem:[#allocation2 + $0x51] sm:$0xff] %vm443_vm0, %v7284_v36  ;;  %v5556_v41 = vadd.f32 %v4505_v38, %v5514_v19  ;;  %v957_v42 = vpop.f32.mrb[7].mxu0  ;;  %v1283_v44 = vld [vmem:[#allocation2 + $0x19] sm:$0xff] }
 0x167   : > { %v1319_v43 = vld [vmem:[#allocation2 + $0x1a] sm:$0xff]  ;;  %1217 = vst.msk [vmem:[#allocation2 + $0x49] sm:$0xff] %vm443_vm0, %v7285_v37  ;;  %v5562_v45 = vadd.f32 %v5514_v19, %v957_v42  ;;  %v4911_v47 = vpack.i.bf16 %v1284_v40, %v1283_v44 }
 0x168   : > { %v4916_v46 = vpack.i.bf16 %v1320_v39, %v1319_v43  ;;  %v7282_v48 = vmax.f32 %v5556_v41, 0.0 }
 0x169   : > { %v7283_v49 = vmax.f32 %v5562_v45, 0.0  ;;  %4912 = vrot.lane.b32.xlu0 %v4911_v47, %s5123_s19  ;;  %v4508_v50 = vpop.f32.mrb[8].mxu0  ;;  %v1322_v55 = vld [vmem:[#allocation2 + $0x3a] sm:$0xff] }
 0x16a   : > { %4917 = vrot.lane.b32.xlu1 %v4916_v46, %s5124_s14  ;;  %1220 = vst.msk [vmem:[#allocation2 + $0x69] sm:$0xff] %vm443_vm0, %v7282_v48  ;;  %v5572_v51 = vadd.f32 %v4508_v50, %v5514_v19  ;;  %v967_v52 = vpop.f32.mrb[9].mxu0  ;;  %v1286_v56 = vld [vmem:[#allocation2 + $0x39] sm:$0xff]  ;;  %v1285_v0 = vld [vmem:[#allocation2 + $0x31] sm:$0xff] }
 0x16b   : > { %1219 = vst.msk [vmem:[#allocation2 + $0x61] sm:$0xff] %vm443_vm0, %v7283_v49  ;;  %v5578_v53 = vadd.f32 %v5514_v19, %v967_v52  ;;  %v1321_v63 = vld [vmem:[#allocation2 + $0x32] sm:$0xff] }
 0x16c   : > { %v7280_v54 = vmax.f32 %v5572_v51, 0.0 }
 0x16d   : > { %v7281_v57 = vmax.f32 %v5578_v53, 0.0  ;;  %1399 = vrot.lane.b32.xlu0 %v1286_v56, %s5123_s19  ;;  %v4511_v58 = vpop.f32.mrb[10].mxu0  ;;  %v1324_v7 = vld [vmem:[#allocation2 + $0x52] sm:$0xff] }
 0x16e   : > { %1543 = vrot.lane.b32.xlu1 %v1322_v55, %s5124_s14  ;;  %1222 = vst.msk [vmem:[#allocation2 + $0x81] sm:$0xff] %vm443_vm0, %v7280_v54  ;;  %v5588_v59 = vadd.f32 %v4511_v58, %v5514_v19  ;;  %v977_v60 = vpop.f32.mrb[11].mxu0  ;;  %v1288_v8 = vld [vmem:[#allocation2 + $0x51] sm:$0xff]  ;;  %v1287_v16 = vld [vmem:[#allocation2 + $0x49] sm:$0xff] }
 0x16f   : > { %1221 = vst.msk [vmem:[#allocation2 + $0x79] sm:$0xff] %vm443_vm0, %v7281_v57  ;;  %v5594_v61 = vadd.f32 %v5514_v19, %v977_v60  ;;  %v1323_v15 = vld [vmem:[#allocation2 + $0x4a] sm:$0xff] }
 0x170   : > { %v7278_v62 = vmax.f32 %v5588_v59, 0.0 }
 0x171   : > { %v7279_v1 = vmax.f32 %v5594_v61, 0.0  ;;  %1397 = vrot.lane.b32.xlu0 %v1285_v0, %s5123_s19  ;;  %v4514_v2 = vpop.f32.mrb[12].mxu0  ;;  %v1326_v32 = vld [vmem:[#allocation2 + $0x6a] sm:$0xff] }
 0x172   : > { %1541 = vrot.lane.b32.xlu1 %v1321_v63, %s5124_s14  ;;  %1224 = vst.msk [vmem:[#allocation2 + $0x99] sm:$0xff] %vm443_vm0, %v7278_v62  ;;  %v5604_v3 = vadd.f32 %v4514_v2, %v5514_v19  ;;  %v987_v4 = vpop.f32.mrb[13].mxu0  ;;  %v1290_v34 = vld [vmem:[#allocation2 + $0x69] sm:$0xff]  ;;  %v1289_v47 = vld [vmem:[#allocation2 + $0x61] sm:$0xff] }
 0x173   : > { %1223 = vst.msk [vmem:[#allocation2 + $0x91] sm:$0xff] %vm443_vm0, %v7279_v1  ;;  %v5610_v5 = vadd.f32 %v5514_v19, %v987_v4  ;;  %v1325_v46 = vld [vmem:[#allocation2 + $0x62] sm:$0xff] }
 0x174   : > { %v7276_v6 = vmax.f32 %v5604_v3, 0.0 }
 0x175   : > { %v7277_v9 = vmax.f32 %v5610_v5, 0.0  ;;  %1403 = vrot.lane.b32.xlu0 %v1288_v8, %s5123_s19  ;;  %v4517_v10 = vpop.f32.mrb[14].mxu0  ;;  %v1328_v63 = vld [vmem:[#allocation2 + $0x82] sm:$0xff] }
 0x176   : > { %1547 = vrot.lane.b32.xlu1 %v1324_v7, %s5124_s14  ;;  %1226 = vst.msk [vmem:[#allocation2 + $0xb1] sm:$0xff] %vm443_vm0, %v7276_v6  ;;  %v5620_v11 = vadd.f32 %v4517_v10, %v5514_v19  ;;  %v997_v12 = vpop.f32.mrb[15].mxu0  ;;  %v1292_v0 = vld [vmem:[#allocation2 + $0x81] sm:$0xff] }
 0x177   : > { %1225 = vst.msk [vmem:[#allocation2 + $0xa9] sm:$0xff] %vm443_vm0, %v7277_v9  ;;  %v5626_v13 = vadd.f32 %v5514_v19, %v997_v12  ;;  %v1256_v57 = vld [vmem:[#allocation2 + $0x80] sm:$0xff] }
 0x178   : > { %v7274_v14 = vmax.f32 %v5620_v11, 0.0 }
 0x179   : > { %v7275_v17 = vmax.f32 %v5626_v13, 0.0  ;;  %1401 = vrot.lane.b32.xlu0 %v1287_v16, %s5123_s19  ;;  %v4520_v18 = vpop.f32.mrb[16].mxu0  ;;  %v1291_v16 = vld [vmem:[#allocation2 + $0x79] sm:$0xff] }
 0x17a   : > { %1545 = vrot.lane.b32.xlu1 %v1323_v15, %s5124_s14  ;;  %1228 = vst.msk [vmem:[#allocation2 + $0xc9] sm:$0xff] %vm443_vm0, %v7274_v14  ;;  %v5636_v20 = vadd.f32 %v4520_v18, %v5514_v19  ;;  %v1007_v22 = vpop.f32.mrb[17].mxu0  ;;  %v1327_v15 = vld [vmem:[#allocation2 + $0x7a] sm:$0xff]  ;;  %v1257_v25 = vld [vmem:[#allocation2 + $0x90] sm:$0xff] }
 0x17b   : > { %1227 = vst.msk [vmem:[#allocation2 + $0xc1] sm:$0xff] %vm443_vm0, %v7275_v17  ;;  %v5642_v26 = vadd.f32 %v5514_v19, %v1007_v22  ;;  %v1250_v17 = vld [vmem:[#allocation2 + $0x38] sm:$0xff] }
 0x17c   : > { %7312 = vst [vmem:[#allocation9_spill] sm:$0xff] %v5636_v20  ;;  %v7272_v28 = vmax.f32 %v5636_v20, 0.0 }
 0x17d   : > { %v7273_v38 = vmax.f32 %v5642_v26, 0.0  ;;  %1407 = vrot.lane.b32.xlu0 %v1290_v34, %s5123_s19  ;;  %v4523_v39 = vpop.f32.mrb[18].mxu0 }
 0x17e   : > { %1551 = vrot.lane.b32.xlu1 %v1326_v32, %s5124_s14  ;;  %1230 = vst.msk [vmem:[#allocation2 + $0xe1] sm:$0xff] %vm443_vm0, %v7272_v28  ;;  %v5652_v40 = vadd.f32 %v4523_v39, %v5514_v19  ;;  %v1017_v42 = vpop.f32.mrb[19].mxu0  ;;  %v1248_v28 = vld [vmem:[#allocation2 + $0x20] sm:$0xff] }
 0x17f   : > { %1229 = vst.msk [vmem:[#allocation2 + $0xd9] sm:$0xff] %vm443_vm0, %v7273_v38  ;;  %v5658_v43 = vadd.f32 %v5514_v19, %v1017_v42 }
 0x180   : > { %7313 = vst [vmem:[#allocation10_spill] sm:$0xff] %v5652_v40  ;;  %v7270_v44 = vmax.f32 %v5652_v40, 0.0 }
 0x181   : > { %7314 = vst [vmem:[#allocation11_spill] sm:$0xff] %v5658_v43  ;;  %v7271_v50 = vmax.f32 %v5658_v43, 0.0  ;;  %1405 = vrot.lane.b32.xlu0 %v1289_v47, %s5123_s19  ;;  %v4526_v52 = vpop.f32.mrb[20].mxu0  ;;  %v1294_v47 = vld [vmem:[#allocation2 + $0x99] sm:$0xff] }
 0x182   : > { %1549 = vrot.lane.b32.xlu1 %v1325_v46, %s5124_s14  ;;  %1232 = vst.msk [vmem:[#allocation2 + $0xf9] sm:$0xff] %vm443_vm0, %v7270_v44  ;;  %v5668_v55 = vadd.f32 %v4526_v52, %v5514_v19  ;;  %v1027_v56 = vpop.f32.mrb[21].mxu0  ;;  %v1330_v46 = vld [vmem:[#allocation2 + $0x9a] sm:$0xff] }
 0x183   : > { %1231 = vst.msk [vmem:[#allocation2 + $0xf1] sm:$0xff] %vm443_vm0, %v7271_v50  ;;  %v5674_v58 = vadd.f32 %v5514_v19, %v1027_v56  ;;  %v1247_v50 = vld [vmem:[#allocation2 + $0x18] sm:$0xff] }
 0x184   : > { %7315 = vst [vmem:[#allocation12_spill] sm:$0xff] %v5668_v55  ;;  %v7268_v60 = vmax.f32 %v5668_v55, 0.0 }
 0x185   : > { %7316 = vst [vmem:[#allocation13_spill] sm:$0xff] %v5674_v58  ;;  %v7269_v2 = vmax.f32 %v5674_v58, 0.0  ;;  %1411 = vrot.lane.b32.xlu0 %v1292_v0, %s5123_s19  ;;  %v4529_v4 = vpop.f32.mrb[22].mxu0 }
 0x186   : > { %1555 = vrot.lane.b32.xlu1 %v1328_v63, %s5124_s14  ;;  %1234 = vst.msk [vmem:[#allocation2 + $0x111] sm:$0xff] %vm443_vm0, %v7268_v60  ;;  %v5684_v7 = vadd.f32 %v4529_v4, %v5514_v19  ;;  %v1037_v8 = vpop.f32.mrb[23].mxu0 }
 0x187   : > { %1233 = vst.msk [vmem:[#allocation2 + $0x109] sm:$0xff] %vm443_vm0, %v7269_v2  ;;  %v5690_v10 = vadd.f32 %v5514_v19, %v1037_v8 }
 0x188   : > { %7317 = vst [vmem:[#allocation14_spill] sm:$0xff] %v5684_v7  ;;  %v7262_v12 = vmax.f32 %v5684_v7, 0.0 }
 0x189   : > { %7318 = vst [vmem:[#allocation15_spill] sm:$0xff] %v5690_v10  ;;  %v7267_v18 = vmax.f32 %v5690_v10, 0.0  ;;  %1409 = vrot.lane.b32.xlu0 %v1291_v16, %s5123_s19  ;;  %v4532_v22 = vpop.f32.mrb[24].mxu0  ;;  %v1293_v16 = vld [vmem:[#allocation2 + $0x91] sm:$0xff] }
 0x18a   : > { %1553 = vrot.lane.b32.xlu1 %v1327_v15, %s5124_s14  ;;  %1236 = vst.msk [vmem:[#allocation2 + $0x129] sm:$0xff] %vm443_vm0, %v7262_v12  ;;  %v5700_v32 = vadd.f32 %v4532_v22, %v5514_v19  ;;  %v1047_v34 = vpop.f32.mrb[25].mxu0  ;;  %v1329_v15 = vld [vmem:[#allocation2 + $0x92] sm:$0xff] }
 0x18b   : > { %1235 = vst.msk [vmem:[#allocation2 + $0x121] sm:$0xff] %vm443_vm0, %v7267_v18  ;;  %v5706_v39 = vadd.f32 %v5514_v19, %v1047_v34 }
 0x18c   : > { %7319 = vst [vmem:[#allocation16_spill] sm:$0xff] %v5700_v32  ;;  %v7258_v42 = vmax.f32 %v5700_v32, 0.0 }
 0x18d   : > { %7320 = vst [vmem:[#allocation17_spill] sm:$0xff] %v5706_v39  ;;  %v7261_v52 = vmax.f32 %v5706_v39, 0.0  ;;  %1415 = vrot.lane.b32.xlu0 %v1294_v47, %s5123_s19  ;;  %v4535_v56 = vpop.f32.mrb[26].mxu0 }
 0x18e   : > { %1559 = vrot.lane.b32.xlu1 %v1330_v46, %s5124_s14  ;;  %1238 = vst.msk [vmem:[#allocation2 + $0x141] sm:$0xff] %vm443_vm0, %v7258_v42  ;;  %v5716_v63 = vadd.f32 %v4535_v56, %v5514_v19  ;;  %v1057_v0 = vpop.f32.mrb[27].mxu0 }
 0x18f   : > { %1237 = vst.msk [vmem:[#allocation2 + $0x139] sm:$0xff] %vm443_vm0, %v7261_v52  ;;  %v5722_v4 = vadd.f32 %v5514_v19, %v1057_v0  ;;  %v1332_v52 = vld [vmem:[#allocation2 + $0xb2] sm:$0xff] }
 0x190   : > { %7321 = vst [vmem:[#allocation18_spill] sm:$0xff] %v5716_v63  ;;  %v7259_v8 = vmax.f32 %v5716_v63, 0.0 }
 0x191   : > { %7322 = vst [vmem:[#allocation19_spill] sm:$0xff] %v5722_v4  ;;  %v7260_v22 = vmax.f32 %v5722_v4, 0.0  ;;  %1413 = vrot.lane.b32.xlu0 %v1293_v16, %s5123_s19  ;;  %v4538_v34 = vpop.f32.mrb[28].mxu0  ;;  %v1295_v16 = vld [vmem:[#allocation2 + $0xa9] sm:$0xff] }
 0x192   : > { %1557 = vrot.lane.b32.xlu1 %v1329_v15, %s5124_s14  ;;  %1240 = vst.msk [vmem:[#allocation2 + $0x159] sm:$0xff] %vm443_vm0, %v7259_v8  ;;  %v5732_v46 = vadd.f32 %v4538_v34, %v5514_v19  ;;  %v1067_v47 = vpop.f32.mrb[29].mxu0  ;;  %v1296_v15 = vld [vmem:[#allocation2 + $0xb1] sm:$0xff] }
 0x193   : > { %1239 = vst.msk [vmem:[#allocation2 + $0x151] sm:$0xff] %vm443_vm0, %v7260_v22  ;;  %v5738_v56 = vadd.f32 %v5514_v19, %v1067_v47 }
 0x194   : > { %7323 = vst [vmem:[#allocation20_spill] sm:$0xff] %v5732_v46  ;;  %v7265_v0 = vmax.f32 %v5732_v46, 0.0  ;;  %v1351_v46 = vld [vmem:[#allocation2 + $0x19a] sm:$0xff] }
 0x195   : > { %7324 = vst [vmem:[#allocation21_spill] sm:$0xff] %v5738_v56  ;;  %v7266_v42 = vmax.f32 %v5738_v56, 0.0  ;;  %1419 = vrot.lane.b32.xlu0 %v1296_v15, %s5123_s19  ;;  %v4541_v34 = vpop.f32.mrb[30].mxu0  ;;  %v1261_v56 = vld [vmem:[#allocation2 + $0xc0] sm:$0xff] }
 0x196   : > { %1417 = vrot.lane.b32.xlu1 %v1295_v16, %s5123_s19  ;;  %1242 = vst.msk [vmem:[#allocation2 + $0x171] sm:$0xff] %vm443_vm0, %v7265_v0  ;;  %v5748_v8 = vadd.f32 %v4541_v34, %v5514_v19  ;;  %v1077_v47 = vpop.f32.mrb[31].mxu0  ;;  %v1331_v16 = vld [vmem:[#allocation2 + $0xaa] sm:$0xff]  ;;  %v2005_v34 = vld [vmem:[%s7251_s5] sm:$0xff]  ;;  %v2008_v0 = vld [vmem:[%s7251_s5 + $0x18] sm:$0xff] }
 0x197   : > { %1241 = vst.msk [vmem:[#allocation2 + $0x169] sm:$0xff] %vm443_vm0, %v7266_v42  ;;  %v5754_v22 = vadd.f32 %v5514_v19, %v1077_v47  ;;  %v7290_v19 = vmov 0.0|0.0   ;;  %v1298_v47 = vld [vmem:[#allocation2 + $0xc9] sm:$0xff] }
 0x198   : > { %7325 = vst [vmem:[#allocation22_spill] sm:$0xff] %v5748_v8  ;;  %v7263_v15 = vmax.f32 %v5748_v8, 0.0  ;;  %4670 = vmatprep.subr.bf16.mxu0 %v7290_v19  ;;  %4782 = vmatprep.subr.bf16.mxu1 %v7290_v19  ;;  %v1334_v42 = vld [vmem:[#allocation2 + $0xca] sm:$0xff] }
 0x199   : > { %7326 = vst [vmem:[#allocation23_spill] sm:$0xff] %v5754_v22  ;;  %v7264_v12 = vmax.f32 %v5754_v22, 0.0  ;;  %1563 = vrot.lane.b32.xlu0 %v1332_v52, %s5124_s14  ;;  %v2006_v52 = vld [vmem:[%s7251_s5 + $0x8] sm:$0xff]  ;;  %v1346_v37 = vld [vmem:[#allocation2 + $0x15a] sm:$0xff] }
 0x19a   : > { %1561 = vrot.lane.b32.xlu1 %v1331_v16, %s5124_s14  ;;  %1244 = vst.msk [vmem:[#allocation2 + $0x189] sm:$0xff] %vm443_vm0, %v7263_v15  ;;  %v1333_v16 = vld [vmem:[#allocation2 + $0xc2] sm:$0xff]  ;;  %v4671_v15 = vpack.c.bf16 %v2006_v52, %v2005_v34  ;;  %v1345_v48 = vld [vmem:[#allocation2 + $0x152] sm:$0xff] }
 0x19b   : > { %1243 = vst.msk [vmem:[#allocation2 + $0x181] sm:$0xff] %vm443_vm0, %v7264_v12  ;;  %v2007_v12 = vld [vmem:[%s7251_s5 + $0x10] sm:$0xff]  ;;  %v1300_v34 = vld [vmem:[#allocation2 + $0xe1] sm:$0xff] }
 0x19c   : > { %4672 = vmatpush1.bf16.msra.mxu0 %v4671_v15  ;;  %4798 = vmatpush1.bf16.msra.mxu1 %v4671_v15  ;;  %v4674_v52 = vpack.c.bf16 %v2008_v0, %v2007_v12  ;;  %v2009_v15 = vld [vmem:[%s7251_s5 + $0x20] sm:$0xff] }
 0x19d   : > { %1565 = vrot.lane.b32.xlu0 %v1333_v16, %s5124_s14  ;;  %4673 = vmatprep.subr.bf16.mxu0 %v7290_v19  ;;  %v1297_v16 = vld [vmem:[#allocation2 + $0xc1] sm:$0xff] }
 0x19e   : > { %1423 = vrot.lane.b32.xlu1 %v1298_v47, %s5123_s19  ;;  %4783 = vmatprep.subr.bf16.mxu1 %v7290_v19  ;;  %v2010_v47 = vld [vmem:[%s7251_s5 + $0x28] sm:$0xff] }
 0x19f   : > { %v1336_v12 = vld [vmem:[#allocation2 + $0xe2] sm:$0xff]  ;;  %v4677_v0 = vpack.c.bf16 %v2010_v47, %v2009_v15  ;;  %v1335_v15 = vld [vmem:[#allocation2 + $0xda] sm:$0xff]  ;;  %v1347_v30 = vld [vmem:[#allocation2 + $0x16a] sm:$0xff] }
 0x1a0   : > { %4675 = vmatpush1.bf16.msra.mxu0 %v4674_v52  ;;  %4799 = vmatpush1.bf16.msra.mxu1 %v4674_v52  ;;  %v1299_v47 = vld [vmem:[#allocation2 + $0xd9] sm:$0xff] }
 0x1a1   : > { %1427 = vrot.lane.b32.xlu0 %v1300_v34, %s5123_s19  ;;  %4676 = vmatprep.subr.bf16.mxu0 %v7290_v19  ;;  %v2012_v34 = vld [vmem:[%s7251_s5 + $0x38] sm:$0xff]  ;;  %v1314_v31 = vld [vmem:[#allocation2 + $0x189] sm:$0xff] }
 0x1a2   : > { %1567 = vrot.lane.b32.xlu1 %v1334_v42, %s5124_s14  ;;  %4784 = vmatprep.subr.bf16.mxu1 %v7290_v19  ;;  %v2011_v42 = vld [vmem:[%s7251_s5 + $0x30] sm:$0xff] }
 0x1a3   : > { %v4680_v52 = vpack.c.bf16 %v2012_v34, %v2011_v42  ;;  %v1338_v42 = vld [vmem:[#allocation2 + $0xfa] sm:$0xff] }
 0x1a4   : > { %4678 = vmatpush1.bf16.msra.mxu0 %v4677_v0  ;;  %4800 = vmatpush1.bf16.msra.mxu1 %v4677_v0  ;;  %v1302_v34 = vld [vmem:[#allocation2 + $0xf9] sm:$0xff] }
 0x1a5   : > { %1571 = vrot.lane.b32.xlu0 %v1336_v12, %s5124_s14  ;;  %4679 = vmatprep.subr.bf16.mxu0 %v7290_v19  ;;  %v2014_v12 = vld [vmem:[%s7251_s5 + $0x48] sm:$0xff] }
 0x1a6   : > { %1421 = vrot.lane.b32.xlu1 %v1297_v16, %s5123_s19  ;;  %4785 = vmatprep.subr.bf16.mxu1 %v7290_v19  ;;  %v2013_v16 = vld [vmem:[%s7251_s5 + $0x40] sm:$0xff] }
 0x1a7   : > { %v4683_v0 = vpack.c.bf16 %v2014_v12, %v2013_v16  ;;  %v1337_v16 = vld [vmem:[#allocation2 + $0xf2] sm:$0xff] }
 0x1a8   : > { %4681 = vmatpush1.bf16.msra.mxu0 %v4680_v52  ;;  %4801 = vmatpush1.bf16.msra.mxu1 %v4680_v52  ;;  %v2016_v52 = vld [vmem:[%s7251_s5 + $0x58] sm:$0xff] }
 0x1a9   : > { %1425 = vrot.lane.b32.xlu0 %v1299_v47, %s5123_s19  ;;  %4682 = vmatprep.subr.bf16.mxu0 %v7290_v19  ;;  %v1301_v12 = vld [vmem:[#allocation2 + $0xf1] sm:$0xff] }
 0x1aa   : > { %1569 = vrot.lane.b32.xlu1 %v1335_v15, %s5124_s14  ;;  %4786 = vmatprep.subr.bf16.mxu1 %v7290_v19  ;;  %v2015_v15 = vld [vmem:[%s7251_s5 + $0x50] sm:$0xff] }
 0x1ab   : > { %v4686_v47 = vpack.c.bf16 %v2016_v52, %v2015_v15  ;;  %v1340_v15 = vld [vmem:[#allocation2 + $0x112] sm:$0xff] }
 0x1ac   : > { %4684 = vmatpush1.bf16.msra.mxu0 %v4683_v0  ;;  %4802 = vmatpush1.bf16.msra.mxu1 %v4683_v0  ;;  %v2018_v0 = vld [vmem:[%s7251_s5 + $0x68] sm:$0xff]  ;;  %v1304_v52 = vld [vmem:[#allocation2 + $0x111] sm:$0xff] }
 0x1ad   : > { %1575 = vrot.lane.b32.xlu0 %v1338_v42, %s5124_s14  ;;  %4685 = vmatprep.subr.bf16.mxu0 %v7290_v19  ;;  %v2017_v42 = vld [vmem:[%s7251_s5 + $0x60] sm:$0xff] }
 0x1ae   : > { %1431 = vrot.lane.b32.xlu1 %v1302_v34, %s5123_s19  ;;  %4787 = vmatprep.subr.bf16.mxu1 %v7290_v19  ;;  %v4689_v34 = vpack.c.bf16 %v2018_v0, %v2017_v42  ;;  %v1339_v42 = vld [vmem:[#allocation2 + $0x10a] sm:$0xff] }
 0x1af   : > { %v1303_v0 = vld [vmem:[#allocation2 + $0x109] sm:$0xff] }
 0x1b0   : > { %4687 = vmatpush1.bf16.msra.mxu0 %v4686_v47  ;;  %4803 = vmatpush1.bf16.msra.mxu1 %v4686_v47  ;;  %v2020_v47 = vld [vmem:[%s7251_s5 + $0x78] sm:$0xff] }
 0x1b1   : > { %1573 = vrot.lane.b32.xlu0 %v1337_v16, %s5124_s14  ;;  %4688 = vmatprep.subr.bf16.mxu0 %v7290_v19  ;;  %v2019_v16 = vld [vmem:[%s7251_s5 + $0x70] sm:$0xff] }
 0x1b2   : > { %1429 = vrot.lane.b32.xlu1 %v1301_v12, %s5123_s19  ;;  %4788 = vmatprep.subr.bf16.mxu1 %v7290_v19  ;;  %v4692_v12 = vpack.c.bf16 %v2020_v47, %v2019_v16  ;;  %v1342_v16 = vld [vmem:[#allocation2 + $0x12a] sm:$0xff] }
 0x1b3   : > { %v1306_v47 = vld [vmem:[#allocation2 + $0x129] sm:$0xff] }
 0x1b4   : > { %4690 = vmatpush1.bf16.msra.mxu0 %v4689_v34  ;;  %4804 = vmatpush1.bf16.msra.mxu1 %v4689_v34  ;;  %v2022_v34 = vld [vmem:[%s7251_s5 + $0x88] sm:$0xff] }
 0x1b5   : > { %1579 = vrot.lane.b32.xlu0 %v1340_v15, %s5124_s14  ;;  %4691 = vmatprep.subr.bf16.mxu0 %v7290_v19  ;;  %v2021_v15 = vld [vmem:[%s7251_s5 + $0x80] sm:$0xff] }
 0x1b6   : > { %1435 = vrot.lane.b32.xlu1 %v1304_v52, %s5123_s19  ;;  %4789 = vmatprep.subr.bf16.mxu1 %v7290_v19  ;;  %v4695_v52 = vpack.c.bf16 %v2022_v34, %v2021_v15  ;;  %v1341_v15 = vld [vmem:[#allocation2 + $0x122] sm:$0xff] }
 0x1b7   : > { %v1305_v34 = vld [vmem:[#allocation2 + $0x121] sm:$0xff] }
 0x1b8   : > { %4693 = vmatpush1.bf16.msra.mxu0 %v4692_v12  ;;  %4805 = vmatpush1.bf16.msra.mxu1 %v4692_v12  ;;  %v2024_v12 = vld [vmem:[%s7251_s5 + $0x98] sm:$0xff] }
 0x1b9   : > { %1577 = vrot.lane.b32.xlu0 %v1339_v42, %s5124_s14  ;;  %4694 = vmatprep.subr.bf16.mxu0 %v7290_v19  ;;  %v2023_v42 = vld [vmem:[%s7251_s5 + $0x90] sm:$0xff] }
 0x1ba   : > { %1433 = vrot.lane.b32.xlu1 %v1303_v0, %s5123_s19  ;;  %4790 = vmatprep.subr.bf16.mxu1 %v7290_v19  ;;  %v4698_v0 = vpack.c.bf16 %v2024_v12, %v2023_v42  ;;  %v1307_v42 = vld [vmem:[#allocation2 + $0x139] sm:$0xff]  ;;  %v2027_v12 = vld [vmem:[%s7251_s5 + $0xb0] sm:$0xff] }
 0x1bc   : > { %4696 = vmatpush1.bf16.msra.mxu0 %v4695_v52  ;;  %4806 = vmatpush1.bf16.msra.mxu1 %v4695_v52  ;;  %v2026_v52 = vld [vmem:[%s7251_s5 + $0xa8] sm:$0xff] }
 0x1bd   : > { %1583 = vrot.lane.b32.xlu0 %v1342_v16, %s5124_s14  ;;  %4697 = vmatprep.subr.bf16.mxu0 %v7290_v19  ;;  %v2025_v16 = vld [vmem:[%s7251_s5 + $0xa0] sm:$0xff] }
 0x1be   : > { %1439 = vrot.lane.b32.xlu1 %v1306_v47, %s5123_s19  ;;  %4791 = vmatprep.subr.bf16.mxu1 %v7290_v19  ;;  %v4701_v47 = vpack.c.bf16 %v2026_v52, %v2025_v16  ;;  %v2029_v16 = vld [vmem:[%s7251_s5 + $0xc0] sm:$0xff]  ;;  %v2030_v52 = vld [vmem:[%s7251_s5 + $0xc8] sm:$0xff] }
 0x1c0   : > { %4699 = vmatpush1.bf16.msra.mxu0 %v4698_v0  ;;  %4807 = vmatpush1.bf16.msra.mxu1 %v4698_v0 }
 0x1c1   : > { %1581 = vrot.lane.b32.xlu0 %v1341_v15, %s5124_s14  ;;  %4700 = vmatprep.subr.bf16.mxu0 %v7290_v19  ;;  %v2028_v15 = vld [vmem:[%s7251_s5 + $0xb8] sm:$0xff] }
 0x1c2   : > { %1437 = vrot.lane.b32.xlu1 %v1305_v34, %s5123_s19  ;;  %4792 = vmatprep.subr.bf16.mxu1 %v7290_v19  ;;  %v4704_v0 = vpack.c.bf16 %v2028_v15, %v2027_v12  ;;  %v1343_v34 = vld [vmem:[#allocation2 + $0x13a] sm:$0xff] }
 0x1c3   : > { %v2032_v12 = vld [vmem:[%s7251_s5 + $0xd8] sm:$0xff] }
 0x1c4   : > { %4702 = vmatpush1.bf16.msra.mxu0 %v4701_v47  ;;  %4808 = vmatpush1.bf16.msra.mxu1 %v4701_v47  ;;  %v4707_v47 = vpack.c.bf16 %v2030_v52, %v2029_v16  ;;  %v2034_v16 = vld [vmem:[%s7251_s5 + $0xe8] sm:$0xff] }
 0x1c5   : > { %4703 = vmatprep.subr.bf16.mxu0 %v7290_v19  ;;  %4793 = vmatprep.subr.bf16.mxu1 %v7290_v19 }
 0x1c6   : > { %1441 = vrot.lane.b32.xlu1 %v1307_v42, %s5123_s19  ;;  %v2031_v42 = vld [vmem:[%s7251_s5 + $0xd0] sm:$0xff] }
 0x1c7   : > { %v4710_v15 = vpack.c.bf16 %v2032_v12, %v2031_v42  ;;  %v2036_v42 = vld [vmem:[%s7251_s5 + $0xf8] sm:$0xff] }
 0x1c8   : > { %4705 = vmatpush1.bf16.msra.mxu0 %v4704_v0  ;;  %4809 = vmatpush1.bf16.msra.mxu1 %v4704_v0  ;;  %v5900_v0 = vpop.permute.xlu0 %4902 }
 0x1c9   : > { %4706 = vmatprep.subr.bf16.mxu0 %v7290_v19  ;;  %4794 = vmatprep.subr.bf16.mxu1 %v7290_v19 }
 0x1ca   : > { %1585 = vrot.lane.b32.xlu1 %v1343_v34, %s5124_s14  ;;  %v2033_v34 = vld [vmem:[%s7251_s5 + $0xe0] sm:$0xff] }
 0x1cb   : > { %v4713_v52 = vpack.c.bf16 %v2034_v16, %v2033_v34 }
 0x1cc   : > { %4708 = vmatpush1.bf16.msra.mxu0 %v4707_v47  ;;  %4810 = vmatpush1.bf16.msra.mxu1 %v4707_v47  ;;  %v2035_v47 = vld [vmem:[%s7251_s5 + $0xf0] sm:$0xff]  ;;  %v5916_v12 = vpop.permute.xlu0 %4907 }
 0x1cd   : > { %4709 = vmatprep.subr.bf16.mxu0 %v7290_v19  ;;  %4795 = vmatprep.subr.bf16.mxu1 %v7290_v19  ;;  %v4910_v32 = vunpack.i.h.bf16 %v5916_v12 }
 0x1d0   : > { %4711 = vmatpush1.bf16.msra.mxu0 %v4710_v15  ;;  %4811 = vmatpush1.bf16.msra.mxu1 %v4710_v15  ;;  %v4716_v15 = vpack.c.bf16 %v2036_v42, %v2035_v47 }
 0x1d1   : > { %4712 = vmatprep.subr.bf16.mxu0 %v7290_v19  ;;  %4796 = vmatprep.subr.bf16.mxu1 %v7290_v19 }
 0x1d4   : > { %4714 = vmatpush1.bf16.msra.mxu0 %v4713_v52  ;;  %4812 = vmatpush1.bf16.msra.mxu1 %v4713_v52 }
 0x1d5   : > { %4715 = vmatprep.subr.bf16.mxu0 %v7290_v19  ;;  %4797 = vmatprep.subr.bf16.mxu1 %v7290_v19 }
 0x1d8   : > { %4717 = vmatpush1.bf16.msra.mxu0 %v4716_v15  ;;  %4813 = vmatpush1.bf16.msra.mxu1 %v4716_v15 }
 0x1d9   : > { %4726 = vmatprep.subr.bf16.mxu1 %v7290_v19  ;;  %v1349_v19 = vld [vmem:[#allocation2 + $0x182] sm:$0xff] }
 0x1db   : > { %v4913_v16 = vpop.permute.xlu0 %4912 }
 0x1dc   : > { %v4918_v34 = vpop.permute.xlu1 %4917  ;;  %v4915_v2 = vunpack.i.h.bf16 %v4913_v16  ;;  %v4914_v44 = vunpack.i.l.bf16 %v4913_v16 }
 0x1dd   : > { %v4920_v18 = vunpack.i.h.bf16 %v4918_v34  ;;  %v4919_v60 = vunpack.i.l.bf16 %v4918_v34 }
 0x1de   : > { %v1643_v52 = vsel %vm443_vm0, %v1247_v50, %v4914_v44  ;;  %v1644_v38 = vsel %vm443_vm0, %v1248_v28, %v4915_v2  ;;  %v1249_v50 = vld [vmem:[#allocation2 + $0x30] sm:$0xff] }
 0x1df   : > { %v1400_v42 = vpop.permute.xlu0 %1399  ;;  %v5924_v14 = vsel %vm1677_vm2, %v1643_v52, %v4919_v60  ;;  %v5927_v15 = vsel %vm1677_vm2, %v1644_v38, %v4920_v18  ;;  %v1308_v52 = vld [vmem:[#allocation2 + $0x141] sm:$0xff] }
 0x1e0   : > { %v1544_v47 = vpop.permute.xlu1 %1543  ;;  %v4921_v34 = vpack.i.bf16 %v5927_v15, %v5924_v14  ;;  %v1646_v16 = vsel %vm443_vm0, %v1250_v17, %v1400_v42 }
 0x1e1   : > { %v5938_v38 = vsel %vm1677_vm2, %v1646_v16, %v1544_v47  ;;  %v1252_v16 = vld [vmem:[#allocation2 + $0x50] sm:$0xff] }
 0x1e2   : > { %4922 = vrot.lane.b32.xlu1 %v4921_v34, %s5126_s27 }
 0x1e3   : > { %v1398_v28 = vpop.permute.xlu0 %1397 }
 0x1e4   : > { %v1542_v44 = vpop.permute.xlu1 %1541  ;;  %v1645_v2 = vsel %vm443_vm0, %v1249_v50, %v1398_v28  ;;  %v1251_v28 = vld [vmem:[#allocation2 + $0x48] sm:$0xff] }
 0x1e5   : > { %v5935_v60 = vsel %vm1677_vm2, %v1645_v2, %v1542_v44 }
 0x1e6   : > { %1844 = vrot.lane.b32.xlu0 %v5935_v60, %s5124_s14  ;;  %1846 = vrot.lane.b32.xlu1 %v5938_v38, %s5124_s14  ;;  %v4926_v47 = vpack.i.bf16 %v5938_v38, %v5935_v60 }
 0x1e7   : > { %v1404_v18 = vpop.permute.xlu0 %1403 }
 0x1e8   : > { %v1548_v17 = vpop.permute.xlu1 %1547  ;;  %v1648_v2 = vsel %vm443_vm0, %v1252_v16, %v1404_v18  ;;  %v1344_v18 = vld [vmem:[#allocation2 + $0x142] sm:$0xff] }
 0x1e9   : > { %v1253_v16 = vld [vmem:[#allocation2 + $0x60] sm:$0xff] }
 0x1ea   : > { %1443 = vrot.lane.b32.xlu0 %v1308_v52, %s5123_s19 }
 0x1eb   : > { %v1402_v34 = vpop.permute.xlu0 %1401 }
 0x1ec   : > { %v1546_v42 = vpop.permute.xlu1 %1545  ;;  %v1647_v44 = vsel %vm443_vm0, %v1251_v28, %v1402_v34  ;;  %v2037_v34 = vld [vmem:[%s7251_s5 + $0x100] sm:$0xff]  ;;  %v2038_v28 = vld [vmem:[%s7251_s5 + $0x108] sm:$0xff] }
 0x1ed   : > { %v5949_v50 = vsel %vm1677_vm2, %v1647_v44, %v1546_v42  ;;  %v5961_v9 = vpack.c.bf16 %v2038_v28, %v2037_v34  ;;  %v5964_v42 = vsel %vm1677_vm2, %v1648_v2, %v1548_v17  ;;  %v1254_v28 = vld [vmem:[#allocation2 + $0x68] sm:$0xff] }
 0x1ee   : > { %4927 = vrot.lane.b32.xlu0 %v4926_v47, %s5126_s27  ;;  %1848 = vrot.lane.b32.xlu1 %v5949_v50, %s5124_s14  ;;  %v4931_v34 = vpack.i.bf16 %v5964_v42, %v5949_v50 }
 0x1ef   : > { %v1408_v6 = vpop.permute.xlu0 %1407  ;;  %4719 = vmatprep.subr.bf16.mxu0 %v5961_v9 }
 0x1f0   : > { %v1552_v52 = vpop.permute.xlu1 %1551  ;;  %v1650_v2 = vsel %vm443_vm0, %v1254_v28, %v1408_v6 }
 0x1f1   : > { %v5981_v54 = vsel %vm1677_vm2, %v1650_v2, %v1552_v52 }
 0x1f2   : > { %1850 = vrot.lane.b32.xlu0 %v5964_v42, %s5124_s14  ;;  %1587 = vrot.lane.b32.xlu1 %v1344_v18, %s5124_s14 }
 0x1f3   : > { %v1406_v47 = vpop.permute.xlu0 %1405 }
 0x1f4   : > { %v1550_v44 = vpop.permute.xlu1 %1549  ;;  %v1649_v62 = vsel %vm443_vm0, %v1253_v16, %v1406_v47  ;;  %v1309_v47 = vld [vmem:[#allocation2 + $0x151] sm:$0xff] }
 0x1f5   : > { %v5974_v17 = vsel %vm1677_vm2, %v1649_v62, %v1550_v44  ;;  %v1255_v16 = vld [vmem:[#allocation2 + $0x78] sm:$0xff] }
 0x1f6   : > { %1852 = vrot.lane.b32.xlu0 %v5974_v17, %s5124_s14  ;;  %4932 = vrot.lane.b32.xlu1 %v4931_v34, %s5126_s27  ;;  %v4936_v28 = vpack.i.bf16 %v5981_v54, %v5974_v17 }
 0x1f7   : > { %v1412_v1 = vpop.permute.xlu0 %1411 }
 0x1f8   : > { %v1556_v18 = vpop.permute.xlu1 %1555  ;;  %v1652_v49 = vsel %vm443_vm0, %v1256_v57, %v1412_v1  ;;  %v1312_v1 = vld [vmem:[#allocation2 + $0x171] sm:$0xff] }
 0x1fa   : > { %1854 = vrot.lane.b32.xlu1 %v5981_v54, %s5124_s14  ;;  %1445 = vrot.lane.b32.xlu0 %v1309_v47, %s5123_s19  ;;  %v1310_v47 = vld [vmem:[#allocation2 + $0x159] sm:$0xff] }
 0x1fb   : > { %v1410_v44 = vpop.permute.xlu0 %1409 }
 0x1fc   : > { %v1554_v62 = vpop.permute.xlu1 %1553  ;;  %v1651_v6 = vsel %vm443_vm0, %v1255_v16, %v1410_v44 }
 0x1fd   : > { %v5990_v34 = vsel %vm1677_vm2, %v1651_v6, %v1554_v62  ;;  %v5999_v62 = vsel %vm1677_vm2, %v1652_v49, %v1556_v18  ;;  %v1311_v6 = vld [vmem:[#allocation2 + $0x169] sm:$0xff] }
 0x1fe   : > { %1856 = vrot.lane.b32.xlu1 %v5990_v34, %s5124_s14  ;;  %4937 = vrot.lane.b32.xlu0 %v4936_v28, %s5126_s27 }
 0x1ff   : > { %v1416_v2 = vpop.permute.xlu0 %1415 }
 0x200   : > { %v1560_v52 = vpop.permute.xlu1 %1559 }
 0x202   : > { %1447 = vrot.lane.b32.xlu1 %v1310_v47, %s5123_s19  ;;  %1589 = vrot.lane.b32.xlu0 %v1345_v48, %s5124_s14  ;;  %v1348_v47 = vld [vmem:[#allocation2 + $0x172] sm:$0xff] }
 0x203   : > { %v1414_v16 = vpop.permute.xlu0 %1413 }
 0x204   : > { %v1558_v44 = vpop.permute.xlu1 %1557 }
 0x206   : > { %1858 = vrot.lane.b32.xlu0 %v5999_v62, %s5124_s14  ;;  %1449 = vrot.lane.b32.xlu1 %v1311_v6, %s5123_s19  ;;  %v1313_v6 = vld [vmem:[#allocation2 + $0x181] sm:$0xff] }
 0x207   : > { %v1420_v28 = vpop.permute.xlu0 %1419 }
 0x208   : > { %v1418_v36 = vpop.permute.xlu1 %1417 }
 0x20a   : > { %1591 = vrot.lane.b32.xlu0 %v1346_v37, %s5124_s14  ;;  %1593 = vrot.lane.b32.xlu1 %v1347_v30, %s5124_s14  ;;  %v4941_v30 = vpack.i.bf16 %v5999_v62, %v5990_v34  ;;  %v1258_v37 = vld [vmem:[#allocation2 + $0x98] sm:$0xff] }
 0x20b   : > { %v1564_v48 = vpop.permute.xlu0 %1563  ;;  %v1654_v8 = vsel %vm443_vm0, %v1258_v37, %v1416_v2  ;;  %v1315_v2 = vld [vmem:[#allocation2 + $0x199] sm:$0xff] }
 0x20c   : > { %v1562_v57 = vpop.permute.xlu1 %1561 }
 0x20e   : > { %1451 = vrot.lane.b32.xlu0 %v1312_v1, %s5123_s19  ;;  %1595 = vrot.lane.b32.xlu1 %v1348_v47, %s5124_s14  ;;  %v1653_v1 = vsel %vm443_vm0, %v1257_v25, %v1414_v16  ;;  %v1350_v16 = vld [vmem:[#allocation2 + $0x18a] sm:$0xff] }
 0x20f   : > { %v1566_v18 = vpop.permute.xlu0 %1565 }
 0x210   : > { %v1424_v49 = vpop.permute.xlu1 %1423 }
 0x212   : > { %1455 = vrot.lane.b32.xlu1 %v1314_v31, %s5123_s19  ;;  %1453 = vrot.lane.b32.xlu0 %v1313_v6, %s5123_s19  ;;  %v6017_v31 = vsel %vm1677_vm2, %v1654_v8, %v1560_v52  ;;  %v6020_v6 = vsel %vm1677_vm2, %v1653_v1, %v1558_v44  ;;  %v1260_v1 = vld [vmem:[#allocation2 + $0xb0] sm:$0xff] }
 0x213   : > { %v1428_v47 = vpop.permute.xlu0 %1427  ;;  %v4946_v52 = vpack.i.bf16 %v6017_v31, %v6020_v6 }
 0x214   : > { %v1568_v24 = vpop.permute.xlu1 %1567 }
 0x216   : > { %4942 = vrot.lane.b32.xlu1 %v4941_v30, %s5126_s27  ;;  %1597 = vrot.lane.b32.xlu0 %v1349_v19, %s5124_s14  ;;  %v1259_v19 = vld [vmem:[#allocation2 + $0xa8] sm:$0xff] }
 0x217   : > { %v1572_v25 = vpop.permute.xlu0 %1571  ;;  %v1655_v8 = vsel %vm443_vm0, %v1259_v19, %v1418_v36 }
 0x218   : > { %v1422_v22 = vpop.permute.xlu1 %1421  ;;  %v6032_v44 = vsel %vm1677_vm2, %v1655_v8, %v1562_v57 }
 0x219   : > { %v1657_v19 = vsel %vm443_vm0, %v1261_v56, %v1422_v22  ;;  %v1316_v22 = vld [vmem:[#allocation2 + $0x1a1] sm:$0xff]  ;;  %v1263_v56 = vld [vmem:[#allocation2 + $0xd8] sm:$0xff] }
 0x21a   : > { %1862 = vrot.lane.b32.xlu1 %v6017_v31, %s5124_s14  ;;  %1860 = vrot.lane.b32.xlu0 %v6020_v6, %s5124_s14 }
 0x21b   : > { %v1426_v30 = vpop.permute.xlu0 %1425 }
 0x21c   : > { %v1570_v37 = vpop.permute.xlu1 %1569 }
 0x21e   : > { %1457 = vrot.lane.b32.xlu1 %v1315_v2, %s5123_s19  ;;  %1599 = vrot.lane.b32.xlu0 %v1350_v16, %s5124_s14  ;;  %v1656_v2 = vsel %vm443_vm0, %v1260_v1, %v1420_v28 }
 0x21f   : > { %v6039_v36 = vsel %vm1677_vm2, %v1656_v2, %v1564_v48  ;;  %v1576_v57 = vpop.permute.xlu0 %1575  ;;  %v1262_v48 = vld [vmem:[#allocation2 + $0xc8] sm:$0xff]  ;;  %v1659_v2 = vsel %vm443_vm0, %v1263_v56, %v1426_v30 }
 0x220   : > { %v1432_v16 = vpop.permute.xlu1 %1431  ;;  %v4951_v8 = vpack.i.bf16 %v6039_v36, %v6032_v44 }
 0x222   : > { %1864 = vrot.lane.b32.xlu1 %v6032_v44, %s5124_s14  ;;  %4947 = vrot.lane.b32.xlu0 %v4946_v52, %s5126_s27  ;;  %v6048_v52 = vsel %vm1677_vm2, %v1657_v19, %v1566_v18 }
 0x223   : > { %v1574_v63 = vpop.permute.xlu0 %1573 }
 0x224   : > { %v1430_v28 = vpop.permute.xlu1 %1429 }
 0x226   : > { %1601 = vrot.lane.b32.xlu1 %v1351_v46, %s5124_s14  ;;  %1866 = vrot.lane.b32.xlu0 %v6039_v36, %s5124_s14  ;;  %v1658_v46 = vsel %vm443_vm0, %v1262_v48, %v1424_v49  ;;  %v1352_v49 = vld [vmem:[#allocation2 + $0x1a2] sm:$0xff] }
 0x227   : > { %v6055_v1 = vsel %vm1677_vm2, %v1658_v46, %v1568_v24  ;;  %v1264_v24 = vld [vmem:[#allocation2 + $0xe0] sm:$0xff]  ;;  %v1580_v48 = vpop.permute.xlu0 %1579  ;;  %v1265_v46 = vld [vmem:[#allocation2 + $0xf0] sm:$0xff] }
 0x228   : > { %v1436_v18 = vpop.permute.xlu1 %1435  ;;  %v4956_v19 = vpack.i.bf16 %v6055_v1, %v6048_v52  ;;  %v1660_v30 = vsel %vm443_vm0, %v1264_v24, %v1428_v47  ;;  %v1661_v56 = vsel %vm443_vm0, %v1265_v46, %v1430_v28  ;;  %v1267_v28 = vld [vmem:[#allocation2 + $0x108] sm:$0xff] }
 0x22a   : > { %4952 = vrot.lane.b32.xlu1 %v4951_v8, %s5126_s27  ;;  %1868 = vrot.lane.b32.xlu0 %v6048_v52, %s5124_s14  ;;  %v6064_v8 = vsel %vm1677_vm2, %v1659_v2, %v1570_v37  ;;  %v1266_v37 = vld [vmem:[#allocation2 + $0xf8] sm:$0xff]  ;;  %v6078_v2 = vsel %vm1677_vm2, %v1661_v56, %v1574_v63 }
 0x22b   : > { %v1578_v47 = vpop.permute.xlu0 %1577 }
 0x22c   : > { %v1434_v4 = vpop.permute.xlu1 %1433 }
 0x22e   : > { %1870 = vrot.lane.b32.xlu1 %v6055_v1, %s5124_s14  ;;  %1459 = vrot.lane.b32.xlu0 %v1316_v22, %s5123_s19  ;;  %v6071_v22 = vsel %vm1677_vm2, %v1660_v30, %v1572_v25 }
 0x22f   : > { %v1584_v63 = vpop.permute.xlu0 %1583 }
 0x230   : > { %v1440_v25 = vpop.permute.xlu1 %1439 }
 0x232   : > { %1872 = vrot.lane.b32.xlu1 %v6064_v8, %s5124_s14  ;;  %4957 = vrot.lane.b32.xlu0 %v4956_v19, %s5126_s27  ;;  %v1662_v19 = vsel %vm443_vm0, %v1266_v37, %v1432_v16  ;;  %v1268_v16 = vld [vmem:[#allocation2 + $0x110] sm:$0xff] }
 0x233   : > { %v6086_v24 = vsel %vm1677_vm2, %v1662_v19, %v1576_v57  ;;  %v1664_v46 = vsel %vm443_vm0, %v1268_v16, %v1436_v18  ;;  %v1582_v37 = vpop.permute.xlu0 %1581 }
 0x234   : > { %v1438_v56 = vpop.permute.xlu1 %1437  ;;  %v6102_v57 = vsel %vm1677_vm2, %v1664_v46, %v1580_v48  ;;  %v1271_v46 = vld [vmem:[#allocation2 + $0x138] sm:$0xff] }
 0x236   : > { %1603 = vrot.lane.b32.xlu1 %v1352_v49, %s5124_s14  ;;  %1874 = vrot.lane.b32.xlu0 %v6071_v22, %s5124_s14  ;;  %v1663_v49 = vsel %vm443_vm0, %v1267_v28, %v1434_v4  ;;  %v1269_v4 = vld [vmem:[#allocation2 + $0x120] sm:$0xff] }
 0x237   : > { %v6094_v30 = vsel %vm1677_vm2, %v1663_v49, %v1578_v47  ;;  %v1665_v19 = vsel %vm443_vm0, %v1269_v4, %v1438_v56  ;;  %v1270_v47 = vld [vmem:[#allocation2 + $0x128] sm:$0xff]  ;;  %v4904_v4 = vunpack.i.l.bf16 %v5900_v0 }
 0x238   : > { %v1442_v18 = vpop.permute.xlu1 %1441  ;;  %v6110_v28 = vsel %vm1677_vm2, %v1665_v19, %v1582_v37  ;;  %v1666_v49 = vsel %vm443_vm0, %v1270_v47, %v1440_v25  ;;  %v4909_v19 = vunpack.i.l.bf16 %v5916_v12  ;;  %v4905_v47 = vunpack.i.h.bf16 %v5900_v0 }
 0x239   : > { %v6118_v48 = vsel %vm1677_vm2, %v1666_v49, %v1584_v63  ;;  %v1667_v56 = vsel %vm443_vm0, %v1271_v46, %v1442_v18  ;;  %v1245_v63 = vld [vmem:[#allocation2] sm:$0xff]  ;;  %v2040_v46 = vld [vmem:[%s7251_s5 + $0x118] sm:$0xff] }
 0x23a   : > { %1778 = vrot.lane.b32.xlu1 %v6064_v8, %s5126_s27  ;;  %1876 = vrot.lane.b32.xlu0 %v6078_v2, %s5124_s14  ;;  %v1641_v49 = vsel %vm443_vm0, %v1245_v63, %v4904_v4 }
 0x23b   : > { %v1678_v7 = vsel %vm1677_vm2, %v1641_v49, %v4909_v19 }
 0x23c   : > { %v1586_v16 = vpop.permute.xlu1 %1585 }
 0x23d   : > { %v6126_v25 = vsel %vm1677_vm2, %v1667_v56, %v1586_v16  ;;  %v2039_v16 = vld [vmem:[%s7251_s5 + $0x110] sm:$0xff]  ;;  %v1246_v56 = vld [vmem:[#allocation2 + $0x8] sm:$0xff] }
 0x23e   : > { %1878 = vrot.lane.b32.xlu1 %v6086_v24, %s5124_s14  ;;  %1780 = vrot.lane.b32.xlu0 %v6071_v22, %s5126_s27  ;;  %v4722_v10 = vpack.c.bf16 %v2040_v46, %v2039_v16  ;;  %v1642_v58 = vsel %vm443_vm0, %v1246_v56, %v4905_v47 }
 0x242   : > { %1880 = vrot.lane.b32.xlu1 %v6094_v30, %s5124_s14  ;;  %1782 = vrot.lane.b32.xlu0 %v6078_v2, %s5126_s27 }
 0x246   : > { %1882 = vrot.lane.b32.xlu1 %v6102_v57, %s5124_s14  ;;  %1784 = vrot.lane.b32.xlu0 %v6086_v24, %s5126_s27 }
 0x24a   : > { %1884 = vrot.lane.b32.xlu1 %v6110_v28, %s5124_s14  ;;  %1786 = vrot.lane.b32.xlu0 %v6094_v30, %s5126_s27 }
 0x24e   : > { %1886 = vrot.lane.b32.xlu1 %v6118_v48, %s5124_s14  ;;  %1788 = vrot.lane.b32.xlu0 %v6102_v57, %s5126_s27 }
 0x252   : > { %1888 = vrot.lane.b32.xlu1 %v6126_v25, %s5124_s14  ;;  %1790 = vrot.lane.b32.xlu0 %v6110_v28, %s5126_s27 }
 0x254   : > { %v4923_v37 = vpop.permute.xlu1 %4922 }
 0x255   : > { %v4924_v18 = vunpack.i.l.bf16 %v4923_v37  ;;  %v4925_v4 = vunpack.i.h.bf16 %v4923_v37  ;;  %v1679_v37 = vsel %vm1677_vm2, %v1642_v58, %v4910_v32 }
 0x256   : > { %1792 = vrot.lane.b32.xlu0 %v6118_v48, %s5126_s27 }
 0x257   : > { %v1941_v55 = vsel %vm1940_vm3, %v1678_v7, %v4924_v18  ;;  %v1942_v19 = vsel %vm1940_vm3, %v1679_v37, %v4925_v4 }
 0x258   : > { %v6145_v39 = vpop.permute.xlu0 %1844  ;;  %v6147_v0 = vpop.permute.xlu1 %1846 }
 0x259   : > { %v1973_v63 = vsel %vm1677_vm2, %v4924_v18, %v6145_v39  ;;  %v1974_v12 = vsel %vm1677_vm2, %v4925_v4, %v6147_v0  ;;  %v1272_v18 = vld [vmem:[#allocation2 + $0x140] sm:$0xff] }
 0x25a   : > { %2176 = vmatprep.mubr.f32.mxu0 %v1973_v63  ;;  %1794 = vrot.lane.b32.xlu0 %v6126_v25, %s5126_s27 }
 0x25b   : > { %2177 = vmatmul.mubr.f32.vlgmr.msra.gmra.mrb[32].mxu0 %v1941_v55 }
 0x25c   : > { %v1444_v40 = vpop.permute.xlu0 %1443  ;;  %2181 = vmatprep.mubr.f32.mxu0 %v1974_v12  ;;  %4721 = vmatpush3.bf16.msra.mxu0 %v5961_v9 }
 0x25d   : > { %4723 = vmatprep.subr.bf16.mxu0 %v4722_v10  ;;  %v1668_v56 = vsel %vm443_vm0, %v1272_v18, %v1444_v40 }
 0x25f   : > { %2182 = vmatmul.mubr.f32.gmra.mrb[34].mxu0 %v1942_v19 }
 0x260   : > { %v4928_v49 = vpop.permute.xlu0 %4927  ;;  %v1849_v16 = vpop.permute.xlu1 %1848  ;;  %4725 = vmatpush3.bf16.msra.mxu0 %v4722_v10 }
 0x261   : > { %v4929_v7 = vunpack.i.l.bf16 %v4928_v49  ;;  %v4930_v47 = vunpack.i.h.bf16 %v4928_v49 }
 0x263   : > { %v1975_v55 = vsel %vm1677_vm2, %v4929_v7, %v1849_v16  ;;  %v1943_v46 = vsel %vm1940_vm3, %v5924_v14, %v4929_v7  ;;  %v1944_v40 = vsel %vm1940_vm3, %v5927_v15, %v4930_v47 }
 0x264   : > { %v1851_v9 = vpop.permute.xlu0 %1850  ;;  %v1588_v63 = vpop.permute.xlu1 %1587  ;;  %2186 = vmatprep.mubr.f32.mxu0 %v1975_v55 }
 0x265   : > { %v6166_v58 = vsel %vm1677_vm2, %v1668_v56, %v1588_v63  ;;  %2187 = vmatmul.mubr.f32.gmra.mrb[36].mxu0 %v1943_v46  ;;  %v1976_v32 = vsel %vm1677_vm2, %v4930_v47, %v1851_v9  ;;  %v1273_v56 = vld [vmem:[#allocation2 + $0x150] sm:$0xff] }
 0x266   : > { %2191 = vmatprep.mubr.f32.mxu0 %v1976_v32  ;;  %1890 = vrot.lane.b32.xlu1 %v6166_v58, %s5124_s14 }
 0x267   : > { %1796 = vrot.lane.b32.xlu0 %v6166_v58, %s5126_s27 }
 0x268   : > { %v1853_v10 = vpop.permute.xlu0 %1852  ;;  %v4933_v14 = vpop.permute.xlu1 %4932 }
 0x269   : > { %v4934_v4 = vunpack.i.l.bf16 %v4933_v14  ;;  %2192 = vmatmul.mubr.f32.gmra.mrb[38].mxu0 %v1944_v40  ;;  %v4935_v12 = vunpack.i.h.bf16 %v4933_v14 }
 0x26b   : > { %v1977_v37 = vsel %vm1677_vm2, %v4934_v4, %v1853_v10  ;;  %v1945_v19 = vsel %vm1940_vm3, %v5935_v60, %v4934_v4  ;;  %v1946_v15 = vsel %vm1940_vm3, %v5938_v38, %v4935_v12 }
 0x26c   : > { %v1855_v49 = vpop.permute.xlu1 %1854  ;;  %2196 = vmatprep.mubr.f32.mxu0 %v1977_v37  ;;  %v1446_v7 = vpop.permute.xlu0 %1445 }
 0x26d   : > { %2197 = vmatmul.mubr.f32.gmra.mrb[40].mxu0 %v1945_v19  ;;  %v1978_v18 = vsel %vm1677_vm2, %v4935_v12, %v1855_v49  ;;  %v1669_v32 = vsel %vm443_vm0, %v1273_v56, %v1446_v7 }
 0x26e   : > { %2201 = vmatprep.mubr.f32.mxu0 %v1978_v18 }
 0x270   : > { %v1857_v55 = vpop.permute.xlu1 %1856  ;;  %v4938_v46 = vpop.permute.xlu0 %4937 }
 0x271   : > { %v4939_v47 = vunpack.i.l.bf16 %v4938_v46  ;;  %2202 = vmatmul.mubr.f32.gmra.mrb[42].mxu0 %v1946_v15  ;;  %v4940_v37 = vunpack.i.h.bf16 %v4938_v46 }
 0x273   : > { %v1979_v63 = vsel %vm1677_vm2, %v4939_v47, %v1857_v55  ;;  %v1947_v60 = vsel %vm1940_vm3, %v5949_v50, %v4939_v47  ;;  %v1948_v19 = vsel %vm1940_vm3, %v5964_v42, %v4940_v37 }
 0x274   : > { %v1448_v14 = vpop.permute.xlu1 %1447  ;;  %v1590_v40 = vpop.permute.xlu0 %1589  ;;  %2206 = vmatprep.mubr.f32.mxu0 %v1979_v63  ;;  %v1276_v63 = vld [vmem:[#allocation2 + $0x170] sm:$0xff] }
 0x275   : > { %v6186_v4 = vsel %vm1677_vm2, %v1669_v32, %v1590_v40  ;;  %2207 = vmatmul.mubr.f32.gmra.mrb[44].mxu0 %v1947_v60 }
 0x276   : > { %4550 = vmatprep.mubr.msk.f32.mxu0 %vm443_vm0, %v6145_v39  ;;  %1892 = vrot.lane.b32.xlu1 %v6186_v4, %s5124_s14  ;;  %v1274_v39 = vld [vmem:[#allocation2 + $0x158] sm:$0xff] }
 0x277   : > { %1798 = vrot.lane.b32.xlu0 %v6186_v4, %s5126_s27  ;;  %v1670_v7 = vsel %vm443_vm0, %v1274_v39, %v1448_v14 }
 0x278   : > { %v1859_v38 = vpop.permute.xlu0 %1858  ;;  %v1450_v50 = vpop.permute.xlu1 %1449 }
 0x279   : > { %4551 = vmatmul.mubr.msk.f32.vlgmr.msra.gmra.mrb[46].mxu0 %vm443_vm0, %v6147_v0  ;;  %v1980_v12 = vsel %vm1677_vm2, %v4940_v37, %v1859_v38  ;;  %v1275_v0 = vld [vmem:[#allocation2 + $0x168] sm:$0xff] }
 0x27a   : > { %2211 = vmatprep.mubr.f32.mxu1 %v1980_v12  ;;  %4553 = vmatprep.mubr.msk.f32.mxu0 %vm443_vm0, %v1849_v16  ;;  %v1671_v42 = vsel %vm443_vm0, %v1275_v0, %v1450_v50 }
 0x27b   : > { %2212 = vmatmul.mubr.f32.vlgmr.msra.gmra.mrb[0].mxu1 %v1948_v19 }
 0x27c   : > { %v1592_v18 = vpop.permute.xlu0 %1591  ;;  %v1594_v46 = vpop.permute.xlu1 %1593 }
 0x27d   : > { %v6202_v15 = vsel %vm1677_vm2, %v1670_v7, %v1592_v18  ;;  %4554 = vmatmul.mubr.msk.f32.gmra.mrb[48].mxu0 %vm443_vm0, %v1851_v9  ;;  %v6212_v56 = vsel %vm1677_vm2, %v1671_v42, %v1594_v46  ;;  %v1278_v18 = vld [vmem:[#allocation2 + $0x188] sm:$0xff] }
 0x27e   : > { %4556 = vmatprep.mubr.msk.f32.mxu0 %vm443_vm0, %v1853_v10  ;;  %1894 = vrot.lane.b32.xlu1 %v6202_v15, %s5124_s14 }
 0x27f   : > { %1800 = vrot.lane.b32.xlu0 %v6202_v15, %s5126_s27 }
 0x280   : > { %v1452_v16 = vpop.permute.xlu0 %1451  ;;  %v1596_v47 = vpop.permute.xlu1 %1595 }
 0x281   : > { %4557 = vmatmul.mubr.msk.f32.gmra.mrb[50].mxu0 %vm443_vm0, %v1855_v49  ;;  %v1672_v9 = vsel %vm443_vm0, %v1276_v63, %v1452_v16  ;;  %v1277_v49 = vld [vmem:[#allocation2 + $0x180] sm:$0xff] }
 0x282   : > { %4559 = vmatprep.mubr.msk.f32.mxu0 %vm443_vm0, %v1857_v55  ;;  %1896 = vrot.lane.b32.xlu1 %v6212_v56, %s5124_s14  ;;  %v6222_v32 = vsel %vm1677_vm2, %v1672_v9, %v1596_v47 }
 0x283   : > { %1802 = vrot.lane.b32.xlu0 %v6212_v56, %s5126_s27 }
 0x284   : > { %v1456_v10 = vpop.permute.xlu1 %1455  ;;  %v1454_v60 = vpop.permute.xlu0 %1453 }
 0x285   : > { %4560 = vmatmul.mubr.msk.f32.gmra.mrb[52].mxu0 %vm443_vm0, %v1859_v38  ;;  %v1673_v55 = vsel %vm443_vm0, %v1277_v49, %v1454_v60  ;;  %v1674_v0 = vsel %vm443_vm0, %v1278_v18, %v1456_v10  ;;  %v1279_v60 = vld [vmem:[#allocation2 + $0x198] sm:$0xff] }
 0x286   : > { %1898 = vrot.lane.b32.xlu1 %v6222_v32, %s5124_s14 }
 0x287   : > { %1804 = vrot.lane.b32.xlu0 %v6222_v32, %s5126_s27 }
 0x288   : > { %v4943_v14 = vpop.permute.xlu1 %4942  ;;  %v1598_v40 = vpop.permute.xlu0 %1597 }
 0x289   : > { %v1710_v37 = vsel %vm1677_vm2, %v1673_v55, %v1598_v40  ;;  %v4944_v50 = vunpack.i.l.bf16 %v4943_v14  ;;  %v4945_v19 = vunpack.i.h.bf16 %v4943_v14 }
 0x28a   : > { %1900 = vrot.lane.b32.xlu1 %v1710_v37, %s5124_s14 }
 0x28b   : > { %1806 = vrot.lane.b32.xlu0 %v1710_v37, %s5126_s27  ;;  %v1949_v7 = vsel %vm1940_vm3, %v5974_v17, %v4944_v50  ;;  %v1950_v63 = vsel %vm1940_vm3, %v5981_v54, %v4945_v19 }
 0x28c   : > { %v1863_v12 = vpop.permute.xlu1 %1862  ;;  %v1861_v38 = vpop.permute.xlu0 %1860 }
 0x28d   : > { %4562 = vmatprep.mubr.msk.f32.mxu0 %vm443_vm0, %v1861_v38  ;;  %v1981_v39 = vsel %vm1677_vm2, %v4944_v50, %v1861_v38  ;;  %v1982_v46 = vsel %vm1677_vm2, %v4945_v19, %v1863_v12 }
 0x28e   : > { %2216 = vmatprep.mubr.f32.mxu1 %v1981_v39  ;;  %4563 = vmatmul.mubr.msk.f32.gmra.mrb[54].mxu0 %vm443_vm0, %v1863_v12 }
 0x28f   : > { %2217 = vmatmul.mubr.f32.gmra.mrb[2].mxu1 %v1949_v7 }
 0x290   : > { %v1458_v42 = vpop.permute.xlu1 %1457  ;;  %2221 = vmatprep.mubr.f32.mxu1 %v1982_v46  ;;  %v1600_v16 = vpop.permute.xlu0 %1599 }
 0x291   : > { %v1711_v47 = vsel %vm1677_vm2, %v1674_v0, %v1600_v16  ;;  %v1675_v40 = vsel %vm443_vm0, %v1279_v60, %v1458_v42 }
 0x292   : > { %1808 = vrot.lane.b32.xlu0 %v1711_v47, %s5126_s27  ;;  %1902 = vrot.lane.b32.xlu1 %v1711_v47, %s5124_s14 }
 0x293   : > { %2222 = vmatmul.mubr.f32.gmra.mrb[4].mxu1 %v1950_v63 }
 0x294   : > { %v1865_v17 = vpop.permute.xlu1 %1864  ;;  %v4948_v9 = vpop.permute.xlu0 %4947 }
 0x295   : > { %v4949_v49 = vunpack.i.l.bf16 %v4948_v9  ;;  %4565 = vmatprep.mubr.msk.f32.mxu0 %vm443_vm0, %v1865_v17  ;;  %v4950_v10 = vunpack.i.h.bf16 %v4948_v9 }
 0x297   : > { %v1983_v55 = vsel %vm1677_vm2, %v4949_v49, %v1865_v17  ;;  %v1951_v14 = vsel %vm1940_vm3, %v5990_v34, %v4949_v49  ;;  %v1952_v34 = vsel %vm1940_vm3, %v5999_v62, %v4950_v10  ;;  %v1280_v62 = vld [vmem:[#allocation2 + $0x1a0] sm:$0xff] }
 0x298   : > { %v1602_v37 = vpop.permute.xlu1 %1601  ;;  %v1867_v50 = vpop.permute.xlu0 %1866  ;;  %2226 = vmatprep.mubr.f32.mxu1 %v1983_v55 }
 0x299   : > { %v1712_v54 = vsel %vm1677_vm2, %v1675_v40, %v1602_v37  ;;  %2227 = vmatmul.mubr.f32.gmra.mrb[6].mxu1 %v1951_v14  ;;  %4566 = vmatmul.mubr.msk.f32.gmra.mrb[56].mxu0 %vm443_vm0, %v1867_v50  ;;  %v1984_v12 = vsel %vm1677_vm2, %v4950_v10, %v1867_v50 }
 0x29a   : > { %2231 = vmatprep.mubr.f32.mxu1 %v1984_v12  ;;  %1904 = vrot.lane.b32.xlu1 %v1712_v54, %s5124_s14 }
 0x29c   : > { %v4953_v38 = vpop.permute.xlu1 %4952  ;;  %v1869_v19 = vpop.permute.xlu0 %1868 }
 0x29d   : > { %v4954_v39 = vunpack.i.l.bf16 %v4953_v38  ;;  %2232 = vmatmul.mubr.f32.gmra.mrb[8].mxu1 %v1952_v34  ;;  %4568 = vmatprep.mubr.msk.f32.mxu0 %vm443_vm0, %v1869_v19  ;;  %v4955_v7 = vunpack.i.h.bf16 %v4953_v38 }
 0x29f   : > { %v1985_v18 = vsel %vm1677_vm2, %v4954_v39, %v1869_v19  ;;  %v1953_v46 = vsel %vm1940_vm3, %v6020_v6, %v4954_v39  ;;  %v1954_v17 = vsel %vm1940_vm3, %v6017_v31, %v4955_v7 }
 0x2a0   : > { %v1871_v0 = vpop.permute.xlu1 %1870  ;;  %v1460_v42 = vpop.permute.xlu0 %1459  ;;  %2236 = vmatprep.mubr.f32.mxu1 %v1985_v18 }
 0x2a1   : > { %2237 = vmatmul.mubr.f32.gmra.mrb[10].mxu1 %v1953_v46  ;;  %4569 = vmatmul.mubr.msk.f32.gmra.mrb[58].mxu0 %vm443_vm0, %v1871_v0  ;;  %v1986_v16 = vsel %vm1677_vm2, %v4955_v7, %v1871_v0  ;;  %v1676_v6 = vsel %vm443_vm0, %v1280_v62, %v1460_v42 }
 0x2a2   : > { %2241 = vmatprep.mubr.f32.mxu1 %v1986_v16 }
 0x2a4   : > { %v1873_v47 = vpop.permute.xlu1 %1872  ;;  %v4958_v63 = vpop.permute.xlu0 %4957 }
 0x2a5   : > { %v4959_v9 = vunpack.i.l.bf16 %v4958_v63  ;;  %2242 = vmatmul.mubr.f32.gmra.mrb[12].mxu1 %v1954_v17  ;;  %4571 = vmatprep.mubr.msk.f32.mxu0 %vm443_vm0, %v1873_v47  ;;  %v4960_v60 = vunpack.i.h.bf16 %v4958_v63 }
 0x2a7   : > { %v1987_v49 = vsel %vm1677_vm2, %v4959_v9, %v1873_v47  ;;  %v1955_v10 = vsel %vm1940_vm3, %v6032_v44, %v4959_v9  ;;  %v1956_v54 = vsel %vm1940_vm3, %v6039_v36, %v4960_v60 }
 0x2a8   : > { %v1604_v55 = vpop.permute.xlu1 %1603  ;;  %v1875_v14 = vpop.permute.xlu0 %1874  ;;  %2246 = vmatprep.mubr.f32.mxu1 %v1987_v49 }
 0x2a9   : > { %v1713_v40 = vsel %vm1677_vm2, %v1676_v6, %v1604_v55  ;;  %2247 = vmatmul.mubr.f32.gmra.mrb[14].mxu1 %v1955_v10  ;;  %4572 = vmatmul.mubr.msk.f32.gmra.mrb[60].mxu0 %vm443_vm0, %v1875_v14  ;;  %v1988_v31 = vsel %vm1677_vm2, %v4960_v60, %v1875_v14  ;;  %v2662_v10 = vld [vmem:[#allocation2 + $0x1] sm:$0xff]  ;;  %v2663_v55 = vld [vmem:[#allocation2 + $0x9] sm:$0xff] }
 0x2aa   : > { %2251 = vmatprep.mubr.f32.mxu1 %v1988_v31  ;;  %1906 = vrot.lane.b32.xlu1 %v1713_v40, %s5124_s14  ;;  %v4961_v14 = vpack.i.bf16 %v2663_v55, %v2662_v10  ;;  %v2698_v40 = vld [vmem:[#allocation2 + $0x2] sm:$0xff]  ;;  %v2699_v31 = vld [vmem:[#allocation2 + $0xa] sm:$0xff] }
 0x2ac   : > { %v1779_v37 = vpop.permute.xlu1 %1778  ;;  %v1877_v50 = vpop.permute.xlu0 %1876  ;;  %4962 = vrot.lane.b32.xlu0 %v4961_v14, %s5123_s19 }
 0x2ad   : > { %2252 = vmatmul.mubr.f32.gmra.mrb[16].mxu1 %v1956_v54  ;;  %4574 = vmatprep.mubr.msk.f32.mxu0 %vm443_vm0, %v1877_v50  ;;  %v1989_v44 = vsel %vm1677_vm2, %v1779_v37, %v1877_v50  ;;  %v1957_v19 = vsel %vm1940_vm3, %v6048_v52, %v1779_v37  ;;  %v4966_v50 = vpack.i.bf16 %v2699_v31, %v2698_v40 }
 0x2ae   : > { %2256 = vmatprep.mubr.f32.mxu1 %v1989_v44 }
 0x2b0   : > { %v1879_v12 = vpop.permute.xlu1 %1878  ;;  %v1781_v38 = vpop.permute.xlu0 %1780  ;;  %4967 = vrot.lane.b32.xlu0 %v4966_v50, %s5124_s14 }
 0x2b1   : > { %2257 = vmatmul.mubr.f32.gmra.mrb[18].mxu1 %v1957_v19  ;;  %4575 = vmatmul.mubr.msk.f32.gmra.mrb[62].mxu0 %vm443_vm0, %v1879_v12  ;;  %v1990_v34 = vsel %vm1677_vm2, %v1781_v38, %v1879_v12  ;;  %v1958_v36 = vsel %vm1940_vm3, %v6055_v1, %v1781_v38 }
 0x2b2   : > { %2261 = vmatprep.mubr.f32.mxu1 %v1990_v34 }
 0x2b4   : > { %v1881_v39 = vpop.permute.xlu1 %1880  ;;  %v1783_v7 = vpop.permute.xlu0 %1782 }
 0x2b5   : > { %2262 = vmatmul.mubr.f32.gmra.mrb[20].mxu1 %v1958_v36  ;;  %4577 = vmatprep.mubr.msk.f32.mxu0 %vm443_vm0, %v1881_v39  ;;  %v1991_v18 = vsel %vm1677_vm2, %v1783_v7, %v1881_v39  ;;  %v1959_v52 = vsel %vm1940_vm3, %v6064_v8, %v1783_v7 }
 0x2b6   : > { %2266 = vmatprep.mubr.f32.mxu1 %v1991_v18 }
 0x2b8   : > { %v1883_v46 = vpop.permute.xlu1 %1882  ;;  %v1785_v0 = vpop.permute.xlu0 %1784 }
 0x2b9   : > { %2267 = vmatmul.mubr.f32.gmra.mrb[22].mxu1 %v1959_v52  ;;  %4578 = vmatmul.mubr.msk.f32.gmra.mrb[64].mxu0 %vm443_vm0, %v1883_v46  ;;  %v1992_v42 = vsel %vm1677_vm2, %v1785_v0, %v1883_v46  ;;  %v1960_v1 = vsel %vm1940_vm3, %v6071_v22, %v1785_v0 }
 0x2ba   : > { %2271 = vmatprep.mubr.f32.mxu1 %v1992_v42 }
 0x2bc   : > { %v1885_v16 = vpop.permute.xlu1 %1884  ;;  %v1787_v62 = vpop.permute.xlu0 %1786 }
 0x2bd   : > { %2272 = vmatmul.mubr.f32.gmra.mrb[24].mxu1 %v1960_v1  ;;  %4580 = vmatprep.mubr.msk.f32.mxu0 %vm443_vm0, %v1885_v16  ;;  %v1993_v47 = vsel %vm1677_vm2, %v1787_v62, %v1885_v16  ;;  %v1961_v8 = vsel %vm1940_vm3, %v6078_v2, %v1787_v62 }
 0x2be   : > { %2276 = vmatprep.mubr.f32.mxu1 %v1993_v47 }
 0x2c0   : > { %v1887_v63 = vpop.permute.xlu1 %1886  ;;  %v1789_v17 = vpop.permute.xlu0 %1788 }
 0x2c1   : > { %2277 = vmatmul.mubr.f32.gmra.mrb[26].mxu1 %v1961_v8  ;;  %4581 = vmatmul.mubr.msk.f32.gmra.mrb[66].mxu0 %vm443_vm0, %v1887_v63  ;;  %v1994_v9 = vsel %vm1677_vm2, %v1789_v17, %v1887_v63  ;;  %v1962_v22 = vsel %vm1940_vm3, %v6086_v24, %v1789_v17 }
 0x2c2   : > { %2281 = vmatprep.mubr.f32.mxu1 %v1994_v9 }
 0x2c4   : > { %v1889_v6 = vpop.permute.xlu1 %1888  ;;  %v1791_v60 = vpop.permute.xlu0 %1790 }
 0x2c5   : > { %2282 = vmatmul.mubr.f32.gmra.mrb[28].mxu1 %v1962_v22  ;;  %4583 = vmatprep.mubr.msk.f32.mxu0 %vm443_vm0, %v1889_v6  ;;  %v1995_v49 = vsel %vm1677_vm2, %v1791_v60, %v1889_v6  ;;  %v1963_v2 = vsel %vm1940_vm3, %v6094_v30, %v1791_v60 }
 0x2c6   : > { %2286 = vmatprep.mubr.f32.mxu1 %v1995_v49 }
 0x2c8   : > { %v1793_v37 = vpop.permute.xlu0 %1792 }
 0x2c9   : > { %2287 = vmatmul.mubr.f32.gmra.mrb[30].mxu1 %v1963_v2  ;;  %v1964_v30 = vsel %vm1940_vm3, %v6102_v57, %v1793_v37 }
 0x2cc   : > { %v1795_v44 = vpop.permute.xlu0 %1794 }
 0x2cd   : > { %v1965_v19 = vsel %vm1940_vm3, %v6110_v28, %v1795_v44 }
 0x2d8   : > { %v1891_v24 = vpop.permute.xlu1 %1890 }
 0x2d9   : > { %4584 = vmatmul.mubr.msk.f32.gmra.mrb[68].mxu0 %vm443_vm0, %v1891_v24  ;;  %v1996_v54 = vsel %vm1677_vm2, %v1793_v37, %v1891_v24  ;;  %v1797_v34 = vpop.permute.xlu0 %1796 }
 0x2da   : > { %2291 = vmatprep.mubr.f32.mxu1 %v1996_v54  ;;  %v1966_v57 = vsel %vm1940_vm3, %v6118_v48, %v1797_v34 }
 0x2db   : > { %2292 = vmatmul.mubr.f32.gmra.mrb[32].mxu1 %v1964_v30 }
 0x2e8   : > { %v1893_v12 = vpop.permute.xlu1 %1892 }
 0x2e9   : > { %4586 = vmatprep.mubr.msk.f32.mxu0 %vm443_vm0, %v1893_v12  ;;  %v1997_v38 = vsel %vm1677_vm2, %v1795_v44, %v1893_v12  ;;  %v1799_v7 = vpop.permute.xlu0 %1798  ;;  %v6344_v12 = vld [vmem:[%s7252_s6] ss:$0 sm:$0xff] }
 0x2ea   : > { %2296 = vmatprep.mubr.f32.mxu1 %v1997_v38  ;;  %v1967_v28 = vsel %vm1940_vm3, %v6126_v25, %v1799_v7 }
 0x2eb   : > { %2297 = vmatmul.mubr.f32.gmra.mrb[34].mxu1 %v1965_v19 }
 0x2f0   : > { %v1895_v39 = vpop.permute.xlu1 %1894 }
 0x2f1   : > { %4587 = vmatmul.mubr.msk.f32.gmra.mrb[70].mxu0 %vm443_vm0, %v1895_v39  ;;  %v1998_v36 = vsel %vm1677_vm2, %v1797_v34, %v1895_v39  ;;  %v1801_v46 = vpop.permute.xlu0 %1800 }
 0x2f2   : > { %2301 = vmatprep.mubr.f32.mxu1 %v1998_v36  ;;  %v1968_v48 = vsel %vm1940_vm3, %v6166_v58, %v1801_v46 }
 0x2f3   : > { %2302 = vmatmul.mubr.f32.gmra.mrb[36].mxu1 %v1966_v57 }
 0x2f4   : > { %v1897_v18 = vpop.permute.xlu1 %1896 }
 0x2f5   : > { %4589 = vmatprep.mubr.msk.f32.mxu0 %vm443_vm0, %v1897_v18  ;;  %v1999_v0 = vsel %vm1677_vm2, %v1799_v7, %v1897_v18  ;;  %v1803_v16 = vpop.permute.xlu0 %1802 }
 0x2f6   : > { %2306 = vmatprep.mubr.f32.mxu1 %v1999_v0  ;;  %v1969_v25 = vsel %vm1940_vm3, %v6186_v4, %v1803_v16 }
 0x2f7   : > { %2307 = vmatmul.mubr.f32.gmra.mrb[38].mxu1 %v1967_v28 }
 0x2f8   : > { %v1899_v52 = vpop.permute.xlu1 %1898 }
 0x2f9   : > { %4590 = vmatmul.mubr.msk.f32.gmra.mrb[72].mxu0 %vm443_vm0, %v1899_v52  ;;  %v2000_v42 = vsel %vm1677_vm2, %v1801_v46, %v1899_v52  ;;  %v1805_v47 = vpop.permute.xlu0 %1804 }
 0x2fa   : > { %2311 = vmatprep.mubr.f32.mxu1 %v2000_v42  ;;  %v1970_v58 = vsel %vm1940_vm3, %v6202_v15, %v1805_v47 }
 0x2fb   : > { %2312 = vmatmul.mubr.f32.gmra.mrb[40].mxu1 %v1968_v48 }
 0x2fc   : > { %v1901_v62 = vpop.permute.xlu1 %1900 }
 0x2fd   : > { %4592 = vmatprep.mubr.msk.f32.mxu0 %vm443_vm0, %v1901_v62  ;;  %v2001_v1 = vsel %vm1677_vm2, %v1803_v16, %v1901_v62  ;;  %v1807_v8 = vpop.permute.xlu0 %1806 }
 0x2fe   : > { %2316 = vmatprep.mubr.f32.mxu1 %v2001_v1  ;;  %v1971_v4 = vsel %vm1940_vm3, %v6212_v56, %v1807_v8 }
 0x2ff   : > { %2317 = vmatmul.mubr.f32.gmra.mrb[42].mxu1 %v1969_v25 }
 0x304   : > { %v1903_v63 = vpop.permute.xlu1 %1902  ;;  %v1809_v60 = vpop.permute.xlu0 %1808 }
 0x305   : > { %4593 = vmatmul.mubr.msk.f32.gmra.mrb[74].mxu0 %vm443_vm0, %v1903_v63  ;;  %v2002_v17 = vsel %vm1677_vm2, %v1805_v47, %v1903_v63  ;;  %v1972_v15 = vsel %vm1940_vm3, %v6222_v32, %v1809_v60 }
 0x306   : > { %2321 = vmatprep.mubr.f32.mxu1 %v2002_v17 }
 0x307   : > { %2322 = vmatmul.mubr.f32.gmra.mrb[44].mxu1 %v1970_v58 }
 0x30c   : > { %v1905_v9 = vpop.permute.xlu1 %1904 }
 0x30d   : > { %4595 = vmatprep.mubr.msk.f32.mxu0 %vm443_vm0, %v1905_v9  ;;  %v2003_v6 = vsel %vm1677_vm2, %v1807_v8, %v1905_v9 }
 0x30e   : > { %2326 = vmatprep.mubr.f32.mxu1 %v2003_v6 }
 0x30f   : > { %2327 = vmatmul.mubr.f32.gmra.mrb[46].mxu1 %v1971_v4 }
 0x31c   : > { %v1907_v22 = vpop.permute.xlu1 %1906 }
 0x31d   : > { %4596 = vmatmul.mubr.msk.f32.gmra.mrb[76].mxu0 %vm443_vm0, %v1907_v22  ;;  %v2004_v49 = vsel %vm1677_vm2, %v1809_v60, %v1907_v22 }
 0x31e   : > { %2331 = vmatprep.mubr.f32.mxu1 %v2004_v49 }
 0x31f   : > { %2332 = vmatmul.mubr.f32.gmra.mrb[48].mxu1 %v1972_v15 }
 0x32e   : > { %v2178_v2 = vpop.f32.mrb[32].mxu0 }
 0x32f   : > { %v2180_v10 = vpop.f32.mrb[33].mxu0  ;;  %v2179_v19 = vadd.f32 %v6344_v12, %v2178_v2 }
 0x332   : > { %v2183_v55 = vpop.f32.mrb[34].mxu0 }
 0x333   : > { %v2185_v14 = vpop.f32.mrb[35].mxu0  ;;  %v2184_v38 = vadd.f32 %v6344_v12, %v2183_v55 }
 0x338   : > { %v2188_v40 = vpop.f32.mrb[36].mxu0 }
 0x339   : > { %v2190_v31 = vpop.f32.mrb[37].mxu0  ;;  %v2189_v28 = vadd.f32 %v6344_v12, %v2188_v40 }
 0x33c   : > { %v2193_v37 = vpop.f32.mrb[38].mxu0 }
 0x33d   : > { %v2195_v56 = vpop.f32.mrb[39].mxu0  ;;  %v2194_v18 = vadd.f32 %v6344_v12, %v2193_v37 }
 0x340   : > { %v2198_v50 = vpop.f32.mrb[40].mxu0 }
 0x341   : > { %v2200_v24 = vpop.f32.mrb[41].mxu0  ;;  %v2199_v47 = vadd.f32 %v6344_v12, %v2198_v50 }
 0x344   : > { %v2203_v54 = vpop.f32.mrb[42].mxu0 }
 0x345   : > { %v2205_v30 = vpop.f32.mrb[43].mxu0  ;;  %v2204_v1 = vadd.f32 %v6344_v12, %v2203_v54 }
 0x348   : > { %v2208_v44 = vpop.f32.mrb[44].mxu0 }
 0x349   : > { %v2210_v32 = vpop.f32.mrb[45].mxu0  ;;  %v2209_v60 = vadd.f32 %v6344_v12, %v2208_v44 }
 0x34c   : > { %v4552_v34 = vpop.f32.mrb[46].mxu0 }
 0x34d   : > { %v2409_v39 = vadd.f32 %v4552_v34, %v2184_v38  ;;  %v2403_v7 = vpop.f32.mrb[47].mxu0 }
 0x34e   : > { %v2404_v36 = vadd.f32 %v2403_v7, %v2179_v19  ;;  %v2213_v57 = vpop.f32.mrb[0].mxu1 }
 0x34f   : > { %v2563_v46 = vmax.f32 %v2409_v39, 0.0  ;;  %v2215_v0 = vpop.f32.mrb[1].mxu1  ;;  %v2214_v6 = vadd.f32 %v6344_v12, %v2213_v57 }
 0x350   : > { %v2562_v52 = vmax.f32 %v2404_v36, 0.0  ;;  %v4555_v42 = vpop.f32.mrb[48].mxu0 }
 0x351   : > { %2595 = vst.msk [vmem:[#allocation2 + $0x21] sm:$0xff] %vm443_vm0, %v2563_v46  ;;  %v2419_v48 = vadd.f32 %v4555_v42, %v2194_v18  ;;  %v2413_v16 = vpop.f32.mrb[49].mxu0 }
 0x352   : > { %2594 = vst.msk [vmem:[#allocation2 + $0x19] sm:$0xff] %vm443_vm0, %v2562_v52  ;;  %v2414_v62 = vadd.f32 %v2413_v16, %v2189_v28 }
 0x353   : > { %v2565_v25 = vmax.f32 %v2419_v48, 0.0 }
 0x354   : > { %v2564_v63 = vmax.f32 %v2414_v62, 0.0  ;;  %v4558_v17 = vpop.f32.mrb[50].mxu0 }
 0x355   : > { %2597 = vst.msk [vmem:[#allocation2 + $0x39] sm:$0xff] %vm443_vm0, %v2565_v25  ;;  %v2429_v58 = vadd.f32 %v4558_v17, %v2204_v1  ;;  %v2423_v8 = vpop.f32.mrb[51].mxu0 }
 0x356   : > { %2596 = vst.msk [vmem:[#allocation2 + $0x31] sm:$0xff] %vm443_vm0, %v2564_v63  ;;  %v2424_v9 = vadd.f32 %v2423_v8, %v2199_v47 }
 0x357   : > { %v2567_v4 = vmax.f32 %v2429_v58, 0.0 }
 0x358   : > { %v2566_v22 = vmax.f32 %v2424_v9, 0.0  ;;  %v4561_v49 = vpop.f32.mrb[52].mxu0  ;;  %v2665_v15 = vld [vmem:[#allocation2 + $0x21] sm:$0xff] }
 0x359   : > { %2599 = vst.msk [vmem:[#allocation2 + $0x51] sm:$0xff] %vm443_vm0, %v2567_v4  ;;  %v2439_v2 = vadd.f32 %v4561_v49, %v2214_v6  ;;  %v2433_v10 = vpop.f32.mrb[53].mxu0  ;;  %v2664_v55 = vld [vmem:[#allocation2 + $0x19] sm:$0xff]  ;;  %v2701_v56 = vld [vmem:[#allocation2 + $0x22] sm:$0xff] }
 0x35a   : > { %2598 = vst.msk [vmem:[#allocation2 + $0x49] sm:$0xff] %vm443_vm0, %v2566_v22  ;;  %v2434_v14 = vadd.f32 %v2433_v10, %v2209_v60  ;;  %v4971_v40 = vpack.i.bf16 %v2665_v15, %v2664_v55  ;;  %v2700_v37 = vld [vmem:[#allocation2 + $0x1a] sm:$0xff] }
 0x35b   : > { %v2569_v31 = vmax.f32 %v2439_v2, 0.0  ;;  %v4976_v54 = vpack.i.bf16 %v2701_v56, %v2700_v37 }
 0x35c   : > { %v2568_v50 = vmax.f32 %v2434_v14, 0.0  ;;  %4972 = vrot.lane.b32.xlu0 %v4971_v40, %s5123_s19  ;;  %v2703_v24 = vld [vmem:[#allocation2 + $0x3a] sm:$0xff] }
 0x35d   : > { %2601 = vst.msk [vmem:[#allocation2 + $0x69] sm:$0xff] %vm443_vm0, %v2569_v31  ;;  %2924 = vrot.lane.b32.xlu1 %v2703_v24, %s5124_s14  ;;  %v2666_v30 = vld [vmem:[#allocation2 + $0x31] sm:$0xff]  ;;  %v2667_v39 = vld [vmem:[#allocation2 + $0x39] sm:$0xff] }
 0x35e   : > { %2600 = vst.msk [vmem:[#allocation2 + $0x61] sm:$0xff] %vm443_vm0, %v2568_v50  ;;  %v2702_v7 = vld [vmem:[#allocation2 + $0x32] sm:$0xff] }
 0x360   : > { %4977 = vrot.lane.b32.xlu0 %v4976_v54, %s5124_s14  ;;  %v2669_v28 = vld [vmem:[#allocation2 + $0x51] sm:$0xff] }
 0x361   : > { %v4564_v44 = vpop.f32.mrb[54].mxu0  ;;  %2778 = vrot.lane.b32.xlu1 %v2666_v30, %s5123_s19  ;;  %v2705_v52 = vld [vmem:[#allocation2 + $0x52] sm:$0xff]  ;;  %v2668_v16 = vld [vmem:[#allocation2 + $0x49] sm:$0xff] }
 0x362   : > { %v2218_v32 = vpop.f32.mrb[2].mxu1  ;;  %v2443_v38 = vpop.f32.mrb[55].mxu0  ;;  %v2704_v25 = vld [vmem:[#allocation2 + $0x4a] sm:$0xff] }
 0x363   : > { %v2219_v19 = vadd.f32 %v6344_v12, %v2218_v32  ;;  %v2220_v34 = vpop.f32.mrb[3].mxu1 }
 0x364   : > { %2780 = vrot.lane.b32.xlu0 %v2667_v39, %s5123_s19  ;;  %v2671_v8 = vld [vmem:[#allocation2 + $0x69] sm:$0xff] }
 0x365   : > { %v2444_v36 = vadd.f32 %v2443_v38, %v2219_v19  ;;  %2922 = vrot.lane.b32.xlu1 %v2702_v7, %s5124_s14  ;;  %v2707_v6 = vld [vmem:[#allocation2 + $0x6a] sm:$0xff]  ;;  %v2670_v15 = vld [vmem:[#allocation2 + $0x61] sm:$0xff] }
 0x366   : > { %v2223_v57 = vpop.f32.mrb[4].mxu1  ;;  %v2706_v55 = vld [vmem:[#allocation2 + $0x62] sm:$0xff] }
 0x367   : > { %v2570_v18 = vmax.f32 %v2444_v36, 0.0  ;;  %v2224_v46 = vadd.f32 %v6344_v12, %v2223_v57  ;;  %v2225_v0 = vpop.f32.mrb[5].mxu1 }
 0x368   : > { %2784 = vrot.lane.b32.xlu0 %v2669_v28, %s5123_s19 }
 0x369   : > { %2602 = vst.msk [vmem:[#allocation2 + $0x79] sm:$0xff] %vm443_vm0, %v2570_v18  ;;  %v2449_v42 = vadd.f32 %v4564_v44, %v2224_v46  ;;  %2928 = vrot.lane.b32.xlu1 %v2705_v52, %s5124_s14 }
 0x36b   : > { %v2571_v48 = vmax.f32 %v2449_v42, 0.0 }
 0x36c   : > { %v2228_v62 = vpop.f32.mrb[6].mxu1  ;;  %v4567_v1 = vpop.f32.mrb[56].mxu0  ;;  %2782 = vrot.lane.b32.xlu0 %v2668_v16, %s5123_s19 }
 0x36d   : > { %2603 = vst.msk [vmem:[#allocation2 + $0x81] sm:$0xff] %vm443_vm0, %v2571_v48  ;;  %v2229_v47 = vadd.f32 %v6344_v12, %v2228_v62  ;;  %v2230_v63 = vpop.f32.mrb[7].mxu1  ;;  %v2453_v17 = vpop.f32.mrb[57].mxu0  ;;  %2926 = vrot.lane.b32.xlu1 %v2704_v25, %s5124_s14 }
 0x36f   : > { %v2454_v58 = vadd.f32 %v2453_v17, %v2229_v47 }
 0x370   : > { %v2233_v9 = vpop.f32.mrb[8].mxu1  ;;  %2788 = vrot.lane.b32.xlu0 %v2671_v8, %s5123_s19  ;;  %v2672_v19 = vld [vmem:[#allocation2 + $0x79] sm:$0xff] }
 0x371   : > { %v2572_v4 = vmax.f32 %v2454_v58, 0.0  ;;  %v2234_v60 = vadd.f32 %v6344_v12, %v2233_v9  ;;  %v2235_v22 = vpop.f32.mrb[9].mxu1  ;;  %2932 = vrot.lane.b32.xlu1 %v2707_v6, %s5124_s14 }
 0x373   : > { %2604 = vst.msk [vmem:[#allocation2 + $0x91] sm:$0xff] %vm443_vm0, %v2572_v4  ;;  %v2459_v49 = vadd.f32 %v4567_v1, %v2234_v60 }
 0x374   : > { %v2238_v2 = vpop.f32.mrb[10].mxu1  ;;  %v4570_v10 = vpop.f32.mrb[58].mxu0  ;;  %2786 = vrot.lane.b32.xlu0 %v2670_v15, %s5123_s19  ;;  %v2673_v50 = vld [vmem:[#allocation2 + $0x81] sm:$0xff] }
 0x375   : > { %v2573_v14 = vmax.f32 %v2459_v49, 0.0  ;;  %v2239_v40 = vadd.f32 %v6344_v12, %v2238_v2  ;;  %v2240_v31 = vpop.f32.mrb[11].mxu1  ;;  %v2463_v37 = vpop.f32.mrb[59].mxu0  ;;  %2930 = vrot.lane.b32.xlu1 %v2706_v55, %s5124_s14  ;;  %v2709_v54 = vld [vmem:[#allocation2 + $0x82] sm:$0xff]  ;;  %v2708_v7 = vld [vmem:[#allocation2 + $0x7a] sm:$0xff] }
 0x377   : > { %2605 = vst.msk [vmem:[#allocation2 + $0x99] sm:$0xff] %vm443_vm0, %v2573_v14  ;;  %v2464_v56 = vadd.f32 %v2463_v37, %v2239_v40 }
 0x378   : > { %v2243_v24 = vpop.f32.mrb[12].mxu1  ;;  %2792 = vrot.lane.b32.xlu0 %v2673_v50, %s5123_s19 }
 0x379   : > { %v2574_v30 = vmax.f32 %v2464_v56, 0.0  ;;  %v2244_v44 = vadd.f32 %v6344_v12, %v2243_v24  ;;  %v2245_v32 = vpop.f32.mrb[13].mxu1  ;;  %2936 = vrot.lane.b32.xlu1 %v2709_v54, %s5124_s14 }
 0x37a   : > { %v2674_v25 = vld [vmem:[#allocation2 + $0x91] sm:$0xff] }
 0x37b   : > { %2606 = vst.msk [vmem:[#allocation2 + $0xa9] sm:$0xff] %vm443_vm0, %v2574_v30  ;;  %v2469_v38 = vadd.f32 %v4570_v10, %v2244_v44 }
 0x37c   : > { %v2248_v34 = vpop.f32.mrb[14].mxu1  ;;  %v4573_v39 = vpop.f32.mrb[60].mxu0  ;;  %2790 = vrot.lane.b32.xlu0 %v2672_v19, %s5123_s19 }
 0x37d   : > { %v2575_v36 = vmax.f32 %v2469_v38, 0.0  ;;  %v2249_v57 = vadd.f32 %v6344_v12, %v2248_v34  ;;  %v2250_v18 = vpop.f32.mrb[15].mxu1  ;;  %v2473_v46 = vpop.f32.mrb[61].mxu0  ;;  %2934 = vrot.lane.b32.xlu1 %v2708_v7, %s5124_s14 }
 0x37e   : > { %v2675_v0 = vld [vmem:[#allocation2 + $0x99] sm:$0xff] }
 0x37f   : > { %2607 = vst.msk [vmem:[#allocation2 + $0xb1] sm:$0xff] %vm443_vm0, %v2575_v36  ;;  %v2474_v28 = vadd.f32 %v2473_v46, %v2249_v57  ;;  %v2711_v42 = vld [vmem:[#allocation2 + $0x9a] sm:$0xff]  ;;  %v2710_v17 = vld [vmem:[#allocation2 + $0x92] sm:$0xff] }
 0x380   : > { %v2253_v52 = vpop.f32.mrb[16].mxu1  ;;  %2796 = vrot.lane.b32.xlu0 %v2675_v0, %s5123_s19 }
 0x381   : > { %v2576_v48 = vmax.f32 %v2474_v28, 0.0  ;;  %v2254_v16 = vadd.f32 %v6344_v12, %v2253_v52  ;;  %v2255_v62 = vpop.f32.mrb[17].mxu1  ;;  %2940 = vrot.lane.b32.xlu1 %v2711_v42, %s5124_s14 }
 0x382   : > { %v2676_v14 = vld [vmem:[#allocation2 + $0xa9] sm:$0xff] }
 0x383   : > { %2608 = vst.msk [vmem:[#allocation2 + $0xc1] sm:$0xff] %vm443_vm0, %v2576_v48  ;;  %v2479_v1 = vadd.f32 %v4573_v39, %v2254_v16 }
 0x384   : > { %v2258_v47 = vpop.f32.mrb[18].mxu1  ;;  %v4576_v63 = vpop.f32.mrb[62].mxu0  ;;  %2794 = vrot.lane.b32.xlu0 %v2674_v25, %s5123_s19 }
 0x385   : > { %v2577_v58 = vmax.f32 %v2479_v1, 0.0  ;;  %v2259_v8 = vadd.f32 %v6344_v12, %v2258_v47  ;;  %v2260_v9 = vpop.f32.mrb[19].mxu1  ;;  %v2483_v6 = vpop.f32.mrb[63].mxu0  ;;  %2938 = vrot.lane.b32.xlu1 %v2710_v17, %s5124_s14 }
 0x386   : > { %v2677_v4 = vld [vmem:[#allocation2 + $0xb1] sm:$0xff] }
 0x387   : > { %2609 = vst.msk [vmem:[#allocation2 + $0xc9] sm:$0xff] %vm443_vm0, %v2577_v58  ;;  %v2484_v60 = vadd.f32 %v2483_v6, %v2259_v8  ;;  %v2713_v49 = vld [vmem:[#allocation2 + $0xb2] sm:$0xff]  ;;  %v2712_v37 = vld [vmem:[#allocation2 + $0xaa] sm:$0xff] }
 0x388   : > { %v2263_v22 = vpop.f32.mrb[20].mxu1  ;;  %2800 = vrot.lane.b32.xlu0 %v2677_v4, %s5123_s19 }
 0x389   : > { %v2578_v15 = vmax.f32 %v2484_v60, 0.0  ;;  %v2264_v2 = vadd.f32 %v6344_v12, %v2263_v22  ;;  %v2265_v10 = vpop.f32.mrb[21].mxu1  ;;  %2944 = vrot.lane.b32.xlu1 %v2713_v49, %s5124_s14 }
 0x38a   : > { %v2678_v36 = vld [vmem:[#allocation2 + $0xc1] sm:$0xff] }
 0x38b   : > { %2610 = vst.msk [vmem:[#allocation2 + $0xd9] sm:$0xff] %vm443_vm0, %v2578_v15  ;;  %v2489_v55 = vadd.f32 %v4576_v63, %v2264_v2  ;;  %v3384_v2 = vld [vmem:[%s7253_s7] sm:$0xff]  ;;  %v3385_v10 = vld [vmem:[%s7253_s7 + $0x8] sm:$0xff] }
 0x38c   : > { %v2268_v40 = vpop.f32.mrb[22].mxu1  ;;  %v4579_v31 = vpop.f32.mrb[64].mxu0  ;;  %2798 = vrot.lane.b32.xlu0 %v2676_v14, %s5123_s19  ;;  %v4727_v14 = vpack.c.bf16 %v3385_v10, %v3384_v2  ;;  %v3398_v10 = vld [vmem:[%s7253_s7 + $0x70] sm:$0xff] }
 0x38d   : > { %v2579_v56 = vmax.f32 %v2489_v55, 0.0  ;;  %v2269_v50 = vadd.f32 %v6344_v12, %v2268_v40  ;;  %v2270_v24 = vpop.f32.mrb[23].mxu1  ;;  %v2493_v54 = vpop.f32.mrb[65].mxu0  ;;  %2942 = vrot.lane.b32.xlu1 %v2712_v37, %s5124_s14 }
 0x38e   : > { %v2679_v30 = vld [vmem:[#allocation2 + $0xc9] sm:$0xff]  ;;  %4728 = vmatpush1.bf16.msra.mxu1 %v4727_v14 }
 0x38f   : > { %2611 = vst.msk [vmem:[#allocation2 + $0xe1] sm:$0xff] %vm443_vm0, %v2579_v56  ;;  %v2494_v44 = vadd.f32 %v2493_v54, %v2269_v50  ;;  %v2715_v38 = vld [vmem:[#allocation2 + $0xca] sm:$0xff]  ;;  %v2714_v46 = vld [vmem:[#allocation2 + $0xc2] sm:$0xff]  ;;  %v3387_v54 = vld [vmem:[%s7253_s7 + $0x18] sm:$0xff] }
 0x390   : > { %v2273_v32 = vpop.f32.mrb[24].mxu1  ;;  %2804 = vrot.lane.b32.xlu0 %v2679_v30, %s5123_s19  ;;  %v3386_v24 = vld [vmem:[%s7253_s7 + $0x10] sm:$0xff] }
 0x391   : > { %v2580_v19 = vmax.f32 %v2494_v44, 0.0  ;;  %v2274_v34 = vadd.f32 %v6344_v12, %v2273_v32  ;;  %v2275_v39 = vpop.f32.mrb[25].mxu1  ;;  %2948 = vrot.lane.b32.xlu1 %v2715_v38, %s5124_s14  ;;  %v4730_v44 = vpack.c.bf16 %v3387_v54, %v3386_v24 }
 0x392   : > { %v2680_v16 = vld [vmem:[#allocation2 + $0xd9] sm:$0xff] }
 0x393   : > { %2612 = vst.msk [vmem:[#allocation2 + $0xf1] sm:$0xff] %vm443_vm0, %v2580_v19  ;;  %v2499_v7 = vadd.f32 %v4579_v31, %v2274_v34  ;;  %v7327_v31 = vmov 0.0|0.0  }
 0x394   : > { %v2278_v57 = vpop.f32.mrb[26].mxu1  ;;  %v4582_v18 = vpop.f32.mrb[66].mxu0  ;;  %2802 = vrot.lane.b32.xlu0 %v2678_v36, %s5123_s19  ;;  %4729 = vmatprep.subr.bf16.mxu1 %v7327_v31  ;;  %v3388_v36 = vld [vmem:[%s7253_s7 + $0x20] sm:$0xff] }
 0x395   : > { %v2581_v0 = vmax.f32 %v2499_v7, 0.0  ;;  %v2279_v28 = vadd.f32 %v6344_v12, %v2278_v57  ;;  %v2280_v52 = vpop.f32.mrb[27].mxu1  ;;  %v2503_v42 = vpop.f32.mrb[67].mxu0  ;;  %2946 = vrot.lane.b32.xlu1 %v2714_v46, %s5124_s14  ;;  %4731 = vmatpush1.bf16.msra.mxu1 %v4730_v44  ;;  %v3389_v57 = vld [vmem:[%s7253_s7 + $0x28] sm:$0xff]  ;;  %v3400_v44 = vld [vmem:[%s7253_s7 + $0x80] sm:$0xff] }
 0x396   : > { %v2681_v1 = vld [vmem:[#allocation2 + $0xe1] sm:$0xff]  ;;  %4732 = vmatprep.subr.bf16.mxu1 %v7327_v31  ;;  %v4733_v46 = vpack.c.bf16 %v3389_v57, %v3388_v36  ;;  %v3391_v52 = vld [vmem:[%s7253_s7 + $0x38] sm:$0xff] }
 0x397   : > { %2613 = vst.msk [vmem:[#allocation2 + $0xf9] sm:$0xff] %vm443_vm0, %v2581_v0  ;;  %v2504_v48 = vadd.f32 %v2503_v42, %v2279_v28  ;;  %v2717_v8 = vld [vmem:[#allocation2 + $0xe2] sm:$0xff]  ;;  %v2716_v60 = vld [vmem:[#allocation2 + $0xda] sm:$0xff]  ;;  %v3390_v28 = vld [vmem:[%s7253_s7 + $0x30] sm:$0xff] }
 0x398   : > { %v2283_v62 = vpop.f32.mrb[28].mxu1  ;;  %2806 = vrot.lane.b32.xlu0 %v2680_v16, %s5123_s19  ;;  %v4736_v42 = vpack.c.bf16 %v3391_v52, %v3390_v28  ;;  %v3393_v16 = vld [vmem:[%s7253_s7 + $0x48] sm:$0xff] }
 0x399   : > { %v2582_v25 = vmax.f32 %v2504_v48, 0.0  ;;  %v2284_v47 = vadd.f32 %v6344_v12, %v2283_v62  ;;  %v2285_v63 = vpop.f32.mrb[29].mxu1  ;;  %2808 = vrot.lane.b32.xlu1 %v2681_v1, %s5123_s19  ;;  %4734 = vmatpush1.bf16.msra.mxu1 %v4733_v46  ;;  %v3392_v48 = vld [vmem:[%s7253_s7 + $0x40] sm:$0xff]  ;;  %v3403_v46 = vld [vmem:[%s7253_s7 + $0x98] sm:$0xff] }
 0x39a   : > { %v2682_v22 = vld [vmem:[#allocation2 + $0xf1] sm:$0xff]  ;;  %4735 = vmatprep.subr.bf16.mxu1 %v7327_v31  ;;  %v4739_v62 = vpack.c.bf16 %v3393_v16, %v3392_v48 }
 0x39b   : > { %2614 = vst.msk [vmem:[#allocation2 + $0x109] sm:$0xff] %vm443_vm0, %v2582_v25  ;;  %v2509_v17 = vadd.f32 %v4582_v18, %v2284_v47  ;;  %v3394_v25 = vld [vmem:[%s7253_s7 + $0x50] sm:$0xff]  ;;  %v3395_v47 = vld [vmem:[%s7253_s7 + $0x58] sm:$0xff] }
 0x39c   : > { %v2288_v58 = vpop.f32.mrb[30].mxu1  ;;  %v4742_v63 = vpack.c.bf16 %v3395_v47, %v3394_v25  ;;  %v3404_v47 = vld [vmem:[%s7253_s7 + $0xa0] sm:$0xff] }
 0x39d   : > { %v2583_v9 = vmax.f32 %v2509_v17, 0.0  ;;  %v2290_v6 = vpop.f32.mrb[31].mxu1  ;;  %2952 = vrot.lane.b32.xlu1 %v2717_v8, %s5124_s14  ;;  %v2289_v37 = vadd.f32 %v6344_v12, %v2288_v58  ;;  %4737 = vmatpush1.bf16.msra.mxu1 %v4736_v42 }
 0x39e   : > { %v2719_v4 = vld [vmem:[#allocation2 + $0xfa] sm:$0xff]  ;;  %v2718_v15 = vld [vmem:[#allocation2 + $0xf2] sm:$0xff]  ;;  %4738 = vmatprep.subr.bf16.mxu1 %v7327_v31  ;;  %v3397_v6 = vld [vmem:[%s7253_s7 + $0x68] sm:$0xff] }
 0x39f   : > { %2615 = vst.msk [vmem:[#allocation2 + $0x111] sm:$0xff] %vm443_vm0, %v2583_v9  ;;  %2956 = vrot.lane.b32.xlu0 %v2719_v4, %s5124_s14  ;;  %v2683_v49 = vld [vmem:[#allocation2 + $0xf9] sm:$0xff] }
 0x3a0   : > { %v3396_v9 = vld [vmem:[%s7253_s7 + $0x60] sm:$0xff] }
 0x3a1   : > { %2950 = vrot.lane.b32.xlu1 %v2716_v60, %s5124_s14  ;;  %4740 = vmatpush1.bf16.msra.mxu1 %v4739_v62  ;;  %v4745_v60 = vpack.c.bf16 %v3397_v6, %v3396_v9 }
 0x3a2   : > { %v2684_v55 = vld [vmem:[#allocation2 + $0x109] sm:$0xff]  ;;  %4741 = vmatprep.subr.bf16.mxu1 %v7327_v31 }
 0x3a3   : > { %2810 = vrot.lane.b32.xlu0 %v2682_v22, %s5123_s19 }
 0x3a5   : > { %2812 = vrot.lane.b32.xlu1 %v2683_v49, %s5123_s19  ;;  %4743 = vmatpush1.bf16.msra.mxu1 %v4742_v63  ;;  %v6488_v49 = vpop.permute.xlu0 %4962  ;;  %v3405_v63 = vld [vmem:[%s7253_s7 + $0xa8] sm:$0xff] }
 0x3a6   : > { %v2685_v40 = vld [vmem:[#allocation2 + $0x111] sm:$0xff]  ;;  %4744 = vmatprep.subr.bf16.mxu1 %v7327_v31 }
 0x3a7   : > { %2954 = vrot.lane.b32.xlu0 %v2718_v15, %s5124_s14  ;;  %v2720_v50 = vld [vmem:[#allocation2 + $0x10a] sm:$0xff]  ;;  %v2721_v7 = vld [vmem:[#allocation2 + $0x112] sm:$0xff] }
 0x3a9   : > { %2814 = vrot.lane.b32.xlu1 %v2684_v55, %s5123_s19  ;;  %4746 = vmatpush1.bf16.msra.mxu1 %v4745_v60  ;;  %v3399_v55 = vld [vmem:[%s7253_s7 + $0x78] sm:$0xff] }
 0x3aa   : > { %4747 = vmatprep.subr.bf16.mxu1 %v7327_v31 }
 0x3ab   : > { %2816 = vrot.lane.b32.xlu0 %v2685_v40, %s5123_s19  ;;  %v4748_v40 = vpack.c.bf16 %v3399_v55, %v3398_v10  ;;  %v3406_v10 = vld [vmem:[%s7253_s7 + $0xb0] sm:$0xff]  ;;  %v3407_v55 = vld [vmem:[%s7253_s7 + $0xb8] sm:$0xff] }
 0x3ac   : > { %v4585_v56 = vpop.f32.mrb[68].mxu0 }
 0x3ad   : > { %v2513_v30 = vpop.f32.mrb[69].mxu0  ;;  %2958 = vrot.lane.b32.xlu1 %v2720_v50, %s5124_s14  ;;  %4749 = vmatpush1.bf16.msra.mxu1 %v4748_v40  ;;  %v4760_v40 = vpack.c.bf16 %v3407_v55, %v3406_v10 }
 0x3ae   : > { %v2514_v32 = vadd.f32 %v2513_v30, %v2289_v37  ;;  %v2293_v38 = vpop.f32.mrb[32].mxu1  ;;  %v6499_v30 = vpop.permute.xlu0 %4967  ;;  %4750 = vmatprep.subr.bf16.mxu1 %v7327_v31 }
 0x3af   : > { %v2294_v19 = vadd.f32 %v6344_v12, %v2293_v38  ;;  %v2295_v34 = vpop.f32.mrb[33].mxu1 }
 0x3b0   : > { %v2584_v39 = vmax.f32 %v2514_v32, 0.0  ;;  %v3401_v32 = vld [vmem:[%s7253_s7 + $0x88] sm:$0xff] }
 0x3b1   : > { %v2519_v18 = vadd.f32 %v4585_v56, %v2294_v19  ;;  %2960 = vrot.lane.b32.xlu1 %v2721_v7, %s5124_s14  ;;  %v4751_v19 = vpack.c.bf16 %v3401_v32, %v3400_v44 }
 0x3b2   : > { %2616 = vst.msk [vmem:[#allocation2 + $0x121] sm:$0xff] %vm443_vm0, %v2584_v39 }
 0x3b3   : > { %v2585_v0 = vmax.f32 %v2519_v18, 0.0  ;;  %4752 = vmatpush1.bf16.msra.mxu1 %v4751_v19  ;;  %v3402_v18 = vld [vmem:[%s7253_s7 + $0x90] sm:$0xff] }
 0x3b4   : > { %4753 = vmatprep.subr.bf16.mxu1 %v7327_v31  ;;  %v4754_v28 = vpack.c.bf16 %v3403_v46, %v3402_v18 }
 0x3b5   : > { %2617 = vst.msk [vmem:[#allocation2 + $0x129] sm:$0xff] %vm443_vm0, %v2585_v0 }
 0x3b7   : > { %4755 = vmatpush1.bf16.msra.mxu1 %v4754_v28 }
 0x3b8   : > { %4756 = vmatprep.subr.bf16.mxu1 %v7327_v31 }
 0x3b9   : > { %v2686_v1 = vld [vmem:[#allocation2 + $0x121] sm:$0xff] }
 0x3ba   : > { %2818 = vrot.lane.b32.xlu0 %v2686_v1, %s5123_s19 }
 0x3bc   : > { %v2687_v17 = vld [vmem:[#allocation2 + $0x129] sm:$0xff] }
 0x3bd   : > { %v2722_v58 = vld [vmem:[#allocation2 + $0x122] sm:$0xff]  ;;  %2820 = vrot.lane.b32.xlu1 %v2687_v17, %s5123_s19  ;;  %v2723_v22 = vld [vmem:[#allocation2 + $0x12a] sm:$0xff] }
 0x3be   : > { %v2298_v8 = vpop.f32.mrb[34].mxu1  ;;  %2962 = vrot.lane.b32.xlu0 %v2722_v58, %s5124_s14 }
 0x3bf   : > { %v2300_v4 = vpop.f32.mrb[35].mxu1  ;;  %v2299_v15 = vadd.f32 %v6344_v12, %v2298_v8  ;;  %v4757_v8 = vpack.c.bf16 %v3405_v63, %v3404_v47 }
 0x3c1   : > { %4758 = vmatpush1.bf16.msra.mxu1 %v4757_v8 }
 0x3c2   : > { %2964 = vrot.lane.b32.xlu0 %v2723_v22, %s5124_s14  ;;  %4759 = vmatprep.subr.bf16.mxu1 %v7327_v31 }
 0x3c4   : > { %v4588_v2 = vpop.f32.mrb[70].mxu0 }
 0x3c5   : > { %v2523_v14 = vpop.f32.mrb[71].mxu0  ;;  %4761 = vmatpush1.bf16.msra.mxu1 %v4760_v40 }
 0x3c6   : > { %v2524_v37 = vadd.f32 %v2523_v14, %v2299_v15  ;;  %v2303_v56 = vpop.f32.mrb[36].mxu1  ;;  %4762 = vmatprep.subr.bf16.mxu1 %v7327_v31 }
 0x3c7   : > { %v2304_v50 = vadd.f32 %v6344_v12, %v2303_v56  ;;  %v2305_v24 = vpop.f32.mrb[37].mxu1 }
 0x3c8   : > { %v2586_v54 = vmax.f32 %v2524_v37, 0.0  ;;  %v3408_v24 = vld [vmem:[%s7253_s7 + $0xc0] sm:$0xff] }
 0x3c9   : > { %v2529_v38 = vadd.f32 %v4588_v2, %v2304_v50 }
 0x3ca   : > { %2618 = vst.msk [vmem:[#allocation2 + $0x139] sm:$0xff] %vm443_vm0, %v2586_v54  ;;  %v2308_v34 = vpop.f32.mrb[38].mxu1  ;;  %v3409_v54 = vld [vmem:[%s7253_s7 + $0xc8] sm:$0xff] }
 0x3cb   : > { %v2587_v39 = vmax.f32 %v2529_v38, 0.0  ;;  %v2309_v7 = vadd.f32 %v6344_v12, %v2308_v34  ;;  %v2310_v36 = vpop.f32.mrb[39].mxu1  ;;  %v4763_v19 = vpack.c.bf16 %v3409_v54, %v3408_v24  ;;  %v3414_v54 = vld [vmem:[%s7253_s7 + $0xf0] sm:$0xff] }
 0x3cc   : > { %v4591_v57 = vpop.f32.mrb[72].mxu0 }
 0x3cd   : > { %2619 = vst.msk [vmem:[#allocation2 + $0x141] sm:$0xff] %vm443_vm0, %v2587_v39  ;;  %v2533_v0 = vpop.f32.mrb[73].mxu0  ;;  %4764 = vmatpush1.bf16.msra.mxu1 %v4763_v19 }
 0x3ce   : > { %v2534_v52 = vadd.f32 %v2533_v0, %v2309_v7  ;;  %v2313_v42 = vpop.f32.mrb[40].mxu1  ;;  %v6518_v48 = vpop.permute.xlu0 %4972  ;;  %4765 = vmatprep.subr.bf16.mxu1 %v7327_v31 }
 0x3cf   : > { %v2314_v16 = vadd.f32 %v6344_v12, %v2313_v42  ;;  %v2315_v62 = vpop.f32.mrb[41].mxu1  ;;  %v6521_v1 = vpop.permute.xlu1 %2924  ;;  %v3410_v42 = vld [vmem:[%s7253_s7 + $0xd0] sm:$0xff] }
 0x3d0   : > { %v2588_v25 = vmax.f32 %v2534_v52, 0.0 }
 0x3d1   : > { %v2539_v17 = vadd.f32 %v4591_v57, %v2314_v16  ;;  %v2688_v58 = vld [vmem:[#allocation2 + $0x139] sm:$0xff] }
 0x3d2   : > { %2620 = vst.msk [vmem:[#allocation2 + $0x151] sm:$0xff] %vm443_vm0, %v2588_v25  ;;  %v6531_v9 = vpop.permute.xlu0 %4977  ;;  %2822 = vrot.lane.b32.xlu1 %v2688_v58, %s5123_s19  ;;  %v2318_v6 = vpop.f32.mrb[42].mxu1  ;;  %v3411_v16 = vld [vmem:[%s7253_s7 + $0xd8] sm:$0xff]  ;;  %v3417_v58 = vld [vmem:[%s7253_s7 + $0x108] sm:$0xff] }
 0x3d3   : > { %v2589_v4 = vmax.f32 %v2539_v17, 0.0  ;;  %v2320_v60 = vpop.f32.mrb[43].mxu1  ;;  %v6534_v22 = vpop.permute.xlu1 %2778  ;;  %v2319_v56 = vadd.f32 %v6344_v12, %v2318_v6  ;;  %v4766_v25 = vpack.c.bf16 %v3411_v16, %v3410_v42  ;;  %v3416_v17 = vld [vmem:[%s7253_s7 + $0x100] sm:$0xff] }
 0x3d4   : > { %v2689_v15 = vld [vmem:[#allocation2 + $0x141] sm:$0xff]  ;;  %v4774_v8 = vpack.c.bf16 %v3417_v58, %v3416_v17 }
 0x3d5   : > { %v2724_v2 = vld [vmem:[#allocation2 + $0x13a] sm:$0xff]  ;;  %2621 = vst.msk [vmem:[#allocation2 + $0x159] sm:$0xff] %vm443_vm0, %v2589_v4  ;;  %2824 = vrot.lane.b32.xlu0 %v2689_v15, %s5123_s19  ;;  %v2725_v38 = vld [vmem:[#allocation2 + $0x142] sm:$0xff]  ;;  %4767 = vmatpush1.bf16.msra.mxu1 %v4766_v25 }
 0x3d6   : > { %v6545_v14 = vpop.permute.xlu0 %2780  ;;  %2966 = vrot.lane.b32.xlu1 %v2724_v2, %s5124_s14  ;;  %v3412_v6 = vld [vmem:[%s7253_s7 + $0xe0] sm:$0xff]  ;;  %v3413_v4 = vld [vmem:[%s7253_s7 + $0xe8] sm:$0xff]  ;;  %4768 = vmatprep.subr.bf16.mxu1 %v7327_v31 }
 0x3d7   : > { %v6548_v37 = vpop.permute.xlu1 %2922  ;;  %v4769_v15 = vpack.c.bf16 %v3413_v4, %v3412_v6  ;;  %4775 = vmatprep.subr.bf16.mxu0 %v4774_v8  ;;  %v2629_v42 = vld [vmem:[#allocation2 + $0x20] sm:$0xff] }
 0x3d8   : > { %v4594_v50 = vpop.f32.mrb[74].mxu0  ;;  %4777 = vmatpush3.bf16.msra.mxu0 %v4774_v8 }
 0x3d9   : > { %v2543_v44 = vpop.f32.mrb[75].mxu0  ;;  %v2690_v32 = vld [vmem:[#allocation2 + $0x151] sm:$0xff]  ;;  %4770 = vmatpush1.bf16.msra.mxu1 %v4769_v15 }
 0x3da   : > { %v2544_v34 = vadd.f32 %v2543_v44, %v2319_v56  ;;  %2826 = vrot.lane.b32.xlu0 %v2690_v32, %s5123_s19  ;;  %v6559_v39 = vpop.permute.xlu0 %2784  ;;  %2968 = vrot.lane.b32.xlu1 %v2725_v38, %s5124_s14  ;;  %v2323_v7 = vpop.f32.mrb[44].mxu1  ;;  %v3418_v56 = vld [vmem:[%s7253_s7 + $0x110] sm:$0xff]  ;;  %v3415_v44 = vld [vmem:[%s7253_s7 + $0xf8] sm:$0xff] }
 0x3db   : > { %v2324_v36 = vadd.f32 %v6344_v12, %v2323_v7  ;;  %v2325_v57 = vpop.f32.mrb[45].mxu1  ;;  %v6563_v18 = vpop.permute.xlu1 %2928  ;;  %4771 = vmatprep.subr.bf16.mxu1 %v7327_v31  ;;  %v4772_v38 = vpack.c.bf16 %v3415_v44, %v3414_v54  ;;  %v4975_v7 = vunpack.i.h.bf16 %v6518_v48  ;;  %v4979_v31 = vunpack.i.l.bf16 %v6531_v9  ;;  %v2631_v15 = vld [vmem:[#allocation2 + $0x38] sm:$0xff] }
 0x3dc   : > { %v2590_v46 = vmax.f32 %v2544_v34, 0.0  ;;  %v2726_v0 = vld [vmem:[#allocation2 + $0x152] sm:$0xff]  ;;  %v2727_v60 = vld [vmem:[#allocation2 + $0x15a] sm:$0xff] }
 0x3dd   : > { %v2691_v28 = vld [vmem:[#allocation2 + $0x159] sm:$0xff]  ;;  %v2549_v52 = vadd.f32 %v4594_v50, %v2324_v36  ;;  %v4974_v36 = vunpack.i.l.bf16 %v6518_v48  ;;  %4773 = vmatpush1.bf16.msra.mxu1 %v4772_v38  ;;  %v3025_v48 = vsel %vm443_vm0, %v2629_v42, %v4975_v7  ;;  %v2635_v42 = vld [vmem:[#allocation2 + $0x68] sm:$0xff] }
 0x3de   : > { %2622 = vst.msk [vmem:[#allocation2 + $0x169] sm:$0xff] %vm443_vm0, %v2590_v46  ;;  %2970 = vrot.lane.b32.xlu0 %v2726_v0, %s5124_s14  ;;  %v6574_v62 = vpop.permute.xlu0 %2782  ;;  %2828 = vrot.lane.b32.xlu1 %v2691_v28, %s5123_s19  ;;  %v3419_v50 = vld [vmem:[%s7253_s7 + $0x118] sm:$0xff]  ;;  %v4980_v0 = vunpack.i.h.bf16 %v6531_v9  ;;  %v2630_v28 = vld [vmem:[#allocation2 + $0x30] sm:$0xff] }
 0x3df   : > { %v2591_v47 = vmax.f32 %v2549_v52, 0.0  ;;  %v6577_v63 = vpop.permute.xlu1 %2926  ;;  %v4778_v24 = vpack.c.bf16 %v3419_v50, %v3418_v56  ;;  %v2628_v52 = vld [vmem:[#allocation2 + $0x18] sm:$0xff]  ;;  %v3026_v16 = vsel %vm443_vm0, %v2630_v28, %v6534_v22  ;;  %v3027_v56 = vsel %vm443_vm0, %v2631_v15, %v6545_v14  ;;  %v2633_v14 = vld [vmem:[#allocation2 + $0x50] sm:$0xff] }
 0x3e0   : > { %v6630_v17 = vsel %vm1677_vm2, %v3026_v16, %v6548_v37  ;;  %v6636_v8 = vsel %vm1677_vm2, %v3025_v48, %v4980_v0 }
 0x3e1   : > { %2623 = vst.msk [vmem:[#allocation2 + $0x171] sm:$0xff] %vm443_vm0, %v2591_v47  ;;  %4779 = vmatprep.subr.bf16.mxu0 %v4778_v24  ;;  %v3024_v47 = vsel %vm443_vm0, %v2628_v52, %v4974_v36 }
 0x3e2   : > { %2972 = vrot.lane.b32.xlu0 %v2727_v60, %s5124_s14  ;;  %v6594_v2 = vpop.permute.xlu0 %2788  ;;  %v2328_v10 = vpop.f32.mrb[46].mxu1  ;;  %4781 = vmatpush3.bf16.msra.mxu0 %v4778_v24  ;;  %v6633_v58 = vsel %vm1677_vm2, %v3024_v47, %v4979_v31 }
 0x3e3   : > { %v2330_v55 = vpop.f32.mrb[47].mxu1  ;;  %v6596_v40 = vpop.permute.xlu1 %2932  ;;  %v2329_v4 = vadd.f32 %v6344_v12, %v2328_v10  ;;  %v4981_v37 = vpack.i.bf16 %v6636_v8, %v6633_v58  ;;  %v2632_v10 = vld [vmem:[#allocation2 + $0x48] sm:$0xff]  ;;  %v3031_v16 = vsel %vm443_vm0, %v2635_v42, %v6594_v2 }
 0x3e5   : > { %v2692_v32 = vld [vmem:[#allocation2 + $0x169] sm:$0xff] }
 0x3e6   : > { %v6611_v19 = vpop.permute.xlu0 %2786  ;;  %2830 = vrot.lane.b32.xlu1 %v2692_v32, %s5123_s19 }
 0x3e7   : > { %v6614_v34 = vpop.permute.xlu1 %2930 }
 0x3e8   : > { %v2693_v57 = vld [vmem:[#allocation2 + $0x171] sm:$0xff] }
 0x3e9   : > { %v2728_v46 = vld [vmem:[#allocation2 + $0x16a] sm:$0xff]  ;;  %2832 = vrot.lane.b32.xlu0 %v2693_v57, %s5123_s19  ;;  %v2729_v22 = vld [vmem:[#allocation2 + $0x172] sm:$0xff]  ;;  %v6650_v57 = vsel %vm1677_vm2, %v3027_v56, %v6521_v1 }
 0x3ea   : > { %2974 = vrot.lane.b32.xlu1 %v2728_v46, %s5124_s14  ;;  %v2793_v9 = vpop.permute.xlu0 %2792  ;;  %v3028_v46 = vsel %vm443_vm0, %v2632_v10, %v6574_v62  ;;  %v4986_v47 = vpack.i.bf16 %v6650_v57, %v6630_v17 }
 0x3eb   : > { %v6624_v25 = vpop.permute.xlu1 %2936  ;;  %v6661_v52 = vsel %vm1677_vm2, %v3028_v46, %v6577_v63 }
 0x3ed   : > { %3224 = vrot.lane.b32.xlu0 %v6630_v17, %s5124_s14 }
 0x3ee   : > { %2976 = vrot.lane.b32.xlu1 %v2729_v22, %s5124_s14  ;;  %v2791_v50 = vpop.permute.xlu0 %2790 }
 0x3ef   : > { %v2935_v6 = vpop.permute.xlu1 %2934 }
 0x3f0   : > { %v4597_v60 = vpop.f32.mrb[76].mxu0 }
 0x3f1   : > { %v2553_v55 = vpop.f32.mrb[77].mxu0 }
 0x3f2   : > { %v2554_v24 = vadd.f32 %v2553_v55, %v2329_v4  ;;  %4982 = vrot.lane.b32.xlu1 %v4981_v37, %s5126_s27  ;;  %v2333_v54 = vpop.f32.mrb[48].mxu1  ;;  %v2797_v31 = vpop.permute.xlu0 %2796  ;;  %v2634_v4 = vld [vmem:[#allocation2 + $0x60] sm:$0xff] }
 0x3f3   : > { %v2334_v44 = vadd.f32 %v6344_v12, %v2333_v54  ;;  %v2335_v32 = vpop.f32.mrb[49].mxu1  ;;  %v2941_v38 = vpop.permute.xlu1 %2940  ;;  %v3029_v12 = vsel %vm443_vm0, %v2633_v14, %v6559_v39  ;;  %v3030_v15 = vsel %vm443_vm0, %v2634_v4, %v6611_v19  ;;  %v2638_v14 = vld [vmem:[#allocation2 + $0x90] sm:$0xff] }
 0x3f4   : > { %v2592_v7 = vmax.f32 %v2554_v24, 0.0  ;;  %v6668_v1 = vsel %vm1677_vm2, %v3029_v12, %v6563_v18  ;;  %v6680_v18 = vsel %vm1677_vm2, %v3031_v16, %v6596_v40  ;;  %v2637_v40 = vld [vmem:[#allocation2 + $0x80] sm:$0xff]  ;;  %v6694_v24 = vsel %vm1677_vm2, %v3030_v15, %v6614_v34  ;;  %v2639_v34 = vld [vmem:[#allocation2 + $0x98] sm:$0xff]  ;;  %v2641_v16 = vld [vmem:[#allocation2 + $0xb0] sm:$0xff] }
 0x3f5   : > { %v2559_v36 = vadd.f32 %v4597_v60, %v2334_v44  ;;  %v4991_v62 = vpack.i.bf16 %v6668_v1, %v6661_v52  ;;  %v2636_v60 = vld [vmem:[#allocation2 + $0x78] sm:$0xff]  ;;  %v3033_v56 = vsel %vm443_vm0, %v2637_v40, %v2793_v9  ;;  %v2643_v40 = vld [vmem:[#allocation2 + $0xc8] sm:$0xff] }
 0x3f6   : > { %2624 = vst.msk [vmem:[#allocation2 + $0x181] sm:$0xff] %vm443_vm0, %v2592_v7  ;;  %3226 = vrot.lane.b32.xlu1 %v6650_v57, %s5124_s14  ;;  %v2795_v48 = vpop.permute.xlu0 %2794  ;;  %v3032_v55 = vsel %vm443_vm0, %v2636_v60, %v2791_v50  ;;  %v6705_v19 = vsel %vm1677_vm2, %v3033_v56, %v6624_v25  ;;  %v4996_v7 = vpack.i.bf16 %v6680_v18, %v6694_v24  ;;  %v2696_v25 = vld [vmem:[#allocation2 + $0x199] sm:$0xff] }
 0x3f7   : > { %v2593_v0 = vmax.f32 %v2559_v36, 0.0  ;;  %v2939_v28 = vpop.permute.xlu1 %2938  ;;  %v6697_v54 = vsel %vm1677_vm2, %v3032_v55, %v2935_v6  ;;  %v3035_v6 = vsel %vm443_vm0, %v2639_v34, %v2797_v31  ;;  %v3034_v12 = vsel %vm443_vm0, %v2638_v14, %v2795_v48  ;;  %v2732_v48 = vld [vmem:[#allocation2 + $0x19a] sm:$0xff]  ;;  %v2733_v14 = vld [vmem:[#allocation2 + $0x1a2] sm:$0xff] }
 0x3f8   : > { %v5001_v9 = vpack.i.bf16 %v6705_v19, %v6697_v54  ;;  %v6715_v46 = vsel %vm1677_vm2, %v3035_v6, %v2941_v38  ;;  %v6726_v38 = vsel %vm1677_vm2, %v3034_v12, %v2939_v28 }
 0x3f9   : > { %2625 = vst.msk [vmem:[#allocation2 + $0x189] sm:$0xff] %vm443_vm0, %v2593_v0  ;;  %v2640_v0 = vld [vmem:[#allocation2 + $0xa8] sm:$0xff] }
 0x3fa   : > { %3228 = vrot.lane.b32.xlu1 %v6661_v52, %s5124_s14  ;;  %v2801_v22 = vpop.permute.xlu0 %2800 }
 0x3fb   : > { %v2945_v63 = vpop.permute.xlu1 %2944 }
 0x3fd   : > { %v2694_v39 = vld [vmem:[#allocation2 + $0x181] sm:$0xff] }
 0x3fe   : > { %2834 = vrot.lane.b32.xlu0 %v2694_v39, %s5123_s19  ;;  %4992 = vrot.lane.b32.xlu1 %v4991_v62, %s5126_s27  ;;  %v2799_v44 = vpop.permute.xlu0 %2798 }
 0x3ff   : > { %v2943_v2 = vpop.permute.xlu1 %2942  ;;  %v3036_v31 = vsel %vm443_vm0, %v2640_v0, %v2799_v44 }
 0x400   : > { %v2695_v37 = vld [vmem:[#allocation2 + $0x189] sm:$0xff]  ;;  %v6729_v39 = vsel %vm1677_vm2, %v3036_v31, %v2943_v2  ;;  %v5006_v2 = vpack.i.bf16 %v6715_v46, %v6726_v38  ;;  %v2647_v31 = vld [vmem:[#allocation2 + $0xf8] sm:$0xff] }
 0x401   : > { %v2730_v50 = vld [vmem:[#allocation2 + $0x182] sm:$0xff] }
 0x402   : > { %4987 = vrot.lane.b32.xlu0 %v4986_v47, %s5126_s27  ;;  %3234 = vrot.lane.b32.xlu1 %v6680_v18, %s5124_s14  ;;  %v2805_v10 = vpop.permute.xlu0 %2804  ;;  %v3037_v47 = vsel %vm443_vm0, %v2641_v16, %v2801_v22 }
 0x403   : > { %v2949_v32 = vpop.permute.xlu1 %2948  ;;  %v6739_v28 = vsel %vm1677_vm2, %v3037_v47, %v2945_v63  ;;  %v3039_v22 = vsel %vm443_vm0, %v2643_v40, %v2805_v10  ;;  %v2642_v63 = vld [vmem:[#allocation2 + $0xc0] sm:$0xff]  ;;  %v2646_v40 = vld [vmem:[#allocation2 + $0xf0] sm:$0xff] }
 0x404   : > { %v5011_v15 = vpack.i.bf16 %v6739_v28, %v6729_v39  ;;  %v6749_v44 = vsel %vm1677_vm2, %v3039_v22, %v2949_v32  ;;  %v2648_v22 = vld [vmem:[#allocation2 + $0x108] sm:$0xff] }
 0x406   : > { %3230 = vrot.lane.b32.xlu0 %v6668_v1, %s5124_s14  ;;  %2836 = vrot.lane.b32.xlu1 %v2695_v37, %s5123_s19  ;;  %v2803_v62 = vpop.permute.xlu0 %2802  ;;  %v2731_v37 = vld [vmem:[#allocation2 + $0x18a] sm:$0xff] }
 0x407   : > { %v2947_v36 = vpop.permute.xlu1 %2946 }
 0x40a   : > { %3232 = vrot.lane.b32.xlu0 %v6694_v24, %s5124_s14  ;;  %3236 = vrot.lane.b32.xlu1 %v6697_v54, %s5124_s14  ;;  %v2807_v4 = vpop.permute.xlu0 %2806 }
 0x40b   : > { %v2809_v42 = vpop.permute.xlu1 %2808 }
 0x40e   : > { %2978 = vrot.lane.b32.xlu0 %v2730_v50, %s5124_s14  ;;  %5002 = vrot.lane.b32.xlu1 %v5001_v9, %s5126_s27  ;;  %v3038_v9 = vsel %vm443_vm0, %v2642_v63, %v2803_v62  ;;  %v2644_v50 = vld [vmem:[#allocation2 + $0xd8] sm:$0xff] }
 0x40f   : > { %v2953_v60 = vpop.permute.xlu1 %2952  ;;  %v3040_v6 = vsel %vm443_vm0, %v2644_v50, %v2807_v4  ;;  %v6758_v10 = vsel %vm1677_vm2, %v3038_v9, %v2947_v36  ;;  %v2649_v9 = vld [vmem:[#allocation2 + $0x110] sm:$0xff] }
 0x410   : > { %v5016_v36 = vpack.i.bf16 %v6749_v44, %v6758_v10 }
 0x411   : > { %v2957_v55 = vpop.permute.xlu0 %2956 }
 0x412   : > { %4997 = vrot.lane.b32.xlu0 %v4996_v7, %s5126_s27  ;;  %3242 = vrot.lane.b32.xlu1 %v6715_v46, %s5124_s14 }
 0x413   : > { %v2951_v56 = vpop.permute.xlu1 %2950 }
 0x414   : > { %v6761_v32 = vsel %vm1677_vm2, %v3040_v6, %v2951_v56 }
 0x415   : > { %v2811_v34 = vpop.permute.xlu0 %2810 }
 0x416   : > { %3238 = vrot.lane.b32.xlu0 %v6705_v19, %s5124_s14  ;;  %2838 = vrot.lane.b32.xlu1 %v2696_v25, %s5123_s19  ;;  %v2697_v25 = vld [vmem:[#allocation2 + $0x1a1] sm:$0xff]  ;;  %v3042_v56 = vsel %vm443_vm0, %v2646_v40, %v2811_v34 }
 0x417   : > { %v2813_v7 = vpop.permute.xlu1 %2812 }
 0x418   : > { %v3043_v62 = vsel %vm443_vm0, %v2647_v31, %v2813_v7  ;;  %v2650_v7 = vld [vmem:[#allocation2 + $0x120] sm:$0xff] }
 0x419   : > { %v2955_v0 = vpop.permute.xlu0 %2954 }
 0x41a   : > { %3240 = vrot.lane.b32.xlu0 %v6726_v38, %s5124_s14  ;;  %3244 = vrot.lane.b32.xlu1 %v6729_v39, %s5124_s14  ;;  %v6789_v63 = vsel %vm1677_vm2, %v3042_v56, %v2955_v0 }
 0x41b   : > { %v2815_v12 = vpop.permute.xlu1 %2814 }
 0x41d   : > { %v2817_v16 = vpop.permute.xlu0 %2816 }
 0x41e   : > { %2980 = vrot.lane.b32.xlu0 %v2731_v37, %s5124_s14  ;;  %2982 = vrot.lane.b32.xlu1 %v2732_v48, %s5124_s14  ;;  %v2645_v48 = vld [vmem:[#allocation2 + $0xe0] sm:$0xff]  ;;  %v3045_v50 = vsel %vm443_vm0, %v2649_v9, %v2817_v16 }
 0x41f   : > { %v3041_v47 = vsel %vm443_vm0, %v2645_v48, %v2809_v42  ;;  %v2959_v4 = vpop.permute.xlu1 %2958  ;;  %v3044_v42 = vsel %vm443_vm0, %v2648_v22, %v2815_v12  ;;  %v2652_v48 = vld [vmem:[#allocation2 + $0x138] sm:$0xff]  ;;  %v2653_v22 = vld [vmem:[#allocation2 + $0x140] sm:$0xff] }
 0x420   : > { %v6777_v37 = vsel %vm1677_vm2, %v3041_v47, %v2953_v60  ;;  %v6792_v60 = vsel %vm1677_vm2, %v3044_v42, %v2959_v4 }
 0x422   : > { %5007 = vrot.lane.b32.xlu0 %v5006_v2, %s5126_s27  ;;  %5012 = vrot.lane.b32.xlu1 %v5011_v15, %s5126_s27  ;;  %v6780_v2 = vsel %vm1677_vm2, %v3043_v62, %v2957_v55 }
 0x423   : > { %v2961_v55 = vpop.permute.xlu1 %2960 }
 0x424   : > { %v6800_v34 = vsel %vm1677_vm2, %v3045_v50, %v2961_v55  ;;  %v2654_v50 = vld [vmem:[#allocation2 + $0x150] sm:$0xff] }
 0x426   : > { %3246 = vrot.lane.b32.xlu0 %v6739_v28, %s5124_s14  ;;  %3250 = vrot.lane.b32.xlu1 %v6749_v44, %s5124_s14 }
 0x42a   : > { %3248 = vrot.lane.b32.xlu0 %v6758_v10, %s5124_s14  ;;  %3252 = vrot.lane.b32.xlu1 %v6761_v32, %s5124_s14 }
 0x42c   : > { %v2819_v15 = vpop.permute.xlu0 %2818 }
 0x42e   : > { %2840 = vrot.lane.b32.xlu0 %v2697_v25, %s5123_s19  ;;  %2984 = vrot.lane.b32.xlu1 %v2733_v14, %s5124_s14  ;;  %v3046_v25 = vsel %vm443_vm0, %v2650_v7, %v2819_v15  ;;  %s5055_s19 = sshll.u32 %s5127_s25, 4  ;;  %s5056_s19 = int_to_ptr.vmem [resolvable:$false] %s5055_s19 }
 0x42f   : > { %v2821_v14 = vpop.permute.xlu1 %2820 }
 0x430   : > { %v2963_v6 = vpop.permute.xlu0 %2962 }
 0x431   : > { %v6808_v0 = vsel %vm1677_vm2, %v3046_v25, %v2963_v6 }
 0x432   : > { %5017 = vrot.lane.b32.xlu0 %v5016_v36, %s5126_s27  ;;  %3158 = vrot.lane.b32.xlu1 %v6761_v32, %s5126_s27  ;;  %v2651_v36 = vld [vmem:[#allocation2 + $0x128] sm:$0xff] }
 0x433   : > { %v3047_v31 = vsel %vm443_vm0, %v2651_v36, %v2821_v14 }
 0x434   : > { %v2965_v12 = vpop.permute.xlu0 %2964 }
 0x435   : > { %v6816_v16 = vsel %vm1677_vm2, %v3047_v31, %v2965_v12  ;;  %v2655_v12 = vld [vmem:[#allocation2 + $0x158] sm:$0xff] }
 0x436   : > { %3254 = vrot.lane.b32.xlu0 %v6777_v37, %s5124_s14  ;;  %3258 = vrot.lane.b32.xlu1 %v6780_v2, %s5124_s14 }
 0x43a   : > { %3256 = vrot.lane.b32.xlu0 %v6789_v63, %s5124_s14  ;;  %3260 = vrot.lane.b32.xlu1 %v6792_v60, %s5124_s14 }
 0x43e   : > { %3160 = vrot.lane.b32.xlu0 %v6777_v37, %s5126_s27  ;;  %3262 = vrot.lane.b32.xlu1 %v6800_v34, %s5124_s14 }
 0x442   : > { %3162 = vrot.lane.b32.xlu0 %v6789_v63, %s5126_s27  ;;  %3264 = vrot.lane.b32.xlu1 %v6808_v0, %s5124_s14 }
 0x444   : > { %v2823_v62 = vpop.permute.xlu1 %2822 }
 0x445   : > { %v3048_v4 = vsel %vm443_vm0, %v2652_v48, %v2823_v62 }
 0x446   : > { %3164 = vrot.lane.b32.xlu0 %v6780_v2, %s5126_s27  ;;  %3266 = vrot.lane.b32.xlu1 %v6816_v16, %s5124_s14 }
 0x447   : > { %v2825_v47 = vpop.permute.xlu0 %2824 }
 0x448   : > { %v2967_v15 = vpop.permute.xlu1 %2966  ;;  %v3049_v56 = vsel %vm443_vm0, %v2653_v22, %v2825_v47  ;;  %v2656_v47 = vld [vmem:[#allocation2 + $0x168] sm:$0xff] }
 0x449   : > { %v6824_v40 = vsel %vm1677_vm2, %v3048_v4, %v2967_v15 }
 0x44a   : > { %3166 = vrot.lane.b32.xlu0 %v6792_v60, %s5126_s27  ;;  %3268 = vrot.lane.b32.xlu1 %v6824_v40, %s5124_s14 }
 0x44c   : > { %v2827_v42 = vpop.permute.xlu0 %2826  ;;  %v2969_v55 = vpop.permute.xlu1 %2968 }
 0x44d   : > { %v6832_v9 = vsel %vm1677_vm2, %v3049_v56, %v2969_v55  ;;  %v3050_v6 = vsel %vm443_vm0, %v2654_v50, %v2827_v42  ;;  %v4964_v42 = vunpack.i.l.bf16 %v6488_v49  ;;  %v2657_v55 = vld [vmem:[#allocation2 + $0x170] sm:$0xff] }
 0x44e   : > { %3168 = vrot.lane.b32.xlu0 %v6800_v34, %s5126_s27  ;;  %3270 = vrot.lane.b32.xlu1 %v6832_v9, %s5124_s14 }
 0x450   : > { %v2971_v7 = vpop.permute.xlu0 %2970  ;;  %v2829_v14 = vpop.permute.xlu1 %2828 }
 0x451   : > { %v6840_v25 = vsel %vm1677_vm2, %v3050_v6, %v2971_v7  ;;  %v3051_v36 = vsel %vm443_vm0, %v2655_v12, %v2829_v14  ;;  %v2626_v6 = vld [vmem:[#allocation2] sm:$0xff] }
 0x452   : > { %3170 = vrot.lane.b32.xlu0 %v6808_v0, %s5126_s27  ;;  %3272 = vrot.lane.b32.xlu1 %v6840_v25, %s5124_s14 }
 0x454   : > { %v2973_v31 = vpop.permute.xlu0 %2972 }
 0x455   : > { %v6848_v62 = vsel %vm1677_vm2, %v3051_v36, %v2973_v31  ;;  %v4969_v36 = vunpack.i.l.bf16 %v6499_v30  ;;  %v3022_v31 = vsel %vm443_vm0, %v2626_v6, %v4964_v42 }
 0x456   : > { %3172 = vrot.lane.b32.xlu0 %v6816_v16, %s5126_s27  ;;  %3274 = vrot.lane.b32.xlu1 %v6848_v62, %s5124_s14 }
 0x458   : > { %v2831_v48 = vpop.permute.xlu1 %2830 }
 0x459   : > { %v3052_v15 = vsel %vm443_vm0, %v2656_v47, %v2831_v48  ;;  %v4965_v48 = vunpack.i.h.bf16 %v6488_v49 }
 0x45a   : > { %3174 = vrot.lane.b32.xlu0 %v6824_v40, %s5126_s27 }
 0x45b   : > { %v2833_v4 = vpop.permute.xlu0 %2832 }
 0x45c   : > { %v2975_v22 = vpop.permute.xlu1 %2974  ;;  %v3053_v7 = vsel %vm443_vm0, %v2657_v55, %v2833_v4  ;;  %v4970_v55 = vunpack.i.h.bf16 %v6499_v30 }
 0x45d   : > { %v6858_v56 = vsel %vm1677_vm2, %v3052_v15, %v2975_v22  ;;  %v2627_v15 = vld [vmem:[#allocation2 + $0x8] sm:$0xff]  ;;  %v3058_v22 = vsel %vm1677_vm2, %v3022_v31, %v4969_v36 }
 0x45e   : > { %3176 = vrot.lane.b32.xlu0 %v6832_v9, %s5126_s27  ;;  %3276 = vrot.lane.b32.xlu1 %v6858_v56, %s5124_s14  ;;  %v3023_v42 = vsel %vm443_vm0, %v2627_v15, %v4965_v48 }
 0x45f   : > { %v3225_v50 = vpop.permute.xlu0 %3224  ;;  %v3059_v30 = vsel %vm1677_vm2, %v3023_v42, %v4970_v55 }
 0x460   : > { %4606 = vmatprep.mubr.msk.f32.mxu0 %vm443_vm0, %v3225_v50  ;;  %v2977_v14 = vpop.permute.xlu1 %2976 }
 0x461   : > { %v6868_v12 = vsel %vm1677_vm2, %v3053_v7, %v2977_v14 }
 0x462   : > { %3178 = vrot.lane.b32.xlu0 %v6840_v25, %s5126_s27  ;;  %3278 = vrot.lane.b32.xlu1 %v6868_v12, %s5124_s14 }
 0x464   : > { %v4983_v47 = vpop.permute.xlu1 %4982 }
 0x465   : > { %v4984_v4 = vunpack.i.l.bf16 %v4983_v47  ;;  %v4985_v7 = vunpack.i.h.bf16 %v4983_v47 }
 0x466   : > { %3180 = vrot.lane.b32.xlu0 %v6848_v62, %s5126_s27 }
 0x467   : > { %v3352_v14 = vsel %vm1677_vm2, %v4984_v4, %v3225_v50  ;;  %v3320_v43 = vsel %vm1940_vm3, %v3058_v22, %v4984_v4  ;;  %v3321_v50 = vsel %vm1940_vm3, %v3059_v30, %v4985_v7 }
 0x468   : > { %v3227_v20 = vpop.permute.xlu1 %3226  ;;  %3555 = vmatprep.mubr.f32.mxu1 %v3352_v14 }
 0x469   : > { %3556 = vmatmul.mubr.f32.vlgmr.msra.gmra.mrb[50].mxu1 %v3320_v43  ;;  %4607 = vmatmul.mubr.msk.f32.vlgmr.msra.gmra.mrb[78].mxu0 %vm443_vm0, %v3227_v20  ;;  %v3353_v49 = vsel %vm1677_vm2, %v4985_v7, %v3227_v20 }
 0x46a   : > { %3182 = vrot.lane.b32.xlu0 %v6858_v56, %s5126_s27  ;;  %3560 = vmatprep.mubr.f32.mxu1 %v3353_v49 }
 0x46c   : > { %v3229_v6 = vpop.permute.xlu1 %3228 }
 0x46d   : > { %3561 = vmatmul.mubr.f32.gmra.mrb[52].mxu1 %v3321_v50  ;;  %4609 = vmatprep.mubr.msk.f32.mxu0 %vm443_vm0, %v3229_v6 }
 0x46e   : > { %3184 = vrot.lane.b32.xlu0 %v6868_v12, %s5126_s27 }
 0x470   : > { %v2835_v43 = vpop.permute.xlu0 %2834  ;;  %v4993_v36 = vpop.permute.xlu1 %4992 }
 0x471   : > { %v4994_v14 = vunpack.i.l.bf16 %v4993_v36 }
 0x474   : > { %v4988_v31 = vpop.permute.xlu0 %4987  ;;  %v3235_v48 = vpop.permute.xlu1 %3234 }
 0x475   : > { %v4989_v20 = vunpack.i.l.bf16 %v4988_v31  ;;  %v4990_v47 = vunpack.i.h.bf16 %v4988_v31  ;;  %v4995_v31 = vunpack.i.h.bf16 %v4993_v36 }
 0x477   : > { %v3354_v4 = vsel %vm1677_vm2, %v4989_v20, %v3229_v6  ;;  %v3322_v15 = vsel %vm1940_vm3, %v6633_v58, %v4989_v20  ;;  %v3323_v30 = vsel %vm1940_vm3, %v6636_v8, %v4990_v47  ;;  %v2658_v6 = vld [vmem:[#allocation2 + $0x180] sm:$0xff] }
 0x478   : > { %v3231_v22 = vpop.permute.xlu0 %3230  ;;  %v2837_v55 = vpop.permute.xlu1 %2836  ;;  %3565 = vmatprep.mubr.f32.mxu1 %v3354_v4  ;;  %v3054_v50 = vsel %vm443_vm0, %v2658_v6, %v2835_v43  ;;  %v3325_v43 = vsel %vm1940_vm3, %v6650_v57, %v4995_v31 }
 0x479   : > { %3566 = vmatmul.mubr.f32.gmra.mrb[54].mxu1 %v3322_v15  ;;  %4610 = vmatmul.mubr.msk.f32.gmra.mrb[80].mxu0 %vm443_vm0, %v3231_v22  ;;  %v3355_v7 = vsel %vm1677_vm2, %v4990_v47, %v3231_v22  ;;  %v3324_v15 = vsel %vm1940_vm3, %v6630_v17, %v4994_v14  ;;  %v3357_v47 = vsel %vm1677_vm2, %v4995_v31, %v3235_v48 }
 0x47a   : > { %3570 = vmatprep.mubr.f32.mxu1 %v3355_v7 }
 0x47c   : > { %v3233_v42 = vpop.permute.xlu0 %3232  ;;  %v3237_v49 = vpop.permute.xlu1 %3236 }
 0x47d   : > { %3571 = vmatmul.mubr.f32.gmra.mrb[56].mxu1 %v3323_v30  ;;  %4612 = vmatprep.mubr.msk.f32.mxu0 %vm443_vm0, %v3233_v42  ;;  %v3356_v58 = vsel %vm1677_vm2, %v4994_v14, %v3233_v42 }
 0x47e   : > { %3575 = vmatprep.mubr.f32.mxu1 %v3356_v58  ;;  %4613 = vmatmul.mubr.msk.f32.gmra.mrb[82].mxu0 %vm443_vm0, %v3235_v48 }
 0x47f   : > { %4615 = vmatprep.mubr.msk.f32.mxu0 %vm443_vm0, %v3237_v49 }
 0x480   : > { %v2979_v20 = vpop.permute.xlu0 %2978  ;;  %v5003_v4 = vpop.permute.xlu1 %5002 }
 0x481   : > { %v3090_v8 = vsel %vm1677_vm2, %v3054_v50, %v2979_v20  ;;  %3576 = vmatmul.mubr.f32.gmra.mrb[58].mxu1 %v3324_v15  ;;  %v5004_v6 = vunpack.i.l.bf16 %v5003_v4  ;;  %v5005_v15 = vunpack.i.h.bf16 %v5003_v4 }
 0x482   : > { %3186 = vrot.lane.b32.xlu0 %v3090_v8, %s5126_s27  ;;  %3280 = vrot.lane.b32.xlu1 %v3090_v8, %s5124_s14 }
 0x483   : > { %3580 = vmatprep.mubr.f32.mxu1 %v3357_v47 }
 0x484   : > { %v4998_v22 = vpop.permute.xlu0 %4997  ;;  %v3243_v7 = vpop.permute.xlu1 %3242 }
 0x485   : > { %v4999_v36 = vunpack.i.l.bf16 %v4998_v22  ;;  %3581 = vmatmul.mubr.f32.gmra.mrb[60].mxu1 %v3325_v43  ;;  %v5000_v42 = vunpack.i.h.bf16 %v4998_v22  ;;  %v3328_v22 = vsel %vm1940_vm3, %v6694_v24, %v5004_v6 }
 0x487   : > { %v3358_v17 = vsel %vm1677_vm2, %v4999_v36, %v3237_v49  ;;  %v3326_v14 = vsel %vm1940_vm3, %v6661_v52, %v4999_v36  ;;  %v3327_v31 = vsel %vm1940_vm3, %v6668_v1, %v5000_v42  ;;  %v2659_v49 = vld [vmem:[#allocation2 + $0x188] sm:$0xff]  ;;  %v2660_v1 = vld [vmem:[#allocation2 + $0x198] sm:$0xff]  ;;  %v3361_v36 = vsel %vm1677_vm2, %v5005_v15, %v3243_v7 }
 0x488   : > { %v3239_v30 = vpop.permute.xlu0 %3238  ;;  %v2839_v58 = vpop.permute.xlu1 %2838  ;;  %3585 = vmatprep.mubr.f32.mxu1 %v3358_v17  ;;  %v3055_v20 = vsel %vm443_vm0, %v2659_v49, %v2837_v55  ;;  %v3329_v17 = vsel %vm1940_vm3, %v6680_v18, %v5005_v15 }
 0x489   : > { %3586 = vmatmul.mubr.f32.gmra.mrb[62].mxu1 %v3326_v14  ;;  %4616 = vmatmul.mubr.msk.f32.gmra.mrb[84].mxu0 %vm443_vm0, %v3239_v30  ;;  %v3359_v48 = vsel %vm1677_vm2, %v5000_v42, %v3239_v30  ;;  %v3056_v42 = vsel %vm443_vm0, %v2660_v1, %v2839_v58 }
 0x48a   : > { %3590 = vmatprep.mubr.f32.mxu1 %v3359_v48 }
 0x48c   : > { %v3241_v50 = vpop.permute.xlu0 %3240  ;;  %v3245_v57 = vpop.permute.xlu1 %3244 }
 0x48d   : > { %3591 = vmatmul.mubr.f32.gmra.mrb[64].mxu1 %v3327_v31  ;;  %4618 = vmatprep.mubr.msk.f32.mxu0 %vm443_vm0, %v3241_v50  ;;  %v3360_v52 = vsel %vm1677_vm2, %v5004_v6, %v3241_v50 }
 0x48e   : > { %3595 = vmatprep.mubr.f32.mxu1 %v3360_v52  ;;  %4619 = vmatmul.mubr.msk.f32.gmra.mrb[86].mxu0 %vm443_vm0, %v3243_v7 }
 0x48f   : > { %4621 = vmatprep.mubr.msk.f32.mxu0 %vm443_vm0, %v3245_v57 }
 0x490   : > { %v2981_v8 = vpop.permute.xlu0 %2980  ;;  %v2983_v47 = vpop.permute.xlu1 %2982 }
 0x491   : > { %v3091_v43 = vsel %vm1677_vm2, %v3055_v20, %v2981_v8  ;;  %3596 = vmatmul.mubr.f32.gmra.mrb[66].mxu1 %v3328_v22  ;;  %v3092_v24 = vsel %vm1677_vm2, %v3056_v42, %v2983_v47 }
 0x492   : > { %3188 = vrot.lane.b32.xlu0 %v3091_v43, %s5126_s27  ;;  %3282 = vrot.lane.b32.xlu1 %v3091_v43, %s5124_s14  ;;  %s7329_s27 = sshll.u32 %s5284_s29, 8 }
 0x493   : > { %3600 = vmatprep.mubr.f32.mxu1 %v3361_v36  ;;  %s7037_s20 = scalar_lea.vmem [#allocation6], %s7329_s27 }
 0x494   : > { %v5008_v55 = vpop.permute.xlu0 %5007  ;;  %v5013_v4 = vpop.permute.xlu1 %5012  ;;  %s4051_s28 = sshll.u32 %s7037_s20, 4  ;;  %s7200_s28 = int_to_ptr.vmem [resolvable:$true] %s4051_s28 }
 0x495   : > { %v5009_v14 = vunpack.i.l.bf16 %v5008_v55  ;;  %3601 = vmatmul.mubr.f32.gmra.mrb[68].mxu1 %v3329_v17  ;;  %v5010_v30 = vunpack.i.h.bf16 %v5008_v55  ;;  %v5014_v58 = vunpack.i.l.bf16 %v5013_v4  ;;  %v5015_v20 = vunpack.i.h.bf16 %v5013_v4  ;;  %s5051_s26 = scalar_lea.vmem %s7200_s28, 4096  ;;  %p5058_p10 = scmp.lt.s32.totalorder %s7200_s28, %s5056_s19 }
 0x496   : > { %3284 = vrot.lane.b32.xlu1 %v3092_v24, %s5124_s14  ;;  %p5052_p11 = scmp.ne.s32.totalorder %s7200_s28, %s5051_s26 }
 0x497   : > { %v3362_v48 = vsel %vm1677_vm2, %v5009_v14, %v3245_v57  ;;  %v3330_v7 = vsel %vm1940_vm3, %v6697_v54, %v5009_v14  ;;  %v3331_v49 = vsel %vm1940_vm3, %v6705_v19, %v5010_v30  ;;  %v2661_v57 = vld [vmem:[#allocation2 + $0x1a0] sm:$0xff]  ;;  %v3332_v47 = vsel %vm1940_vm3, %v6726_v38, %v5014_v58 }
 0x498   : > { %v3247_v6 = vpop.permute.xlu0 %3246  ;;  %v3251_v50 = vpop.permute.xlu1 %3250  ;;  %3605 = vmatprep.mubr.f32.mxu1 %v3362_v48  ;;  %v3333_v42 = vsel %vm1940_vm3, %v6715_v46, %v5015_v20  ;;  %p5053_p13 = pnand %p5052_p11, %p7376_p12 }
 0x499   : > { %3606 = vmatmul.mubr.f32.gmra.mrb[70].mxu1 %v3330_v7  ;;  %4622 = vmatmul.mubr.msk.f32.gmra.mrb[88].mxu0 %vm443_vm0, %v3247_v6  ;;  %v3363_v18 = vsel %vm1677_vm2, %v5010_v30, %v3247_v6  ;;  %v3365_v19 = vsel %vm1677_vm2, %v5015_v20, %v3251_v50 }
 0x49a   : > { %3610 = vmatprep.mubr.f32.mxu1 %v3363_v18  ;;  %p5054_p8 = pneg %p5053_p13 }
 0x49c   : > { %v3249_v31 = vpop.permute.xlu0 %3248  ;;  %v3253_v52 = vpop.permute.xlu1 %3252 }
 0x49d   : > { %3611 = vmatmul.mubr.f32.gmra.mrb[72].mxu1 %v3331_v49  ;;  %4624 = vmatprep.mubr.msk.f32.mxu0 %vm443_vm0, %v3249_v31  ;;  %v3364_v54 = vsel %vm1677_vm2, %v5014_v58, %v3249_v31 }
 0x49e   : > { %3615 = vmatprep.mubr.f32.mxu1 %v3364_v54  ;;  %4625 = vmatmul.mubr.msk.f32.gmra.mrb[90].mxu0 %vm443_vm0, %v3251_v50 }
 0x49f   : > { %4627 = vmatprep.mubr.msk.f32.mxu0 %vm443_vm0, %v3253_v52 }
 0x4a0   : > { %v2841_v15 = vpop.permute.xlu0 %2840  ;;  %v2985_v8 = vpop.permute.xlu1 %2984 }
 0x4a1   : > { %v3057_v22 = vsel %vm443_vm0, %v2661_v57, %v2841_v15  ;;  %3616 = vmatmul.mubr.f32.gmra.mrb[74].mxu1 %v3332_v47 }
 0x4a2   : > { %v3093_v1 = vsel %vm1677_vm2, %v3057_v22, %v2985_v8  ;;  %3620 = vmatprep.mubr.f32.mxu1 %v3365_v19 }
 0x4a3   : > { %3286 = vrot.lane.b32.xlu1 %v3093_v1, %s5124_s14  ;;  %s5057_s14 = scalar_lea.vmem %s5056_s19, 8192 }
 0x4a4   : > { %v5018_v43 = vpop.permute.xlu0 %5017  ;;  %v3159_v36 = vpop.permute.xlu1 %3158  ;;  %p5059_p0 = scmp.lt.s32.totalorder %s5057_s14, %s5051_s26 }
 0x4a5   : > { %v5019_v55 = vunpack.i.l.bf16 %v5018_v43  ;;  %3621 = vmatmul.mubr.f32.gmra.mrb[76].mxu1 %v3333_v42  ;;  %v5020_v4 = vunpack.i.h.bf16 %v5018_v43  ;;  %v3336_v18 = vsel %vm1940_vm3, %v6758_v10, %v3159_v36 }
 0x4a6   : > { %p5060_p2 = por %p5059_p0, %p5058_p10 }
 0x4a7   : > { %v3366_v38 = vsel %vm1677_vm2, %v5019_v55, %v3253_v52  ;;  %v3334_v17 = vsel %vm1940_vm3, %v6729_v39, %v5019_v55  ;;  %v3335_v46 = vsel %vm1940_vm3, %v6739_v28, %v5020_v4 }
 0x4a8   : > { %v3255_v24 = vpop.permute.xlu0 %3254  ;;  %v3259_v14 = vpop.permute.xlu1 %3258  ;;  %3625 = vmatprep.mubr.f32.mxu1 %v3366_v38  ;;  %p5061_p4 = pnand %p5060_p2, %p5054_p8 }
 0x4a9   : > { %3626 = vmatmul.mubr.f32.gmra.mrb[78].mxu1 %v3334_v17  ;;  %4628 = vmatmul.mubr.msk.f32.gmra.mrb[92].mxu0 %vm443_vm0, %v3255_v24  ;;  %v3367_v30 = vsel %vm1677_vm2, %v5020_v4, %v3255_v24 }
 0x4aa   : > { %3630 = vmatprep.mubr.f32.mxu1 %v3367_v30 }
 0x4ac   : > { %v3257_v48 = vpop.permute.xlu0 %3256  ;;  %v3261_v7 = vpop.permute.xlu1 %3260 }
 0x4ad   : > { %3631 = vmatmul.mubr.f32.gmra.mrb[80].mxu1 %v3335_v46  ;;  %4630 = vmatprep.mubr.msk.f32.mxu0 %vm443_vm0, %v3257_v48  ;;  %v3368_v6 = vsel %vm1677_vm2, %v3159_v36, %v3257_v48 }
 0x4ae   : > { %3635 = vmatprep.mubr.f32.mxu1 %v3368_v6  ;;  %4631 = vmatmul.mubr.msk.f32.gmra.mrb[94].mxu0 %vm443_vm0, %v3259_v14 }
 0x4af   : > { %4633 = vmatprep.mubr.msk.f32.mxu0 %vm443_vm0, %v3261_v7 }
 0x4b0   : > { %v3161_v39 = vpop.permute.xlu0 %3160  ;;  %v3263_v50 = vpop.permute.xlu1 %3262 }
 0x4b1   : > { %3636 = vmatmul.mubr.f32.gmra.mrb[82].mxu1 %v3336_v18  ;;  %v3369_v58 = vsel %vm1677_vm2, %v3161_v39, %v3259_v14  ;;  %v3337_v52 = vsel %vm1940_vm3, %v6749_v44, %v3161_v39 }
 0x4b2   : > { %3640 = vmatprep.mubr.f32.mxu1 %v3369_v58  ;;  %4634 = vmatmul.mubr.msk.f32.gmra.mrb[96].mxu0 %vm443_vm0, %v3263_v50 }
 0x4b4   : > { %v3163_v28 = vpop.permute.xlu0 %3162  ;;  %v3265_v31 = vpop.permute.xlu1 %3264 }
 0x4b5   : > { %3641 = vmatmul.mubr.f32.gmra.mrb[84].mxu1 %v3337_v52  ;;  %4636 = vmatprep.mubr.msk.f32.mxu0 %vm443_vm0, %v3265_v31  ;;  %v3370_v49 = vsel %vm1677_vm2, %v3163_v28, %v3261_v7  ;;  %v3338_v10 = vsel %vm1940_vm3, %v6761_v32, %v3163_v28 }
 0x4b6   : > { %3645 = vmatprep.mubr.f32.mxu1 %v3370_v49 }
 0x4b8   : > { %v3165_v54 = vpop.permute.xlu0 %3164  ;;  %v3267_v57 = vpop.permute.xlu1 %3266 }
 0x4b9   : > { %3646 = vmatmul.mubr.f32.gmra.mrb[86].mxu1 %v3338_v10  ;;  %4637 = vmatmul.mubr.msk.f32.gmra.mrb[98].mxu0 %vm443_vm0, %v3267_v57  ;;  %v3371_v20 = vsel %vm1677_vm2, %v3165_v54, %v3263_v50  ;;  %v3339_v44 = vsel %vm1940_vm3, %v6777_v37, %v3165_v54 }
 0x4ba   : > { %3650 = vmatprep.mubr.f32.mxu1 %v3371_v20 }
 0x4bc   : > { %v3167_v15 = vpop.permute.xlu0 %3166  ;;  %v3269_v8 = vpop.permute.xlu1 %3268 }
 0x4bd   : > { %3651 = vmatmul.mubr.f32.gmra.mrb[88].mxu1 %v3339_v44  ;;  %4639 = vmatprep.mubr.msk.f32.mxu0 %vm443_vm0, %v3269_v8  ;;  %v3372_v47 = vsel %vm1677_vm2, %v3167_v15, %v3265_v31  ;;  %v3340_v32 = vsel %vm1940_vm3, %v6789_v63, %v3167_v15  ;;  %v7029_v44 = vld [vmem:[%s7254_s8] ss:$0 sm:$0xff] }
 0x4be   : > { %3655 = vmatprep.mubr.f32.mxu1 %v3372_v47 }
 0x4c0   : > { %v3169_v22 = vpop.permute.xlu0 %3168  ;;  %v3271_v19 = vpop.permute.xlu1 %3270 }
 0x4c1   : > { %3656 = vmatmul.mubr.f32.gmra.mrb[90].mxu1 %v3340_v32  ;;  %4640 = vmatmul.mubr.msk.f32.gmra.mrb[100].mxu0 %vm443_vm0, %v3271_v19  ;;  %v3373_v1 = vsel %vm1677_vm2, %v3169_v22, %v3267_v57  ;;  %v3341_v37 = vsel %vm1940_vm3, %v6780_v2, %v3169_v22 }
 0x4c2   : > { %3660 = vmatprep.mubr.f32.mxu1 %v3373_v1 }
 0x4c4   : > { %v3171_v43 = vpop.permute.xlu0 %3170  ;;  %v3273_v36 = vpop.permute.xlu1 %3272 }
 0x4c5   : > { %3661 = vmatmul.mubr.f32.gmra.mrb[92].mxu1 %v3341_v37  ;;  %4642 = vmatprep.mubr.msk.f32.mxu0 %vm443_vm0, %v3273_v36  ;;  %v3374_v42 = vsel %vm1677_vm2, %v3171_v43, %v3269_v8  ;;  %v3342_v63 = vsel %vm1940_vm3, %v6792_v60, %v3171_v43 }
 0x4c6   : > { %3665 = vmatprep.mubr.f32.mxu1 %v3374_v42 }
 0x4c8   : > { %v3173_v55 = vpop.permute.xlu0 %3172  ;;  %v3275_v4 = vpop.permute.xlu1 %3274 }
 0x4c9   : > { %3666 = vmatmul.mubr.f32.gmra.mrb[94].mxu1 %v3342_v63  ;;  %4643 = vmatmul.mubr.msk.f32.gmra.mrb[102].mxu0 %vm443_vm0, %v3275_v4  ;;  %v3375_v38 = vsel %vm1677_vm2, %v3173_v55, %v3271_v19  ;;  %v3343_v2 = vsel %vm1940_vm3, %v6800_v34, %v3173_v55  ;;  %v7330_v63 = vmax.f32 %v5517_v21, 0.0 }
 0x4ca   : > { %3670 = vmatprep.mubr.f32.mxu1 %v3375_v38 }
 0x4cc   : > { %v3175_v17 = vpop.permute.xlu0 %3174 }
 0x4cd   : > { %3671 = vmatmul.mubr.f32.gmra.mrb[96].mxu1 %v3343_v2  ;;  %v3376_v24 = vsel %vm1677_vm2, %v3175_v17, %v3273_v36  ;;  %v3344_v48 = vsel %vm1940_vm3, %v6808_v0, %v3175_v17  ;;  %v7328_v36 = vmax.f32 %v5520_v23, 0.0 }
 0x4ce   : > { %3675 = vmatprep.mubr.f32.mxu1 %v3376_v24 }
 0x4d0   : > { %v3177_v14 = vpop.permute.xlu0 %3176  ;;  %v3277_v30 = vpop.permute.xlu1 %3276 }
 0x4d1   : > { %3676 = vmatmul.mubr.f32.gmra.mrb[98].mxu1 %v3344_v48  ;;  %4645 = vmatprep.mubr.msk.f32.mxu0 %vm443_vm0, %v3277_v30  ;;  %v3377_v60 = vsel %vm1677_vm2, %v3177_v14, %v3275_v4  ;;  %v3345_v34 = vsel %vm1940_vm3, %v6816_v16, %v3177_v14 }
 0x4d2   : > { %3680 = vmatprep.mubr.f32.mxu1 %v3377_v60 }
 0x4d4   : > { %v3179_v7 = vpop.permute.xlu0 %3178  ;;  %v3279_v46 = vpop.permute.xlu1 %3278 }
 0x4d5   : > { %3681 = vmatmul.mubr.f32.gmra.mrb[100].mxu1 %v3345_v34  ;;  %4646 = vmatmul.mubr.msk.f32.gmra.mrb[104].mxu0 %vm443_vm0, %v3279_v46  ;;  %v3378_v6 = vsel %vm1677_vm2, %v3179_v7, %v3277_v30  ;;  %v3346_v0 = vsel %vm1940_vm3, %v6824_v40, %v3179_v7  ;;  %v7331_v7 = vmax.f32 %v5534_v29, 0.0 }
 0x4d6   : > { %3685 = vmatprep.mubr.f32.mxu1 %v3378_v6 }
 0x4d8   : > { %v3181_v39 = vpop.permute.xlu0 %3180 }
 0x4d9   : > { %3686 = vmatmul.mubr.f32.gmra.mrb[102].mxu1 %v3346_v0  ;;  %v3379_v50 = vsel %vm1677_vm2, %v3181_v39, %v3279_v46  ;;  %v3347_v18 = vsel %vm1940_vm3, %v6832_v9, %v3181_v39 }
 0x4da   : > { %3690 = vmatprep.mubr.f32.mxu1 %v3379_v50 }
 0x4dc   : > { %v3183_v58 = vpop.permute.xlu0 %3182 }
 0x4dd   : > { %3691 = vmatmul.mubr.f32.gmra.mrb[104].mxu1 %v3347_v18  ;;  %v3348_v31 = vsel %vm1940_vm3, %v6840_v25, %v3183_v58 }
 0x4e0   : > { %v3185_v40 = vpop.permute.xlu0 %3184 }
 0x4e1   : > { %v3349_v9 = vsel %vm1940_vm3, %v6848_v62, %v3185_v40 }
 0x4f4   : > { %v3281_v16 = vpop.permute.xlu1 %3280  ;;  %v3187_v54 = vpop.permute.xlu0 %3186 }
 0x4f5   : > { %4648 = vmatprep.mubr.msk.f32.mxu0 %vm443_vm0, %v3281_v16  ;;  %v3380_v28 = vsel %vm1677_vm2, %v3183_v58, %v3281_v16  ;;  %v3350_v25 = vsel %vm1940_vm3, %v6858_v56, %v3187_v54  ;;  %v7332_v58 = vmax.f32 %v5528_v27, 0.0 }
 0x4f6   : > { %3695 = vmatprep.mubr.f32.mxu1 %v3380_v28 }
 0x4f7   : > { %3696 = vmatmul.mubr.f32.gmra.mrb[106].mxu1 %v3348_v31 }
 0x504   : > { %v3283_v52 = vpop.permute.xlu1 %3282  ;;  %v3189_v20 = vpop.permute.xlu0 %3188 }
 0x505   : > { %4649 = vmatmul.mubr.msk.f32.gmra.mrb[106].mxu0 %vm443_vm0, %v3283_v52  ;;  %v3381_v49 = vsel %vm1677_vm2, %v3185_v40, %v3283_v52  ;;  %v3351_v62 = vsel %vm1940_vm3, %v6868_v12, %v3189_v20 }
 0x506   : > { %3700 = vmatprep.mubr.f32.mxu1 %v3381_v49  ;;  %v7333_v49 = vmax.f32 %v5548_v35, 0.0 }
 0x507   : > { %3701 = vmatmul.mubr.f32.gmra.mrb[108].mxu1 %v3349_v9 }
 0x508   : > { %v3285_v57 = vpop.permute.xlu1 %3284 }
 0x509   : > { %4651 = vmatprep.mubr.msk.f32.mxu0 %vm443_vm0, %v3285_v57  ;;  %v3382_v10 = vsel %vm1677_vm2, %v3187_v54, %v3285_v57 }
 0x50a   : > { %3705 = vmatprep.mubr.f32.mxu1 %v3382_v10 }
 0x50b   : > { %3706 = vmatmul.mubr.f32.gmra.mrb[110].mxu1 %v3350_v25 }
 0x515   : > { %v3287_v15 = vpop.permute.xlu1 %3286 }
 0x516   : > { %4652 = vmatmul.mubr.msk.f32.gmra.mrb[108].mxu0 %vm443_vm0, %v3287_v15  ;;  %v3383_v8 = vsel %vm1677_vm2, %v3189_v20, %v3287_v15  ;;  %v7334_v15 = vmax.f32 %v5542_v33, 0.0 }
 0x517   : > { %3710 = vmatprep.mubr.f32.mxu1 %v3383_v8 }
 0x518   : > { %3711 = vmatmul.mubr.f32.gmra.mrb[112].mxu1 %v3351_v62 }
 0x53c   : > { %v3557_v47 = vpop.f32.mrb[50].mxu1  ;;  %v4608_v56 = vpop.f32.mrb[78].mxu0 }
 0x53d   : > { %v3558_v22 = vadd.f32 %v7029_v44, %v3557_v47  ;;  %v3559_v19 = vpop.f32.mrb[51].mxu1  ;;  %v3782_v32 = vpop.f32.mrb[79].mxu0 }
 0x53f   : > { %v3783_v1 = vadd.f32 %v3782_v32, %v3558_v22  ;;  %v7335_v32 = vmax.f32 %v5562_v45, 0.0 }
 0x540   : > { %v3562_v43 = vpop.f32.mrb[52].mxu1 }
 0x541   : > { %v3941_v37 = vadd.f32 %v3783_v1, %v7328_v36  ;;  %v3563_v42 = vadd.f32 %v7029_v44, %v3562_v43  ;;  %v3564_v12 = vpop.f32.mrb[53].mxu1 }
 0x543   : > { %v3973_v55 = vmax.f32 %v3941_v37, 0.0  ;;  %v3788_v4 = vadd.f32 %v4608_v56, %v3563_v42 }
 0x545   : > { %4005 = vst.msk [vmem:[%s7037_s20] sm:$0xff] %vm443_vm0, %v3973_v55  ;;  %v3942_v38 = vadd.f32 %v3788_v4, %v7330_v63  ;;  %v7336_v4 = vmax.f32 %v5556_v41, 0.0 }
 0x547   : > { %v3974_v17 = vmax.f32 %v3942_v38, 0.0 }
 0x549   : > { %4006 = vst.msk [vmem:[%s7037_s20 + $0x8] sm:$0xff] %vm443_vm0, %v3974_v17 }
 0x54c   : > { %v3567_v23 = vpop.f32.mrb[54].mxu1  ;;  %v4611_v2 = vpop.f32.mrb[80].mxu0 }
 0x54d   : > { %v3568_v24 = vadd.f32 %v7029_v44, %v3567_v23  ;;  %v3569_v14 = vpop.f32.mrb[55].mxu1  ;;  %v3792_v30 = vpop.f32.mrb[81].mxu0 }
 0x54f   : > { %v3793_v48 = vadd.f32 %v3792_v30, %v3568_v24  ;;  %v7337_v24 = vmax.f32 %v5578_v53, 0.0 }
 0x550   : > { %v3572_v60 = vpop.f32.mrb[56].mxu1 }
 0x551   : > { %v3943_v46 = vadd.f32 %v3793_v48, %v7331_v7  ;;  %v3573_v34 = vadd.f32 %v7029_v44, %v3572_v60  ;;  %v3574_v21 = vpop.f32.mrb[57].mxu1  ;;  %v4614_v6 = vpop.f32.mrb[82].mxu0 }
 0x552   : > { %v3802_v39 = vpop.f32.mrb[83].mxu0 }
 0x553   : > { %v3975_v0 = vmax.f32 %v3943_v46, 0.0  ;;  %v3798_v50 = vadd.f32 %v4611_v2, %v3573_v34  ;;  %v7338_v34 = vmax.f32 %v5572_v51, 0.0 }
 0x554   : > { %v3577_v18 = vpop.f32.mrb[58].mxu1 }
 0x555   : > { %4007 = vst.msk [vmem:[%s7037_s20 + $0x10] sm:$0xff] %vm443_vm0, %v3975_v0  ;;  %v3944_v16 = vadd.f32 %v3798_v50, %v7332_v58  ;;  %v3578_v28 = vadd.f32 %v7029_v44, %v3577_v18  ;;  %v3579_v31 = vpop.f32.mrb[59].mxu1  ;;  %v7339_v58 = vmax.f32 %v5594_v61, 0.0 }
 0x557   : > { %v3976_v29 = vmax.f32 %v3944_v16, 0.0  ;;  %v3803_v40 = vadd.f32 %v3802_v39, %v3578_v28 }
 0x558   : > { %v3582_v52 = vpop.f32.mrb[60].mxu1 }
 0x559   : > { %4008 = vst.msk [vmem:[%s7037_s20 + $0x18] sm:$0xff] %vm443_vm0, %v3976_v29  ;;  %v3945_v9 = vadd.f32 %v3803_v40, %v7333_v49  ;;  %v3583_v54 = vadd.f32 %v7029_v44, %v3582_v52  ;;  %v3584_v57 = vpop.f32.mrb[61].mxu1 }
 0x55b   : > { %v3977_v10 = vmax.f32 %v3945_v9, 0.0  ;;  %v3808_v25 = vadd.f32 %v4614_v6, %v3583_v54  ;;  %v7340_v9 = vmax.f32 %v5588_v59, 0.0 }
 0x55c   : > { %v3587_v20 = vpop.f32.mrb[62].mxu1  ;;  %v4617_v27 = vpop.f32.mrb[84].mxu0 }
 0x55d   : > { %4009 = vst.msk [vmem:[%s7037_s20 + $0x20] sm:$0xff] %vm443_vm0, %v3977_v10  ;;  %v3946_v8 = vadd.f32 %v3808_v25, %v7334_v15  ;;  %v3588_v62 = vadd.f32 %v7029_v44, %v3587_v20  ;;  %v3589_v47 = vpop.f32.mrb[63].mxu1  ;;  %v3812_v56 = vpop.f32.mrb[85].mxu0 }
 0x55f   : > { %v3978_v35 = vmax.f32 %v3946_v8, 0.0  ;;  %v3813_v22 = vadd.f32 %v3812_v56, %v3588_v62 }
 0x560   : > { %v3592_v19 = vpop.f32.mrb[64].mxu1 }
 0x561   : > { %4010 = vst.msk [vmem:[%s7037_s20 + $0x28] sm:$0xff] %vm443_vm0, %v3978_v35  ;;  %v3947_v1 = vadd.f32 %v3813_v22, %v7335_v32  ;;  %v3593_v43 = vadd.f32 %v7029_v44, %v3592_v19  ;;  %v3594_v36 = vpop.f32.mrb[65].mxu1  ;;  %v4620_v37 = vpop.f32.mrb[86].mxu0  ;;  %v7342_v22 = vmax.f32 %v5604_v3, 0.0 }
 0x562   : > { %v3822_v33 = vpop.f32.mrb[87].mxu0 }
 0x563   : > { %v3979_v42 = vmax.f32 %v3947_v1, 0.0  ;;  %v3818_v12 = vadd.f32 %v4617_v27, %v3593_v43  ;;  %v7341_v27 = vmax.f32 %v5610_v5, 0.0 }
 0x564   : > { %v3597_v55 = vpop.f32.mrb[66].mxu1 }
 0x565   : > { %4011 = vst.msk [vmem:[%s7037_s20 + $0x30] sm:$0xff] %vm443_vm0, %v3979_v42  ;;  %v3948_v63 = vadd.f32 %v3818_v12, %v7336_v4  ;;  %v3598_v38 = vadd.f32 %v7029_v44, %v3597_v55  ;;  %v3599_v17 = vpop.f32.mrb[67].mxu1 }
 0x567   : > { %v3980_v45 = vmax.f32 %v3948_v63, 0.0  ;;  %v3823_v23 = vadd.f32 %v3822_v33, %v3598_v38  ;;  %v7343_v33 = vmax.f32 %v5626_v13, 0.0 }
 0x568   : > { %v3602_v2 = vpop.f32.mrb[68].mxu1 }
 0x569   : > { %4012 = vst.msk [vmem:[%s7037_s20 + $0x38] sm:$0xff] %vm443_vm0, %v3980_v45  ;;  %v3949_v14 = vadd.f32 %v3823_v23, %v7337_v24  ;;  %v3603_v30 = vadd.f32 %v7029_v44, %v3602_v2  ;;  %v3604_v48 = vpop.f32.mrb[69].mxu1  ;;  %v7344_v45 = vmax.f32 %v5620_v11, 0.0 }
 0x56b   : > { %v3981_v60 = vmax.f32 %v3949_v14, 0.0  ;;  %v3828_v7 = vadd.f32 %v4620_v37, %v3603_v30 }
 0x56c   : > { %v3607_v46 = vpop.f32.mrb[70].mxu1  ;;  %v4623_v41 = vpop.f32.mrb[88].mxu0 }
 0x56d   : > { %4013 = vst.msk [vmem:[%s7037_s20 + $0x40] sm:$0xff] %vm443_vm0, %v3981_v60  ;;  %v3950_v21 = vadd.f32 %v3828_v7, %v7338_v34  ;;  %v3608_v6 = vadd.f32 %v7029_v44, %v3607_v46  ;;  %v3609_v39 = vpop.f32.mrb[71].mxu1  ;;  %v3832_v0 = vpop.f32.mrb[89].mxu0  ;;  %v7345_v7 = vmax.f32 %v5642_v26, 0.0 }
 0x56f   : > { %v3982_v53 = vmax.f32 %v3950_v21, 0.0  ;;  %v3833_v50 = vadd.f32 %v3832_v0, %v3608_v6  ;;  %v7346_v0 = vld [vmem:[#allocation9_spill] sm:$0xff] }
 0x570   : > { %v3612_v18 = vpop.f32.mrb[72].mxu1 }
 0x571   : > { %4014 = vst.msk [vmem:[%s7037_s20 + $0x48] sm:$0xff] %vm443_vm0, %v3982_v53  ;;  %v3951_v16 = vadd.f32 %v3833_v50, %v7339_v58  ;;  %v3613_v28 = vadd.f32 %v7029_v44, %v3612_v18  ;;  %v3614_v31 = vpop.f32.mrb[73].mxu1  ;;  %v4626_v29 = vpop.f32.mrb[90].mxu0  ;;  %v7347_v53 = vmax.f32 %v7346_v0, 0.0 }
 0x572   : > { %v3842_v51 = vpop.f32.mrb[91].mxu0 }
 0x573   : > { %v3983_v40 = vmax.f32 %v3951_v16, 0.0  ;;  %v3838_v52 = vadd.f32 %v4623_v41, %v3613_v28 }
 0x574   : > { %v3617_v49 = vpop.f32.mrb[74].mxu1 }
 0x575   : > { %4015 = vst.msk [vmem:[%s7037_s20 + $0x50] sm:$0xff] %vm443_vm0, %v3983_v40  ;;  %v3952_v54 = vadd.f32 %v3838_v52, %v7340_v9  ;;  %v3618_v57 = vadd.f32 %v7029_v44, %v3617_v49  ;;  %v3619_v10 = vpop.f32.mrb[75].mxu1 }
 0x577   : > { %v3984_v61 = vmax.f32 %v3952_v54, 0.0  ;;  %v3843_v25 = vadd.f32 %v3842_v51, %v3618_v57 }
 0x578   : > { %v3622_v20 = vpop.f32.mrb[76].mxu1 }
 0x579   : > { %4016 = vst.msk [vmem:[%s7037_s20 + $0x58] sm:$0xff] %vm443_vm0, %v3984_v61  ;;  %v3953_v15 = vadd.f32 %v3843_v25, %v7341_v27  ;;  %v3623_v8 = vadd.f32 %v7029_v44, %v3622_v20  ;;  %v3624_v62 = vpop.f32.mrb[77].mxu1  ;;  %v7350_v61 = vld [vmem:[#allocation10_spill] sm:$0xff] }
 0x57a   : > { %v7351_v25 = vmax.f32 %v7350_v61, 0.0 }
 0x57b   : > { %v3985_v47 = vmax.f32 %v3953_v15, 0.0  ;;  %v3848_v56 = vadd.f32 %v4626_v29, %v3623_v8  ;;  %v7348_v29 = vld [vmem:[#allocation11_spill] sm:$0xff] }
 0x57c   : > { %v3627_v35 = vpop.f32.mrb[78].mxu1  ;;  %v4629_v59 = vpop.f32.mrb[92].mxu0  ;;  %v7349_v51 = vmax.f32 %v7348_v29, 0.0 }
 0x57d   : > { %4017 = vst.msk [vmem:[%s7037_s20 + $0x60] sm:$0xff] %vm443_vm0, %v3985_v47  ;;  %v3954_v19 = vadd.f32 %v3848_v56, %v7342_v22  ;;  %v3628_v32 = vadd.f32 %v7029_v44, %v3627_v35  ;;  %v3629_v1 = vpop.f32.mrb[79].mxu1  ;;  %v3852_v43 = vpop.f32.mrb[93].mxu0  ;;  %v7352_v35 = vld [vmem:[#allocation13_spill] sm:$0xff] }
 0x57f   : > { %v3986_v5 = vmax.f32 %v3954_v19, 0.0  ;;  %v3853_v36 = vadd.f32 %v3852_v43, %v3628_v32 }
 0x580   : > { %v3632_v37 = vpop.f32.mrb[80].mxu1 }
 0x581   : > { %4018 = vst.msk [vmem:[%s7037_s20 + $0x68] sm:$0xff] %vm443_vm0, %v3986_v5  ;;  %v3955_v42 = vadd.f32 %v3853_v36, %v7343_v33  ;;  %v3633_v12 = vadd.f32 %v7029_v44, %v3632_v37  ;;  %v3634_v55 = vpop.f32.mrb[81].mxu1  ;;  %v4632_v4 = vpop.f32.mrb[94].mxu0  ;;  %v7354_v37 = vld [vmem:[#allocation12_spill] sm:$0xff] }
 0x582   : > { %v3862_v3 = vpop.f32.mrb[95].mxu0  ;;  %v7355_v33 = vmax.f32 %v7354_v37, 0.0  ;;  %v7368_v37 = vld [vmem:[#allocation21_spill] sm:$0xff] }
 0x583   : > { %v3987_v63 = vmax.f32 %v3955_v42, 0.0  ;;  %v3858_v38 = vadd.f32 %v4629_v59, %v3633_v12  ;;  %v7353_v59 = vmax.f32 %v7352_v35, 0.0 }
 0x584   : > { %v3637_v17 = vpop.f32.mrb[82].mxu1 }
 0x585   : > { %4019 = vst.msk [vmem:[%s7037_s20 + $0x70] sm:$0xff] %vm443_vm0, %v3987_v63  ;;  %v3956_v23 = vadd.f32 %v3858_v38, %v7344_v45  ;;  %v3638_v2 = vadd.f32 %v7029_v44, %v3637_v17  ;;  %v3639_v24 = vpop.f32.mrb[83].mxu1  ;;  %v4635_v13 = vpop.f32.mrb[96].mxu0  ;;  %v7356_v17 = vld [vmem:[#allocation15_spill] sm:$0xff] }
 0x586   : > { %v3872_v14 = vpop.f32.mrb[97].mxu0  ;;  %v7357_v45 = vmax.f32 %v7356_v17, 0.0 }
 0x587   : > { %v3988_v30 = vmax.f32 %v3956_v23, 0.0  ;;  %v3863_v48 = vadd.f32 %v3862_v3, %v3638_v2 }
 0x588   : > { %v3642_v60 = vpop.f32.mrb[84].mxu1 }
 0x589   : > { %4020 = vst.msk [vmem:[%s7037_s20 + $0x78] sm:$0xff] %vm443_vm0, %v3988_v30  ;;  %v3957_v46 = vadd.f32 %v3863_v48, %v7345_v7  ;;  %v3643_v41 = vadd.f32 %v7029_v44, %v3642_v60  ;;  %v3644_v34 = vpop.f32.mrb[85].mxu1  ;;  %v7358_v48 = vld [vmem:[#allocation14_spill] sm:$0xff] }
 0x58a   : > { %v7359_v60 = vmax.f32 %v7358_v48, 0.0 }
 0x58b   : > { %v3989_v11 = vmax.f32 %v3957_v46, 0.0  ;;  %v3868_v21 = vadd.f32 %v4632_v4, %v3643_v41 }
 0x58c   : > { %v3647_v6 = vpop.f32.mrb[86].mxu1  ;;  %v4638_v39 = vpop.f32.mrb[98].mxu0 }
 0x58d   : > { %4021 = vst.msk [vmem:[%s7037_s20 + $0x80] sm:$0xff] %vm443_vm0, %v3989_v11  ;;  %v3958_v50 = vadd.f32 %v3868_v21, %v7347_v53  ;;  %v3648_v18 = vadd.f32 %v7029_v44, %v3647_v6  ;;  %v3649_v58 = vpop.f32.mrb[87].mxu1  ;;  %v3882_v16 = vpop.f32.mrb[99].mxu0 }
 0x58f   : > { %v3990_v26 = vmax.f32 %v3958_v50, 0.0  ;;  %v3873_v28 = vadd.f32 %v3872_v14, %v3648_v18 }
 0x590   : > { %v3652_v31 = vpop.f32.mrb[88].mxu1 }
 0x591   : > { %4022 = vst.msk [vmem:[%s7037_s20 + $0x88] sm:$0xff] %vm443_vm0, %v3990_v26  ;;  %v3959_v40 = vadd.f32 %v3873_v28, %v7349_v51  ;;  %v3653_v52 = vadd.f32 %v7029_v44, %v3652_v31  ;;  %v3654_v49 = vpop.f32.mrb[89].mxu1  ;;  %v7362_v31 = vld [vmem:[#allocation16_spill] sm:$0xff] }
 0x592   : > { %v7363_v29 = vmax.f32 %v7362_v31, 0.0 }
 0x593   : > { %v3991_v9 = vmax.f32 %v3959_v40, 0.0  ;;  %v3878_v54 = vadd.f32 %v4635_v13, %v3653_v52 }
 0x594   : > { %v3657_v57 = vpop.f32.mrb[90].mxu1  ;;  %v4641_v10 = vpop.f32.mrb[100].mxu0 }
 0x595   : > { %4023 = vst.msk [vmem:[%s7037_s20 + $0x90] sm:$0xff] %vm443_vm0, %v3991_v9  ;;  %v3960_v20 = vadd.f32 %v3878_v54, %v7351_v25  ;;  %v3658_v27 = vadd.f32 %v7029_v44, %v3657_v57  ;;  %v3659_v15 = vpop.f32.mrb[91].mxu1  ;;  %v3892_v8 = vpop.f32.mrb[101].mxu0  ;;  %v7364_v57 = vld [vmem:[#allocation19_spill] sm:$0xff] }
 0x597   : > { %v3992_v62 = vmax.f32 %v3960_v20, 0.0  ;;  %v3883_v47 = vadd.f32 %v3882_v16, %v3658_v27 }
 0x598   : > { %v3662_v56 = vpop.f32.mrb[92].mxu1 }
 0x599   : > { %4024 = vst.msk [vmem:[%s7037_s20 + $0x98] sm:$0xff] %vm443_vm0, %v3992_v62  ;;  %v3961_v22 = vadd.f32 %v3883_v47, %v7353_v59  ;;  %v3663_v19 = vadd.f32 %v7029_v44, %v3662_v56  ;;  %v3664_v32 = vpop.f32.mrb[93].mxu1 }
 0x59b   : > { %v3993_v1 = vmax.f32 %v3961_v22, 0.0  ;;  %v3888_v43 = vadd.f32 %v4638_v39, %v3663_v19  ;;  %v7360_v39 = vld [vmem:[#allocation17_spill] sm:$0xff] }
 0x59c   : > { %v3667_v5 = vpop.f32.mrb[94].mxu1  ;;  %v4644_v36 = vpop.f32.mrb[102].mxu0  ;;  %v7361_v0 = vmax.f32 %v7360_v39, 0.0 }
 0x59d   : > { %4025 = vst.msk [vmem:[%s7037_s20 + $0xa0] sm:$0xff] %vm443_vm0, %v3993_v1  ;;  %v3962_v42 = vadd.f32 %v3888_v43, %v7355_v33  ;;  %v3668_v12 = vadd.f32 %v7029_v44, %v3667_v5  ;;  %v3669_v55 = vpop.f32.mrb[95].mxu1  ;;  %v3902_v4 = vpop.f32.mrb[103].mxu0  ;;  %v7369_v33 = vmax.f32 %v7368_v37, 0.0 }
 0x59f   : > { %v3994_v3 = vmax.f32 %v3962_v42, 0.0  ;;  %v3893_v63 = vadd.f32 %v3892_v8, %v3668_v12  ;;  %v7366_v8 = vld [vmem:[#allocation18_spill] sm:$0xff] }
 0x5a0   : > { %v3672_v38 = vpop.f32.mrb[96].mxu1  ;;  %v7367_v62 = vmax.f32 %v7366_v8, 0.0 }
 0x5a1   : > { %4026 = vst.msk [vmem:[%s7037_s20 + $0xa8] sm:$0xff] %vm443_vm0, %v3994_v3  ;;  %v3963_v23 = vadd.f32 %v3893_v63, %v7357_v45  ;;  %v3673_v2 = vadd.f32 %v7029_v44, %v3672_v38  ;;  %v3674_v24 = vpop.f32.mrb[97].mxu1  ;;  %v7370_v3 = vld [vmem:[#allocation20_spill] sm:$0xff] }
 0x5a2   : > { %v7371_v63 = vmax.f32 %v7370_v3, 0.0 }
 0x5a3   : > { %v3995_v13 = vmax.f32 %v3963_v23, 0.0  ;;  %v3898_v14 = vadd.f32 %v4641_v10, %v3673_v2  ;;  %v7365_v10 = vmax.f32 %v7364_v57, 0.0 }
 0x5a4   : > { %v3677_v30 = vpop.f32.mrb[98].mxu1 }
 0x5a5   : > { %4027 = vst.msk [vmem:[%s7037_s20 + $0xb0] sm:$0xff] %vm443_vm0, %v3995_v13  ;;  %v3964_v7 = vadd.f32 %v3898_v14, %v7359_v60  ;;  %v3678_v46 = vadd.f32 %v7029_v44, %v3677_v30  ;;  %v3679_v41 = vpop.f32.mrb[99].mxu1  ;;  %v7372_v60 = vld [vmem:[#allocation23_spill] sm:$0xff] }
 0x5a7   : > { %v3996_v34 = vmax.f32 %v3964_v7, 0.0  ;;  %v3903_v11 = vadd.f32 %v3902_v4, %v3678_v46  ;;  %v7373_v7 = vmax.f32 %v7372_v60, 0.0 }
 0x5a8   : > { %v3682_v21 = vpop.f32.mrb[100].mxu1  ;;  %v4647_v6 = vpop.f32.mrb[104].mxu0 }
 0x5a9   : > { %4028 = vst.msk [vmem:[%s7037_s20 + $0xb8] sm:$0xff] %vm443_vm0, %v3996_v34  ;;  %v3965_v53 = vadd.f32 %v3903_v11, %v7361_v0  ;;  %v3683_v50 = vadd.f32 %v7029_v44, %v3682_v21  ;;  %v3684_v18 = vpop.f32.mrb[101].mxu1  ;;  %v3912_v58 = vpop.f32.mrb[105].mxu0  ;;  %v7374_v11 = vld [vmem:[#allocation22_spill] sm:$0xff] }
 0x5aa   : > { %v7375_v21 = vmax.f32 %v7374_v11, 0.0 }
 0x5ab   : > { %v3997_v16 = vmax.f32 %v3965_v53, 0.0  ;;  %v3908_v26 = vadd.f32 %v4644_v36, %v3683_v50 }
 0x5ac   : > { %v3687_v28 = vpop.f32.mrb[102].mxu1 }
 0x5ad   : > { %4029 = vst.msk [vmem:[%s7037_s20 + $0xc0] sm:$0xff] %vm443_vm0, %v3997_v16  ;;  %v3966_v51 = vadd.f32 %v3908_v26, %v7363_v29  ;;  %v3688_v40 = vadd.f32 %v7029_v44, %v3687_v28  ;;  %v3689_v52 = vpop.f32.mrb[103].mxu1 }
 0x5af   : > { %v3998_v49 = vmax.f32 %v3966_v51, 0.0  ;;  %v3913_v9 = vadd.f32 %v3912_v58, %v3688_v40 }
 0x5b0   : > { %v3692_v54 = vpop.f32.mrb[104].mxu1 }
 0x5b1   : > { %4030 = vst.msk [vmem:[%s7037_s20 + $0xc8] sm:$0xff] %vm443_vm0, %v3998_v49  ;;  %v3967_v61 = vadd.f32 %v3913_v9, %v7365_v10  ;;  %v3693_v25 = vadd.f32 %v7029_v44, %v3692_v54  ;;  %v3694_v20 = vpop.f32.mrb[105].mxu1 }
 0x5b3   : > { %v3999_v27 = vmax.f32 %v3967_v61, 0.0  ;;  %v3918_v15 = vadd.f32 %v4647_v6, %v3693_v25 }
 0x5b5   : > { %4031 = vst.msk [vmem:[%s7037_s20 + $0xd0] sm:$0xff] %vm443_vm0, %v3999_v27  ;;  %v3968_v47 = vadd.f32 %v3918_v15, %v7367_v62 }
 0x5b7   : > { %v4000_v56 = vmax.f32 %v3968_v47, 0.0 }
 0x5b9   : > { %4032 = vst.msk [vmem:[%s7037_s20 + $0xd8] sm:$0xff] %vm443_vm0, %v4000_v56 }
 0x5ca   : > { %v3697_v35 = vpop.f32.mrb[106].mxu1 }
 0x5cb   : > { %v3699_v59 = vpop.f32.mrb[107].mxu1  ;;  %v3698_v22 = vadd.f32 %v7029_v44, %v3697_v35 }
 0x5d8   : > { %v4650_v19 = vpop.f32.mrb[106].mxu0 }
 0x5d9   : > { %v3922_v32 = vpop.f32.mrb[107].mxu0 }
 0x5da   : > { %v3923_v1 = vadd.f32 %v3922_v32, %v3698_v22  ;;  %v3702_v43 = vpop.f32.mrb[108].mxu1 }
 0x5db   : > { %v3703_v5 = vadd.f32 %v7029_v44, %v3702_v43  ;;  %v3704_v36 = vpop.f32.mrb[109].mxu1 }
 0x5dc   : > { %v3969_v42 = vadd.f32 %v3923_v1, %v7369_v33 }
 0x5dd   : > { %v3928_v12 = vadd.f32 %v4650_v19, %v3703_v5 }
 0x5de   : > { %v4001_v55 = vmax.f32 %v3969_v42, 0.0  ;;  %v3707_v4 = vpop.f32.mrb[110].mxu1 }
 0x5df   : > { %v3970_v38 = vadd.f32 %v3928_v12, %v7371_v63  ;;  %v3709_v17 = vpop.f32.mrb[111].mxu1  ;;  %v3708_v23 = vadd.f32 %v7029_v44, %v3707_v4 }
 0x5e0   : > { %4033 = vst.msk [vmem:[%s7037_s20 + $0xe0] sm:$0xff] %vm443_vm0, %v4001_v55 }
 0x5e1   : > { %v4002_v45 = vmax.f32 %v3970_v38, 0.0 }
 0x5e3   : > { %4034 = vst.msk [vmem:[%s7037_s20 + $0xe8] sm:$0xff] %vm443_vm0, %v4002_v45 }
 0x5e9   : > { %v4653_v2 = vpop.f32.mrb[108].mxu0 }
 0x5ea   : > { %v3932_v24 = vpop.f32.mrb[109].mxu0 }
 0x5eb   : > { %v3933_v13 = vadd.f32 %v3932_v24, %v3708_v23  ;;  %v3712_v14 = vpop.f32.mrb[112].mxu1 }
 0x5ec   : > { %v3713_v30 = vadd.f32 %v7029_v44, %v3712_v14  ;;  %v3714_v48 = vpop.f32.mrb[113].mxu1 }
 0x5ed   : > { %v3971_v46 = vadd.f32 %v3933_v13, %v7373_v7 }
 0x5ee   : > { %v3938_v41 = vadd.f32 %v4653_v2, %v3713_v30 }
 0x5ef   : > { %v4003_v34 = vmax.f32 %v3971_v46, 0.0 }
 0x5f0   : > { %v3972_v6 = vadd.f32 %v3938_v41, %v7375_v21 }
 0x5f1   : > { %4035 = vst.msk [vmem:[%s7037_s20 + $0xf0] sm:$0xff] %vm443_vm0, %v4003_v34 }
 0x5f2   : > { %v4004_v44 = vmax.f32 %v3972_v6, 0.0 }
 0x5f4   : > { %4036 = vst.msk [vmem:[%s7037_s20 + $0xf8] sm:$0xff] %vm443_vm0, %v4004_v44 }
 0x5f5   : > { %5064 = shalt.err (!%p5061_p4)
}
 0x5f6   : > { %s5065_s27 = scalar_lea.hbm %s7198_s17, 4096  ;;  %s5069_s23 = scalar_lea.hbm %s7255_s9, 8192 }
 0x5f7   : > { %p5066_p5 = scmp.ne.s32.totalorder %s7198_s17, %s5065_s27  ;;  %p5070_p1 = scmp.lt.u32.totalorder %s7198_s17, %s7255_s9 }
 0x5f8   : > { %p5071_p3 = scmp.lt.u32.totalorder %s5069_s23, %s5065_s27  ;;  %p5073_p11 = scmp.lt.u32.totalorder %s5065_s27, %s7198_s17 }
 0x5f9   : > { %p5067_p7 = pnand %p5066_p5, %p7376_p12 }
 0x5fa   : > { %p5072_p6 = por %p5071_p3, %p5070_p1 }
 0x5fb   : > { %p5068_p9 = pneg %p5067_p7 }
 0x5fc   : > { %p5074_p13 = por %p5073_p11, %p5072_p6 }
 0x5fe   : > { %p5075_p8 = pnand %p5074_p13, %p5068_p9 }
 0x600   : > { %5078 = shalt.err (!%p5075_p8)
}
 0x601   : > { %s5128_s26 = smov 128   ;;  %s5129_s19 = smov 8  }
 0x602   : > { %4848 = dma.vmem_to_hbm [thread:$0]  (%p7376_p12), %s7200_s28, 4096, %s7198_s17, %s4038_s13, %s5128_s26, %s5128_s26, %s5129_s19  }
 0x603 PF: > { %s4066_s14 = sand.u32 1, %s5105_s30   ;;  %p7377_p10 = scmp.ne.s32.totalorder %s7310_s22, 0 }
 0x604   : > { %p7378_p0 = scmp.ge.s32.totalorder %s5117_s12, 2  ;;  %s4067_s27 = scalar_lea.sflag [#allocation5], %s4066_s14 }
 0x606   : > { %p4855_p2 = pnand %p7378_p0, %p7377_p10 }
 0x608   : > { %5100 = dma.done.wait (!%p4855_p2), %s4067_s27, 4096  }
 0x609   : > { %5102 = vsyncadd (!%p4855_p2), %s4067_s27, 4294963200  ;;  %p22_p4 = scmp.ge.s32.totalorder %s5205_s15, 4   ;;  %s7379_s30 = smov %s5109_s10 }
 0x60a   : > { %s7380_s10 = smov %s5113_s11  ;;  %s7381_s11 = smov %s5217_s18 }
 0x60b   : > { %s7382_s12 = smov %s5205_s15  ;;  %24 = sbr.rel (!%p22_p4) target bundleno = 5 (0x5), region = 105 }
 0x612   :  { %4072 = vsyncpa [#allocation4], 1 }
 0x613   :  { %4074 = vsyncpa [#allocation4 + $0x1], 1 }
 0x614   :  { %4075 = vsyncpa [#allocation5], 1 }
 0x615   :  { %4077 = vsyncpa [#allocation5 + $0x1], 1 }

</bundles_post_ra>
